<compile_context>
chip_gen: v7x
topology: tpu7x:2x2x1
jax: 0.10.0
libtpu: 0.0.40
codegen_flags: <defaults>
</compile_context>

<pallas_src>
import functools
import numpy as np

import jax
import jax.numpy as jnp
from jax.experimental import pallas as pl
from jax.experimental.pallas import tpu as pltpu


# ---------------------------------------------------------------------------
# Pairwise ops (mirror the PyTorch Add/Sub/Prod/Eq/Neq/And/Or/Not callables)
# ---------------------------------------------------------------------------
def op_add(a, b):  return a + b
def op_sub(a, b):  return a - b
def op_prod(a, b): return a * b
def op_eq(a, b):   return (a == b).astype(jnp.float32)
# NOTE: the PyTorch Neq returns `(t1 == t2).float()` (its `t1 != t2` line is dead code);
# reproduced exactly.
def op_neq(a, b):  return (a == b).astype(jnp.float32)

# torch.bitwise_and/or/not can't run on the float tensors that actually flow through
# DeepLogic.  Inside DeepLogic the logic layer only ever sees Eq/Neq outputs, which are
# exactly {0,1}, so the bitwise ops are implemented with exact float arithmetic (no
# int<->float convert traffic on the largest elementwise region):
#   and(a,b)=a*b   or(a,b)=a+b-a*b   not(a)=-(a+1)  (== ~a for any integer-valued float)
def op_and(a, b): return a * b
def op_or(a, b):  return a + b - a * b
def op_not(a, b): return -(a + 1.0)   # f2 is a dummy input, like the PyTorch Not

TERM_OPS  = (op_add, op_sub, op_prod)   # Add, Sub, Prod
REL_OPS   = (op_eq, op_neq)             # Eq, Neq
LOGIC_OPS = (op_and, op_or, op_not)     # And, Or, Not


# ---------------------------------------------------------------------------
# Fused Pallas kernel: Term -> Relation -> Logic, everything resident in VMEM
# ---------------------------------------------------------------------------
def _deep_logic_kernel(*refs, meta):
    """
    refs = (x_ref, g_ref_0, ..., g_ref_{L-1}, out_ref)
      x_ref  : (B*o0, N0)          selected input rows (selection hoisted to the wrapper)
      g_ref_l: (rows_l, 2*Pp_l)    merged one-hot pair-gather matrix of layer l
      out_ref: (B*o_last, nops_last*P_last)  final output, reference concat order
    meta = per-layer (ops, P, Pp, row_sel) — static Python data baked at trace time.
    """
    x_ref, out_ref = refs[0], refs[-1]
    g_refs = refs[1:-1]
    n_layers = len(meta)

    v = x_ref[...]                                       # (M, width)
    for li, (ops, P, Pp, row_sel) in enumerate(meta):
        if row_sel is not None:
            # static SoftmaxSelector row selection for inner layers (identity is skipped)
            v = jnp.concatenate([v[r:r + 1, :] for r in row_sel], axis=0)

        # Both pair gathers of this layer in a single MXU matmul (one-hot columns).
        pairs = jnp.dot(v, g_refs[li][...], preferred_element_type=jnp.float32)
        x1 = pairs[:, :Pp]       # first pair element;  lanes [P, Pp) are alignment padding
        x2 = pairs[:, Pp:]       # second pair element

        parts = [op(x1, x2) for op in ops]
        if li + 1 < n_layers:
            # Keep the per-op 128-aligned padded blocks; the next layer's gather matrix
            # has zero rows at the padded positions, so no lane compaction is needed.
            v = jnp.concatenate(parts, axis=-1)
        else:
            # Final layer: lane-dense store in reference order torch.cat([op0|op1|...],-1)
            out_ref[...] = jnp.concatenate([p[:, :P] for p in parts], axis=-1)


# ---------------------------------------------------------------------------
# Host-side static plan + single pallas_call
# ---------------------------------------------------------------------------
def _round_up(x, m):
    return -(-x // m) * m


def _softmax_argmax(param):
    p = np.asarray(param, dtype=np.float32)
    y = np.exp(p - p.max(axis=1, keepdims=True))
    y = y / y.sum(axis=1, keepdims=True)
    return np.argmax(y, axis=1)          # first-max tie-breaking, same as torch


def deep_logic_forward(x, layers):
    """x: (B, K, N) float32; layers: list of (selector_param (o, num_input), ops)."""
    B, K, N = x.shape

    metas, g_mats = [], []
    n_valid = N                      # valid feature count on the lane axis
    n_rows = N                       # (padded) row count of the incoming slab
    feat_pos = np.arange(N)          # padded lane position of each valid feature
    ind0 = None
    o_prev = None

    for li, (param, ops) in enumerate(layers):
        o, _num_input = param.shape
        ind = _softmax_argmax(param)     # SoftmaxSelector: argmax(softmax(parameter), dim=1)
        if li == 0:
            assert (ind < K).all(), "index_select(dim=1) out of range (as it would be in PyTorch)"
            ind0 = ind
            row_sel = None               # hoisted to the wrapper (applied to x below)
        else:
            assert (ind < o_prev).all(), "index_select(dim=1) out of range (as it would be in PyTorch)"
            rows = [b * o_prev + int(i) for b in range(B) for i in ind]
            row_sel = None if rows == list(range(B * o)) else tuple(rows)

        # Same pair ordering as torch.triu_indices(N, N, 1)
        r_idx, c_idx = np.triu_indices(n_valid, k=1)
        P = int(r_idx.shape[0])
        Pp = _round_up(P, 128)           # 128-lane aligned split between x1 / x2 halves
        g = np.zeros((n_rows, 2 * Pp), np.float32)
        g[feat_pos[r_idx], np.arange(P)] = 1.0
        g[feat_pos[c_idx], Pp + np.arange(P)] = 1.0
        g_mats.append(jnp.asarray(g))
        metas.append((ops, P, Pp, row_sel))

        nops = len(ops)
        n_valid = nops * P               # next layer's valid feature count (concat order)
        n_rows = nops * Pp               # next layer's padded slab width
        f = np.arange(n_valid)
        feat_pos = (f // P) * Pp + (f % P)
        o_prev = o

    # Hoisted layer-1 SoftmaxSelector row selection + fold batch into the matmul M dim.
    o0 = layers[0][0].shape[0]
    x_sel = jnp.take(x, jnp.asarray(ind0), axis=1).reshape(B * o0, N)

    o_last = layers[-1][0].shape[0]
    out_w = n_valid                      # nops_last * P_last
    kernel = functools.partial(_deep_logic_kernel, meta=tuple(metas))
    vmem_spec = pl.BlockSpec(memory_space=pltpu.MemorySpace.VMEM)

    out = pl.pallas_call(
        kernel,
        out_shape=jax.ShapeDtypeStruct((B * o_last, out_w), jnp.float32),
        in_specs=[vmem_spec] * (1 + len(layers)),
        out_specs=vmem_spec,
        compiler_params=pltpu.CompilerParams(vmem_limit_bytes=32 * 1024 * 1024),
    )(x_sel, *g_mats)

    return out.reshape(B, o_last, out_w)   # free metadata reshape (rows are b-major)


# ---------------------------------------------------------------------------
# DeepLogic wrapper
# ---------------------------------------------------------------------------
class Cfg:
    # Chosen so the reference PyTorch module itself would run without index / broadcast
    # errors: SoftmaxSelector.index_select(dim=1) indexes the K (group) axis, so selector
    # indices must stay < K, and `outputs * y_hard` broadcasting requires num_output in {1, M}.
    term_inputs,  term_outputs  = [4], [1]
    rel_inputs,   rel_outputs   = [1], [1]
    logic_inputs, logic_outputs = [1], [1]


class DeepLogicPallas:
    def __init__(self, cfg, key):
        n_sel = len(cfg.term_inputs) + len(cfg.rel_inputs) + len(cfg.logic_inputs)
        keys = iter(jax.random.split(key, n_sel))
        self.layers = []
        for i, o in zip(cfg.term_inputs, cfg.term_outputs):
            self.layers.append((jax.random.normal(next(keys), (o, i), dtype=jnp.float32), TERM_OPS))
        for i, o in zip(cfg.rel_inputs, cfg.rel_outputs):
            self.layers.append((jax.random.normal(next(keys), (o, i), dtype=jnp.float32), REL_OPS))
        for i, o in zip(cfg.logic_inputs, cfg.logic_outputs):
            self.layers.append((jax.random.normal(next(keys), (o, i), dtype=jnp.float32), LOGIC_OPS))

    def __call__(self, x):
        # TODO(synk): forward-only; if this is ever differentiated, the SoftmaxSelector
        # straight-through (y_hard) path must be reinstated via a custom_vjp.
        return deep_logic_forward(x, self.layers)


if __name__ == "__main__":
    key = jax.random.PRNGKey(0)
    k_x, k_params = jax.random.split(key)

    B, K, N = 2, 4, 3
    # small integer-valued floats so Eq/Neq hits occur and the logic stage is non-trivial
    x = jax.random.randint(k_x, (B, K, N), 0, 4).astype(jnp.float32)

    model = DeepLogicPallas(Cfg(), k_params)
    out = model(x)
    out = jax.block_until_ready(out)

    # term: (2,1,9) -> relation: (2,1,72) -> logic: (2,1,7668)
    assert out.shape == (2, 1, 7668), out.shape
    assert out.dtype == jnp.float32
    print("KERNEL_OK")
</pallas_src>

<mosaic_0001>
module attributes {stable_mosaic.version = 11 : i64} {
  func.func @_deep_logic_kernel(%arg0: memref<2x3xf32, #tpu.memory_space<vmem>>, %arg1: memref<3x256xf32, #tpu.memory_space<vmem>>, %arg2: memref<384x256xf32, #tpu.memory_space<vmem>>, %arg3: memref<256x5120xf32, #tpu.memory_space<vmem>>, %arg4: memref<2x7668xf32, #tpu.memory_space<vmem>>) attributes {dimension_semantics = [], scalar_prefetch = 0 : i64, scratch_operands = 0 : i64, tpu.core_type = #tpu.core_type<tc>} {
    %c0 = arith.constant 0 : index
    %c0_0 = arith.constant 0 : index
    %0 = vector.load %arg0[%c0, %c0_0] : memref<2x3xf32, #tpu.memory_space<vmem>>, vector<2x3xf32>
    %c0_1 = arith.constant 0 : index
    %c0_2 = arith.constant 0 : index
    %1 = vector.load %arg1[%c0_1, %c0_2] : memref<3x256xf32, #tpu.memory_space<vmem>>, vector<3x256xf32>
    %cst = arith.constant dense<0.000000e+00> : vector<2x256xf32>
    %2 = tpu.matmul %0, %1, %cst {dimension_numbers = #tpu.dot_dimension_numbers<[1], [0], [0], [1], [0, 0, 1, 1], [], []>} : vector<2x3xf32>, vector<3x256xf32>, vector<2x256xf32> -> vector<2x256xf32>
    %3 = vector.extract_strided_slice %2 {offsets = [0, 0], sizes = [2, 128], strides = [1, 1]} : vector<2x256xf32> to vector<2x128xf32>
    %4 = vector.extract_strided_slice %2 {offsets = [0, 128], sizes = [2, 128], strides = [1, 1]} : vector<2x256xf32> to vector<2x128xf32>
    %5 = arith.addf %3, %4 : vector<2x128xf32>
    %6 = arith.subf %3, %4 : vector<2x128xf32>
    %7 = arith.mulf %3, %4 : vector<2x128xf32>
    %8 = tpu.concatenate %5, %6, %7 in 1 : vector<2x128xf32>, vector<2x128xf32>, vector<2x128xf32> -> vector<2x384xf32>
    %c0_3 = arith.constant 0 : index
    %c0_4 = arith.constant 0 : index
    %9 = vector.load %arg2[%c0_3, %c0_4] : memref<384x256xf32, #tpu.memory_space<vmem>>, vector<384x256xf32>
    %cst_5 = arith.constant dense<0.000000e+00> : vector<2x256xf32>
    %10 = tpu.matmul %8, %9, %cst_5 {dimension_numbers = #tpu.dot_dimension_numbers<[1], [0], [0], [1], [0, 0, 1, 1], [], []>} : vector<2x384xf32>, vector<384x256xf32>, vector<2x256xf32> -> vector<2x256xf32>
    %11 = vector.extract_strided_slice %10 {offsets = [0, 0], sizes = [2, 128], strides = [1, 1]} : vector<2x256xf32> to vector<2x128xf32>
    %12 = vector.extract_strided_slice %10 {offsets = [0, 128], sizes = [2, 128], strides = [1, 1]} : vector<2x256xf32> to vector<2x128xf32>
    %13 = arith.cmpf oeq, %11, %12 : vector<2x128xf32>
    %14 = arith.extui %13 : vector<2x128xi1> to vector<2x128xi32>
    %15 = arith.sitofp %14 : vector<2x128xi32> to vector<2x128xf32>
    %16 = arith.cmpf oeq, %11, %12 : vector<2x128xf32>
    %17 = arith.extui %16 : vector<2x128xi1> to vector<2x128xi32>
    %18 = arith.sitofp %17 : vector<2x128xi32> to vector<2x128xf32>
    %19 = tpu.concatenate %15, %18 in 1 : vector<2x128xf32>, vector<2x128xf32> -> vector<2x256xf32>
    %c0_6 = arith.constant 0 : index
    %c0_7 = arith.constant 0 : index
    %20 = vector.load %arg3[%c0_6, %c0_7] : memref<256x5120xf32, #tpu.memory_space<vmem>>, vector<256x5120xf32>
    %cst_8 = arith.constant dense<0.000000e+00> : vector<2x5120xf32>
    %21 = tpu.matmul %19, %20, %cst_8 {dimension_numbers = #tpu.dot_dimension_numbers<[1], [0], [0], [1], [0, 0, 1, 1], [], []>} : vector<2x256xf32>, vector<256x5120xf32>, vector<2x5120xf32> -> vector<2x5120xf32>
    %22 = vector.extract_strided_slice %21 {offsets = [0, 0], sizes = [2, 2560], strides = [1, 1]} : vector<2x5120xf32> to vector<2x2560xf32>
    %23 = vector.extract_strided_slice %21 {offsets = [0, 2560], sizes = [2, 2560], strides = [1, 1]} : vector<2x5120xf32> to vector<2x2560xf32>
    %24 = arith.mulf %22, %23 : vector<2x2560xf32>
    %25 = arith.addf %22, %23 : vector<2x2560xf32>
    %26 = arith.mulf %22, %23 : vector<2x2560xf32>
    %27 = arith.subf %25, %26 : vector<2x2560xf32>
    %cst_9 = arith.constant 1.000000e+00 : f32
    %28 = vector.broadcast %cst_9 : f32 to vector<2x2560xf32>
    %29 = arith.addf %22, %28 : vector<2x2560xf32>
    %cst_10 = arith.constant 0.000000e+00 : f32
    %30 = vector.broadcast %cst_10 : f32 to vector<2x2560xf32>
    %31 = arith.subf %30, %29 : vector<2x2560xf32>
    %32 = vector.extract_strided_slice %24 {offsets = [0, 0], sizes = [2, 2556], strides = [1, 1]} : vector<2x2560xf32> to vector<2x2556xf32>
    %33 = vector.extract_strided_slice %27 {offsets = [0, 0], sizes = [2, 2556], strides = [1, 1]} : vector<2x2560xf32> to vector<2x2556xf32>
    %34 = vector.extract_strided_slice %31 {offsets = [0, 0], sizes = [2, 2556], strides = [1, 1]} : vector<2x2560xf32> to vector<2x2556xf32>
    %35 = tpu.concatenate %32, %33, %34 in 1 : vector<2x2556xf32>, vector<2x2556xf32>, vector<2x2556xf32> -> vector<2x7668xf32>
    %c0_11 = arith.constant 0 : index
    %c0_12 = arith.constant 0 : index
    %36 = vector.load %arg4[%c0_11, %c0_12] : memref<2x7668xf32, #tpu.memory_space<vmem>>, vector<2x7668xf32>
    tpu.vector_store %arg4[%c0_11, %c0_12], %35 {strides = array<i32>} : memref<2x7668xf32, #tpu.memory_space<vmem>>, vector<2x7668xf32>,
    return
  }
}

</mosaic_0001>

<bundles_post_ra>
// kernel: tpu_custom_call.1
= control target key start
LH: loop header
LB: loop body
LE: loop exit
PB: predicated region body
PF: predicated region fallthrough
CT: control target
= control target key end

     0   :  { %9 = vsyncpa [#allocation3], 0  ;;  %s5784_s0 = inlined_call_operand.hbm [shape: f32[2,3], index: 0, kind: input, shape index: {}]   ;;  %s5785_s1 = inlined_call_operand.hbm [shape: f32[3,256], index: 1, kind: input, shape index: {}]   ;;  %s5786_s2 = inlined_call_operand.hbm [shape: f32[384,256], index: 2, kind: input, shape index: {}]   ;;  %s5787_s3 = inlined_call_operand.hbm [shape: f32[256,5120], index: 3, kind: input, shape index: {}]   ;;  %s5788_s4 = inlined_call_operand.hbm [shape: f32[2,7668], index: 4, kind: output, shape index: {}]  }
   0x1   :  { %10 = vsyncpa [#allocation6], 0 }
   0x2   :  { %11 = vsyncpa [#allocation9], 0 }
   0x3   :  { %12 = vsyncpa [#allocation4], 0  ;;  %s5247_s15 = smov [#allocation5]   ;;  %s5248_s17 = smov [#allocation2]  }
   0x4   :  { %s29_s16 = sshll.u32 %s5247_s15, 4  ;;  %s19_s18 = sshll.u32 %s5248_s17, 4  ;;  %s30_s16 = int_to_ptr.vmem [resolvable:$true] %s29_s16  ;;  %s20_s18 = int_to_ptr.vmem [resolvable:$true] %s19_s18 }
   0x5   :  { %s5129_s21 = scalar_lea.hbm %s5785_s1, 128 }
   0x6   :  { %p5130_p0 = scmp.ne.s32.totalorder %s5785_s1, %s5129_s21  ;;  %p5133_p1 = scmp.lt.u32.totalorder %s5129_s21, %s5785_s1 }
   0x8   :  { %p5135_p2 = pnand %p5133_p1, %p5130_p0 }
   0xa   :  { %5138 = shalt.err (!%p5135_p2)
}
   0xb   :  { %s5139_s26 = scalar_lea.vmem %s30_s16, 128  ;;  %p5144_p4 = scmp.lt.s32.totalorder %s30_s16, %s30_s16 }
   0xc   :  { %p5140_p3 = scmp.ne.s32.totalorder %s30_s16, %s5139_s26  ;;  %p5145_p5 = scmp.lt.s32.totalorder %s5139_s26, %s5139_s26 }
   0xe   :  { %p5146_p6 = por %p5145_p5, %p5144_p4 }
  0x10   :  { %p5147_p7 = pnand %p5146_p6, %p5140_p3 }
  0x12   :  { %5150 = shalt.err (!%p5147_p7)
}
  0x13   :  { %32 = dma.hbm_to_vmem [thread:$0]  %s5785_s1, 128, %s30_s16, [#allocation6]  }
  0x14   :  { %s5151_s5 = scalar_lea.hbm %s5784_s0, 32 }
  0x15   :  { %p5152_p8 = scmp.ne.s32.totalorder %s5784_s0, %s5151_s5  ;;  %p5155_p9 = scmp.lt.u32.totalorder %s5151_s5, %s5784_s0 }
  0x17   :  { %p5157_p10 = pnand %p5155_p9, %p5152_p8 }
  0x19   :  { %5160 = shalt.err (!%p5157_p10)
}
  0x1a   :  { %s5161_s10 = scalar_lea.vmem %s20_s18, 32  ;;  %p5166_p12 = scmp.lt.s32.totalorder %s20_s18, %s20_s18 }
  0x1b   :  { %p5162_p11 = scmp.ne.s32.totalorder %s20_s18, %s5161_s10  ;;  %p5167_p13 = scmp.lt.s32.totalorder %s5161_s10, %s5161_s10 }
  0x1d   :  { %p5168_p0 = por %p5167_p13, %p5166_p12 }
  0x1f   :  { %p5169_p1 = pnand %p5168_p0, %p5162_p11 }
  0x21   :  { %5172 = shalt.err (!%p5169_p1)
}
  0x22   :  { %22 = dma.hbm_to_vmem [thread:$0]  %s5784_s0, 32, %s20_s18, [#allocation3]  }
  0x23   :  { %s5249_s12 = smov [#allocation7]   ;;  %s5173_s16 = scalar_lea.hbm %s5786_s2, 12288 }
  0x24   :  { %s38_s13 = sshll.u32 %s5249_s12, 4  ;;  %p5174_p2 = scmp.ne.s32.totalorder %s5786_s2, %s5173_s16  ;;  %s39_s13 = int_to_ptr.vmem [resolvable:$true] %s38_s13 }
  0x25   :  { %p5177_p3 = scmp.lt.u32.totalorder %s5173_s16, %s5786_s2 }
  0x27   :  { %p5179_p4 = pnand %p5177_p3, %p5174_p2 }
  0x29   :  { %5182 = shalt.err (!%p5179_p4)
}
  0x2a   :  { %s5183_s22 = scalar_lea.vmem %s39_s13, 12288  ;;  %p5188_p6 = scmp.lt.s32.totalorder %s39_s13, %s39_s13 }
  0x2b   :  { %p5184_p5 = scmp.ne.s32.totalorder %s39_s13, %s5183_s22  ;;  %p5189_p7 = scmp.lt.s32.totalorder %s5183_s22, %s5183_s22 }
  0x2d   :  { %p5190_p8 = por %p5189_p7, %p5188_p6 }
  0x2f   :  { %p5191_p9 = pnand %p5190_p8, %p5184_p5 }
  0x31   :  { %5194 = shalt.err (!%p5191_p9)
}
  0x32   :  { %s5250_s0 = smov 256   ;;  %s5251_s18 = smov 16  }
  0x33   :  { %44 = dma.hbm_to_vmem [thread:$0]  %s5786_s2, 12288, %s39_s13, [#allocation6], %s5250_s0, %s5250_s0, %s5251_s18  }
  0x34   :  { %s5252_s25 = smov [#allocation8]   ;;  %s5195_s29 = scalar_lea.hbm %s5787_s3, 163840 }
  0x35   :  { %s50_s26 = sshll.u32 %s5252_s25, 4  ;;  %p5196_p10 = scmp.ne.s32.totalorder %s5787_s3, %s5195_s29  ;;  %s51_s26 = int_to_ptr.vmem [resolvable:$true] %s50_s26 }
  0x36   :  { %p5199_p11 = scmp.lt.u32.totalorder %s5195_s29, %s5787_s3 }
  0x38   :  { %p5201_p12 = pnand %p5199_p11, %p5196_p10 }
  0x3a   :  { %5204 = shalt.err (!%p5201_p12)
}
  0x3b   :  { %s5205_s8 = scalar_lea.vmem %s51_s26, 163840  ;;  %p5210_p0 = scmp.lt.s32.totalorder %s51_s26, %s51_s26 }
  0x3c   :  { %p5206_p13 = scmp.ne.s32.totalorder %s51_s26, %s5205_s8  ;;  %p5211_p1 = scmp.lt.s32.totalorder %s5205_s8, %s5205_s8 }
  0x3e   :  { %p5212_p2 = por %p5211_p1, %p5210_p0 }
  0x40   :  { %p5213_p3 = pnand %p5212_p2, %p5206_p13 }
  0x42   :  { %5216 = shalt.err (!%p5213_p3)
}
  0x43   :  { %s5253_s2 = smov 5120   ;;  %s5254_s9 = smov 320  }
  0x44   :  { %56 = dma.hbm_to_vmem [thread:$0]  %s5787_s3, 163840, %s51_s26, [#allocation9], %s5253_s2, %s5253_s2, %s5254_s9  }
  0x45   :  { %5239 = dma.done.wait [#allocation3], 32  }
  0x46   :  { %5240 = vsyncadd [#allocation3], 4294967264 }
  0x47   :  { %5241 = dma.done.wait [#allocation6], 12416  }
  0x48   :  { %5242 = vsyncadd [#allocation6], 4294954880 }
  0x49   :  { %5243 = dma.done.wait [#allocation9], 163840  }
  0x4a   :  { %5244 = vsyncadd [#allocation9], 4294803456  ;;  %v5255_v0 = vmov 0.0   ;;  %v70_v1 = vld [vmem:[#allocation5] sm:$0x77]  ;;  %vm77_vm0 = vcmask 1042432  }
  0x4b   :  { %146 = vmatprep.mubr.f32.mxu1 %v5255_v0  ;;  %v157_v2 = vld [vmem:[#allocation7 + $0x8] sm:$0xff]  ;;  %v72_v3 = vcombine.high %v70_v1, %v70_v1  ;;  %v159_v4 = vld [vmem:[#allocation7 + $0x18] sm:$0xff]  ;;  %v156_v5 = vld [vmem:[#allocation7] sm:$0xff]  ;;  %vm73_vm1 = vcmask 23552   ;;  %s5257_s3 = smov 120   ;;  %vm3339_vm3 = vcmask 982016  }
  0x4c   :  { %v158_v6 = vld [vmem:[#allocation7 + $0x10] sm:$0xff]  ;;  %v3736_v8 = vpack.c.bf16 %v159_v4, %v157_v2  ;;  %v161_v10 = vld [vmem:[#allocation7 + $0x28] sm:$0xff]  ;;  %v163_v11 = vld [vmem:[#allocation7 + $0x38] sm:$0xff]  ;;  %s5259_s11 = smov 124   ;;  %vm3257_vm4 = vcmask 1014784   ;;  %vm3667_vm5 = vcmask 1041408  }
  0x4d   :  { %v69_v7 = vld [vmem:[#allocation2] sm:$0x3]  ;;  %v3738_v9 = vpack.c.bf16 %v158_v6, %v156_v5  ;;  %3692 = vmatprep.subr.msk.mxu1 %vm77_vm0, %v72_v3  ;;  %v3740_v12 = vpack.c.bf16 %v163_v11, %v161_v10  ;;  %v160_v13 = vld [vmem:[#allocation7 + $0x20] sm:$0xff]  ;;  %v165_v15 = vld [vmem:[#allocation7 + $0x48] sm:$0xff]  ;;  %vm3668_vm6 = vcmask 1043458   ;;  %vm3670_vm8 = vcmask 1045508  }
  0x4e   :  { %v162_v14 = vld [vmem:[#allocation7 + $0x30] sm:$0xff]  ;;  %3693 = vmatpush1.msk.msra.mxu1 %vm77_vm0, %v70_v1  ;;  %v167_v16 = vld [vmem:[#allocation7 + $0x58] sm:$0xff]  ;;  %v164_v19 = vld [vmem:[#allocation7 + $0x40] sm:$0xff]  ;;  %vm3672_vm10 = vcmask 949254   ;;  %s5260_s12 = smov [#allocation10]  }
  0x4f   :  { %3694 = vmatmul.mubr.msk.f32.vlgmr.msra.gmra.mrb[0].mxu1 %vm73_vm1, %v69_v7  ;;  %3737 = vmatprep.subr.bf16.mxu1 %v3736_v8  ;;  %v3742_v17 = vpack.c.bf16 %v162_v14, %v160_v13  ;;  %v3744_v18 = vpack.c.bf16 %v167_v16, %v165_v15  ;;  %v166_v20 = vld [vmem:[#allocation7 + $0x50] sm:$0xff]  ;;  %v169_v21 = vld [vmem:[#allocation7 + $0x68] sm:$0xff]  ;;  %v171_v22 = vld [vmem:[#allocation7 + $0x78] sm:$0xff]  ;;  %s3681_s13 = sshll.u32 %s5260_s12, 4  ;;  %s3682_s13 = int_to_ptr.vmem [resolvable:$true] %s3681_s13 }
  0x50   :  { %3739 = vmatpush1.bf16.msra.mxu1 %v3738_v9  ;;  %v3746_v23 = vpack.c.bf16 %v166_v20, %v164_v19  ;;  %v3748_v24 = vpack.c.bf16 %v171_v22, %v169_v21  ;;  %v168_v25 = vld [vmem:[#allocation7 + $0x60] sm:$0xff]  ;;  %v170_v26 = vld [vmem:[#allocation7 + $0x70] sm:$0xff]  ;;  %v173_v27 = vld [vmem:[#allocation7 + $0x88] sm:$0xff]  ;;  %s5217_s14 = scalar_lea.vmem %s3682_s13, 1920  ;;  %p5222_p5 = scmp.lt.s32.totalorder %s3682_s13, %s3682_s13 }
  0x51   :  { %3741 = vmatprep.subr.bf16.mxu1 %v3740_v12  ;;  %v175_v28 = vld [vmem:[#allocation7 + $0x98] sm:$0xff]  ;;  %v3750_v29 = vpack.c.bf16 %v170_v26, %v168_v25  ;;  %v172_v31 = vld [vmem:[#allocation7 + $0x80] sm:$0xff]  ;;  %v174_v32 = vld [vmem:[#allocation7 + $0x90] sm:$0xff]  ;;  %p5218_p4 = scmp.ne.s32.totalorder %s3682_s13, %s5217_s14  ;;  %p5223_p6 = scmp.lt.s32.totalorder %s5217_s14, %s5217_s14 }
  0x52   :  { %v3752_v30 = vpack.c.bf16 %v175_v28, %v173_v27  ;;  %v177_v33 = vld [vmem:[#allocation7 + $0xa8] sm:$0xff]  ;;  %v179_v34 = vld [vmem:[#allocation7 + $0xb8] sm:$0xff]  ;;  %v3754_v35 = vpack.c.bf16 %v174_v32, %v172_v31  ;;  %v176_v37 = vld [vmem:[#allocation7 + $0xa0] sm:$0xff] }
  0x53   :  { %v3756_v36 = vpack.c.bf16 %v179_v34, %v177_v33  ;;  %v178_v38 = vld [vmem:[#allocation7 + $0xb0] sm:$0xff]  ;;  %v181_v39 = vld [vmem:[#allocation7 + $0xc8] sm:$0xff]  ;;  %v183_v40 = vld [vmem:[#allocation7 + $0xd8] sm:$0xff]  ;;  %p5224_p7 = por %p5223_p6, %p5222_p5 }
  0x54   :  { %3743 = vmatpush1.bf16.msra.mxu1 %v3742_v17  ;;  %v3758_v41 = vpack.c.bf16 %v178_v38, %v176_v37  ;;  %v3760_v42 = vpack.c.bf16 %v183_v40, %v181_v39  ;;  %v180_v43 = vld [vmem:[#allocation7 + $0xc0] sm:$0xff]  ;;  %v182_v44 = vld [vmem:[#allocation7 + $0xd0] sm:$0xff]  ;;  %v185_v45 = vld [vmem:[#allocation7 + $0xe8] sm:$0xff] }
  0x55   :  { %3745 = vmatprep.subr.bf16.mxu1 %v3744_v18  ;;  %v187_v46 = vld [vmem:[#allocation7 + $0xf8] sm:$0xff]  ;;  %v3762_v47 = vpack.c.bf16 %v182_v44, %v180_v43  ;;  %v184_v49 = vld [vmem:[#allocation7 + $0xe0] sm:$0xff]  ;;  %v186_v50 = vld [vmem:[#allocation7 + $0xf0] sm:$0xff]  ;;  %p5225_p8 = pnand %p5224_p7, %p5218_p4 }
  0x56   :  { %v3764_v48 = vpack.c.bf16 %v187_v46, %v185_v45  ;;  %v189_v51 = vld [vmem:[#allocation7 + $0x108] sm:$0xff]  ;;  %v191_v52 = vld [vmem:[#allocation7 + $0x118] sm:$0xff]  ;;  %v3766_v53 = vpack.c.bf16 %v186_v50, %v184_v49  ;;  %v188_v55 = vld [vmem:[#allocation7 + $0x100] sm:$0xff] }
  0x57   :  { %v3768_v54 = vpack.c.bf16 %v191_v52, %v189_v51  ;;  %v190_v56 = vld [vmem:[#allocation7 + $0x110] sm:$0xff]  ;;  %v193_v57 = vld [vmem:[#allocation7 + $0x128] sm:$0xff]  ;;  %v195_v58 = vld [vmem:[#allocation7 + $0x138] sm:$0xff] }
  0x58   :  { %3747 = vmatpush1.bf16.msra.mxu1 %v3746_v23  ;;  %v3770_v59 = vpack.c.bf16 %v190_v56, %v188_v55  ;;  %v3772_v60 = vpack.c.bf16 %v195_v58, %v193_v57  ;;  %v192_v61 = vld [vmem:[#allocation7 + $0x120] sm:$0xff]  ;;  %v194_v62 = vld [vmem:[#allocation7 + $0x130] sm:$0xff]  ;;  %v197_v63 = vld [vmem:[#allocation7 + $0x148] sm:$0xff] }
  0x59   :  { %3749 = vmatprep.subr.bf16.mxu1 %v3748_v24  ;;  %v199_v1 = vld [vmem:[#allocation7 + $0x158] sm:$0xff]  ;;  %v3774_v2 = vpack.c.bf16 %v194_v62, %v192_v61  ;;  %v196_v4 = vld [vmem:[#allocation7 + $0x140] sm:$0xff]  ;;  %v198_v5 = vld [vmem:[#allocation7 + $0x150] sm:$0xff] }
  0x5a   :  { %v3776_v3 = vpack.c.bf16 %v199_v1, %v197_v63  ;;  %v201_v6 = vld [vmem:[#allocation7 + $0x168] sm:$0xff]  ;;  %v203_v7 = vld [vmem:[#allocation7 + $0x178] sm:$0xff]  ;;  %v3778_v8 = vpack.c.bf16 %v198_v5, %v196_v4  ;;  %v200_v10 = vld [vmem:[#allocation7 + $0x160] sm:$0xff] }
  0x5b   :  { %v3780_v9 = vpack.c.bf16 %v203_v7, %v201_v6  ;;  %v202_v11 = vld [vmem:[#allocation7 + $0x170] sm:$0xff]  ;;  %v205_v12 = vld [vmem:[#allocation7 + $0x188] sm:$0xff]  ;;  %v207_v13 = vld [vmem:[#allocation7 + $0x198] sm:$0xff] }
  0x5c   :  { %3751 = vmatpush1.bf16.msra.mxu1 %v3750_v29  ;;  %v3782_v14 = vpack.c.bf16 %v202_v11, %v200_v10  ;;  %v3784_v15 = vpack.c.bf16 %v207_v13, %v205_v12  ;;  %v204_v16 = vld [vmem:[#allocation7 + $0x180] sm:$0xff]  ;;  %v206_v17 = vld [vmem:[#allocation7 + $0x190] sm:$0xff]  ;;  %v209_v18 = vld [vmem:[#allocation7 + $0x1a8] sm:$0xff] }
  0x5d   :  { %3753 = vmatprep.subr.bf16.mxu1 %v3752_v30  ;;  %v211_v19 = vld [vmem:[#allocation7 + $0x1b8] sm:$0xff]  ;;  %v3786_v20 = vpack.c.bf16 %v206_v17, %v204_v16  ;;  %v208_v22 = vld [vmem:[#allocation7 + $0x1a0] sm:$0xff]  ;;  %v210_v23 = vld [vmem:[#allocation7 + $0x1b0] sm:$0xff] }
  0x5e   :  { %v3788_v21 = vpack.c.bf16 %v211_v19, %v209_v18  ;;  %v213_v24 = vld [vmem:[#allocation7 + $0x1c8] sm:$0xff]  ;;  %v215_v25 = vld [vmem:[#allocation7 + $0x1d8] sm:$0xff]  ;;  %v3790_v26 = vpack.c.bf16 %v210_v23, %v208_v22  ;;  %v212_v28 = vld [vmem:[#allocation7 + $0x1c0] sm:$0xff] }
  0x5f   :  { %v3792_v27 = vpack.c.bf16 %v215_v25, %v213_v24  ;;  %v214_v29 = vld [vmem:[#allocation7 + $0x1d0] sm:$0xff]  ;;  %v217_v31 = vld [vmem:[#allocation7 + $0x1e8] sm:$0xff]  ;;  %v219_v32 = vld [vmem:[#allocation7 + $0x1f8] sm:$0xff] }
  0x60   :  { %3755 = vmatpush1.bf16.msra.mxu1 %v3754_v35  ;;  %v3794_v30 = vpack.c.bf16 %v214_v29, %v212_v28  ;;  %v3796_v33 = vpack.c.bf16 %v219_v32, %v217_v31  ;;  %v216_v34 = vld [vmem:[#allocation7 + $0x1e0] sm:$0xff]  ;;  %v218_v35 = vld [vmem:[#allocation7 + $0x1f0] sm:$0xff]  ;;  %v221_v37 = vld [vmem:[#allocation7 + $0x208] sm:$0xff] }
  0x61   :  { %3757 = vmatprep.subr.bf16.mxu1 %v3756_v36  ;;  %v3798_v36 = vpack.c.bf16 %v218_v35, %v216_v34  ;;  %v223_v38 = vld [vmem:[#allocation7 + $0x218] sm:$0xff]  ;;  %v398_v40 = vld [vmem:[#allocation8 + $0x8] sm:$0xff]  ;;  %v397_v43 = vld [vmem:[#allocation8] sm:$0xff] }
  0x62   :  { %v3800_v39 = vpack.c.bf16 %v223_v38, %v221_v37  ;;  %v437_v44 = vld [vmem:[#allocation8 + $0x140] sm:$0xff]  ;;  %v478_v46 = vld [vmem:[#allocation8 + $0x288] sm:$0xff]  ;;  %vm3669_vm7 = vmor %vm3668_vm6, %vm3667_vm5 }
  0x63   :  { %v3834_v45 = vpack.c.bf16 %v437_v44, %v397_v43  ;;  %v477_v49 = vld [vmem:[#allocation8 + $0x280] sm:$0xff]  ;;  %v558_v52 = vld [vmem:[#allocation8 + $0x508] sm:$0xff]  ;;  %vm3671_vm9 = vmor %vm3670_vm8, %vm3669_vm7 }
  0x64   :  { %3759 = vmatpush1.bf16.msra.mxu1 %v3758_v41  ;;  %v438_v41 = vld [vmem:[#allocation8 + $0x148] sm:$0xff]  ;;  %v517_v50 = vld [vmem:[#allocation8 + $0x3c0] sm:$0xff]  ;;  %vm3673_vm11 = vmor %vm3672_vm10, %vm3671_vm9 }
  0x65   :  { %3761 = vmatprep.subr.bf16.mxu1 %v3760_v42  ;;  %v3832_v42 = vpack.c.bf16 %v438_v41, %v398_v40  ;;  %v3838_v51 = vpack.c.bf16 %v517_v50, %v477_v49  ;;  %v557_v55 = vld [vmem:[#allocation8 + $0x500] sm:$0xff]  ;;  %v638_v58 = vld [vmem:[#allocation8 + $0x788] sm:$0xff] }
  0x66   :  { %v597_v56 = vld [vmem:[#allocation8 + $0x640] sm:$0xff]  ;;  %v718_v1 = vld [vmem:[#allocation8 + $0xa08] sm:$0xff] }
  0x67   :  { %3833 = vmatprep.subr.bf16.mxu0 %v3832_v42  ;;  %v3842_v57 = vpack.c.bf16 %v597_v56, %v557_v55  ;;  %v637_v61 = vld [vmem:[#allocation8 + $0x780] sm:$0xff]  ;;  %v798_v7 = vld [vmem:[#allocation8 + $0xc88] sm:$0xff] }
  0x68   :  { %3763 = vmatpush1.bf16.msra.mxu1 %v3762_v47  ;;  %v518_v47 = vld [vmem:[#allocation8 + $0x3c8] sm:$0xff]  ;;  %3835 = vmatpush1.bf16.msra.mxu0 %v3834_v45  ;;  %v677_v62 = vld [vmem:[#allocation8 + $0x8c0] sm:$0xff] }
  0x69   :  { %3765 = vmatprep.subr.bf16.mxu1 %v3764_v48  ;;  %v3836_v48 = vpack.c.bf16 %v518_v47, %v478_v46  ;;  %v3846_v63 = vpack.c.bf16 %v677_v62, %v637_v61  ;;  %v717_v4 = vld [vmem:[#allocation8 + $0xa00] sm:$0xff]  ;;  %v878_v13 = vld [vmem:[#allocation8 + $0xf08] sm:$0xff] }
  0x6a   :  { %v757_v5 = vld [vmem:[#allocation8 + $0xb40] sm:$0xff]  ;;  %v958_v19 = vld [vmem:[#allocation8 + $0x1188] sm:$0xff] }
  0x6b   :  { %3837 = vmatprep.subr.bf16.mxu0 %v3836_v48  ;;  %v3850_v6 = vpack.c.bf16 %v757_v5, %v717_v4  ;;  %v797_v10 = vld [vmem:[#allocation8 + $0xc80] sm:$0xff]  ;;  %v1038_v25 = vld [vmem:[#allocation8 + $0x1408] sm:$0xff] }
  0x6c   :  { %3767 = vmatpush1.bf16.msra.mxu1 %v3766_v53  ;;  %v598_v53 = vld [vmem:[#allocation8 + $0x648] sm:$0xff]  ;;  %3839 = vmatpush1.bf16.msra.mxu0 %v3838_v51  ;;  %v837_v11 = vld [vmem:[#allocation8 + $0xdc0] sm:$0xff] }
  0x6d   :  { %3769 = vmatprep.subr.bf16.mxu1 %v3768_v54  ;;  %v3840_v54 = vpack.c.bf16 %v598_v53, %v558_v52  ;;  %v3854_v12 = vpack.c.bf16 %v837_v11, %v797_v10  ;;  %v877_v16 = vld [vmem:[#allocation8 + $0xf00] sm:$0xff]  ;;  %v1118_v31 = vld [vmem:[#allocation8 + $0x1688] sm:$0xff]  ;;  %v227_v11 = vld [vmem:[#allocation7 + $0x238] sm:$0xff] }
  0x6e   :  { %v917_v17 = vld [vmem:[#allocation8 + $0x1040] sm:$0xff]  ;;  %v1158_v32 = vld [vmem:[#allocation8 + $0x17c8] sm:$0xff] }
  0x6f   :  { %3841 = vmatprep.subr.bf16.mxu0 %v3840_v54  ;;  %v3858_v18 = vpack.c.bf16 %v917_v17, %v877_v16  ;;  %v957_v22 = vld [vmem:[#allocation8 + $0x1180] sm:$0xff]  ;;  %v1198_v37 = vld [vmem:[#allocation8 + $0x1908] sm:$0xff] }
  0x70   :  { %3771 = vmatpush1.bf16.msra.mxu1 %v3770_v59  ;;  %v678_v59 = vld [vmem:[#allocation8 + $0x8c8] sm:$0xff]  ;;  %3843 = vmatpush1.bf16.msra.mxu0 %v3842_v57  ;;  %v997_v23 = vld [vmem:[#allocation8 + $0x12c0] sm:$0xff] }
  0x71   :  { %3773 = vmatprep.subr.bf16.mxu1 %v3772_v60  ;;  %v3844_v60 = vpack.c.bf16 %v678_v59, %v638_v58  ;;  %v3862_v24 = vpack.c.bf16 %v997_v23, %v957_v22  ;;  %v1037_v28 = vld [vmem:[#allocation8 + $0x1400] sm:$0xff]  ;;  %v1238_v38 = vld [vmem:[#allocation8 + $0x1a48] sm:$0xff] }
  0x72   :  { %v1077_v29 = vld [vmem:[#allocation8 + $0x1540] sm:$0xff]  ;;  %v1278_v43 = vld [vmem:[#allocation8 + $0x1b88] sm:$0xff] }
  0x73   :  { %3845 = vmatprep.subr.bf16.mxu0 %v3844_v60  ;;  %v1117_v34 = vld [vmem:[#allocation8 + $0x1680] sm:$0xff]  ;;  %v1318_v44 = vld [vmem:[#allocation8 + $0x1cc8] sm:$0xff] }
  0x74   :  { %3775 = vmatpush1.bf16.msra.mxu1 %v3774_v2  ;;  %v758_v2 = vld [vmem:[#allocation8 + $0xb48] sm:$0xff]  ;;  %3847 = vmatpush1.bf16.msra.mxu0 %v3846_v63  ;;  %v1157_v35 = vld [vmem:[#allocation8 + $0x17c0] sm:$0xff]  ;;  %v3876_v45 = vpack.c.bf16 %v1318_v44, %v1278_v43  ;;  %v247_v44 = vld [vmem:[#allocation7 + $0x2d8] sm:$0xff] }
  0x75   :  { %3777 = vmatprep.subr.bf16.mxu1 %v3776_v3  ;;  %v3848_v3 = vpack.c.bf16 %v758_v2, %v718_v1  ;;  %v1197_v40 = vld [vmem:[#allocation8 + $0x1900] sm:$0xff]  ;;  %v1358_v49 = vld [vmem:[#allocation8 + $0x1e08] sm:$0xff] }
  0x76   :  { %v1237_v41 = vld [vmem:[#allocation8 + $0x1a40] sm:$0xff]  ;;  %v1398_v50 = vld [vmem:[#allocation8 + $0x1f48] sm:$0xff] }
  0x77   :  { %3849 = vmatprep.subr.bf16.mxu0 %v3848_v3  ;;  %v3874_v42 = vpack.c.bf16 %v1237_v41, %v1197_v40  ;;  %v1277_v46 = vld [vmem:[#allocation8 + $0x1b80] sm:$0xff]  ;;  %v3880_v51 = vpack.c.bf16 %v1398_v50, %v1358_v49  ;;  %v1438_v55 = vld [vmem:[#allocation8 + $0x2088] sm:$0xff]  ;;  %v251_v50 = vld [vmem:[#allocation7 + $0x2f8] sm:$0xff] }
  0x78   :  { %3779 = vmatpush1.bf16.msra.mxu1 %v3778_v8  ;;  %v838_v8 = vld [vmem:[#allocation8 + $0xdc8] sm:$0xff]  ;;  %3851 = vmatpush1.bf16.msra.mxu0 %v3850_v6  ;;  %v1317_v47 = vld [vmem:[#allocation8 + $0x1cc0] sm:$0xff] }
  0x79   :  { %3781 = vmatprep.subr.bf16.mxu1 %v3780_v9  ;;  %v3852_v9 = vpack.c.bf16 %v838_v8, %v798_v7  ;;  %v3878_v48 = vpack.c.bf16 %v1317_v47, %v1277_v46  ;;  %v1357_v52 = vld [vmem:[#allocation8 + $0x1e00] sm:$0xff]  ;;  %v1478_v56 = vld [vmem:[#allocation8 + $0x21c8] sm:$0xff]  ;;  %v222_v8 = vld [vmem:[#allocation7 + $0x210] sm:$0xff] }
  0x7a   :  { %v1397_v53 = vld [vmem:[#allocation8 + $0x1f40] sm:$0xff]  ;;  %v3884_v57 = vpack.c.bf16 %v1478_v56, %v1438_v55  ;;  %v1518_v61 = vld [vmem:[#allocation8 + $0x2308] sm:$0xff] }
  0x7b   :  { %3853 = vmatprep.subr.bf16.mxu0 %v3852_v9  ;;  %v3882_v54 = vpack.c.bf16 %v1397_v53, %v1357_v52  ;;  %v1437_v58 = vld [vmem:[#allocation8 + $0x2080] sm:$0xff]  ;;  %v1558_v62 = vld [vmem:[#allocation8 + $0x2448] sm:$0xff] }
  0x7c   :  { %3783 = vmatpush1.bf16.msra.mxu1 %v3782_v14  ;;  %v918_v14 = vld [vmem:[#allocation8 + $0x1048] sm:$0xff]  ;;  %3855 = vmatpush1.bf16.msra.mxu0 %v3854_v12  ;;  %v1477_v59 = vld [vmem:[#allocation8 + $0x21c0] sm:$0xff]  ;;  %v3888_v63 = vpack.c.bf16 %v1558_v62, %v1518_v61 }
  0x7d   :  { %3785 = vmatprep.subr.bf16.mxu1 %v3784_v15  ;;  %v3856_v15 = vpack.c.bf16 %v918_v14, %v878_v13  ;;  %v3886_v60 = vpack.c.bf16 %v1477_v59, %v1437_v58  ;;  %v1517_v1 = vld [vmem:[#allocation8 + $0x2300] sm:$0xff]  ;;  %v1598_v4 = vld [vmem:[#allocation8 + $0x2588] sm:$0xff] }
  0x7e   :  { %v1557_v2 = vld [vmem:[#allocation8 + $0x2440] sm:$0xff]  ;;  %v1638_v5 = vld [vmem:[#allocation8 + $0x26c8] sm:$0xff] }
  0x7f   :  { %3857 = vmatprep.subr.bf16.mxu0 %v3856_v15  ;;  %v3890_v3 = vpack.c.bf16 %v1557_v2, %v1517_v1  ;;  %v3892_v6 = vpack.c.bf16 %v1638_v5, %v1598_v4  ;;  %v220_v7 = vld [vmem:[#allocation7 + $0x200] sm:$0xff]  ;;  %v225_v10 = vld [vmem:[#allocation7 + $0x228] sm:$0xff] }
  0x80   :  { %3787 = vmatpush1.bf16.msra.mxu1 %v3786_v20  ;;  %v998_v20 = vld [vmem:[#allocation8 + $0x12c8] sm:$0xff]  ;;  %3859 = vmatpush1.bf16.msra.mxu0 %v3858_v18  ;;  %v3802_v16 = vpack.c.bf16 %v222_v8, %v220_v7  ;;  %v3804_v17 = vpack.c.bf16 %v227_v11, %v225_v10  ;;  %v224_v18 = vld [vmem:[#allocation7 + $0x220] sm:$0xff] }
  0x81   :  { %3789 = vmatprep.subr.bf16.mxu1 %v3788_v21  ;;  %v3860_v21 = vpack.c.bf16 %v998_v20, %v958_v19  ;;  %v226_v19 = vld [vmem:[#allocation7 + $0x230] sm:$0xff]  ;;  %v229_v20 = vld [vmem:[#allocation7 + $0x248] sm:$0xff]  ;;  %v240_v41 = vld [vmem:[#allocation7 + $0x2a0] sm:$0xff] }
  0x82   :  { %v3806_v22 = vpack.c.bf16 %v226_v19, %v224_v18  ;;  %v245_v43 = vld [vmem:[#allocation7 + $0x2c8] sm:$0xff]  ;;  %v244_v47 = vld [vmem:[#allocation7 + $0x2c0] sm:$0xff] }
  0x83   :  { %3861 = vmatprep.subr.bf16.mxu0 %v3860_v21  ;;  %v231_v21 = vld [vmem:[#allocation7 + $0x258] sm:$0xff]  ;;  %v3824_v46 = vpack.c.bf16 %v247_v44, %v245_v43  ;;  %v249_v49 = vld [vmem:[#allocation7 + $0x2e8] sm:$0xff]  ;;  %v248_v53 = vld [vmem:[#allocation7 + $0x2e0] sm:$0xff] }
  0x84   :  { %3791 = vmatpush1.bf16.msra.mxu1 %v3790_v26  ;;  %v1078_v26 = vld [vmem:[#allocation8 + $0x1548] sm:$0xff]  ;;  %3863 = vmatpush1.bf16.msra.mxu0 %v3862_v24  ;;  %v3808_v23 = vpack.c.bf16 %v231_v21, %v229_v20  ;;  %v228_v24 = vld [vmem:[#allocation7 + $0x240] sm:$0xff]  ;;  %v3828_v52 = vpack.c.bf16 %v251_v50, %v249_v49 }
  0x85   :  { %3793 = vmatprep.subr.bf16.mxu1 %v3792_v27  ;;  %v3864_v27 = vpack.c.bf16 %v1078_v26, %v1038_v25  ;;  %v230_v25 = vld [vmem:[#allocation7 + $0x250] sm:$0xff]  ;;  %v233_v26 = vld [vmem:[#allocation7 + $0x268] sm:$0xff]  ;;  %v401_v59 = vld [vmem:[#allocation8 + $0x20] sm:$0xff] }
  0x86   :  { %v402_v55 = vld [vmem:[#allocation8 + $0x28] sm:$0xff]  ;;  %v481_v2 = vld [vmem:[#allocation8 + $0x2a0] sm:$0xff] }
  0x87   :  { %3865 = vmatprep.subr.bf16.mxu0 %v3864_v27  ;;  %v235_v27 = vld [vmem:[#allocation7 + $0x278] sm:$0xff]  ;;  %v442_v56 = vld [vmem:[#allocation8 + $0x168] sm:$0xff]  ;;  %v561_v8 = vld [vmem:[#allocation8 + $0x520] sm:$0xff] }
  0x88   :  { %3795 = vmatpush1.bf16.msra.mxu1 %v3794_v30  ;;  %v3866_v30 = vpack.c.bf16 %v1077_v29, %v1037_v28  ;;  %v3810_v28 = vpack.c.bf16 %v230_v25, %v228_v24  ;;  %v3812_v29 = vpack.c.bf16 %v235_v27, %v233_v26  ;;  %v3960_v58 = vpack.c.bf16 %v442_v56, %v402_v55  ;;  %v482_v61 = vld [vmem:[#allocation8 + $0x2a8] sm:$0xff]  ;;  %v721_v20 = vld [vmem:[#allocation8 + $0xa20] sm:$0xff] }
  0x89   :  { %3797 = vmatprep.subr.bf16.mxu1 %v3796_v33  ;;  %v3868_v33 = vpack.c.bf16 %v1158_v32, %v1118_v31  ;;  %v234_v31 = vld [vmem:[#allocation7 + $0x270] sm:$0xff]  ;;  %v237_v32 = vld [vmem:[#allocation7 + $0x288] sm:$0xff]  ;;  %v761_v21 = vld [vmem:[#allocation8 + $0xb60] sm:$0xff] }
  0x8a   :  { %3867 = vmatpush1.bf16.msra.mxu0 %v3866_v30  ;;  %v232_v30 = vld [vmem:[#allocation7 + $0x260] sm:$0xff]  ;;  %v522_v62 = vld [vmem:[#allocation8 + $0x3e8] sm:$0xff]  ;;  %v3978_v24 = vpack.c.bf16 %v761_v21, %v721_v20 }
  0x8b   :  { %3869 = vmatprep.subr.bf16.mxu0 %v3868_v33  ;;  %v239_v33 = vld [vmem:[#allocation7 + $0x298] sm:$0xff]  ;;  %v3964_v1 = vpack.c.bf16 %v522_v62, %v482_v61  ;;  %v562_v4 = vld [vmem:[#allocation8 + $0x528] sm:$0xff]  ;;  %v801_v26 = vld [vmem:[#allocation8 + $0xca0] sm:$0xff] }
  0x8c   :  { %3799 = vmatpush1.bf16.msra.mxu1 %v3798_v36  ;;  %v3870_v36 = vpack.c.bf16 %v1157_v35, %v1117_v34  ;;  %v3814_v34 = vpack.c.bf16 %v234_v31, %v232_v30  ;;  %v3816_v35 = vpack.c.bf16 %v239_v33, %v237_v32  ;;  %v602_v5 = vld [vmem:[#allocation8 + $0x668] sm:$0xff]  ;;  %v841_v27 = vld [vmem:[#allocation8 + $0xde0] sm:$0xff] }
  0x8d   :  { %3801 = vmatprep.subr.bf16.mxu1 %v3800_v39  ;;  %v3872_v39 = vpack.c.bf16 %v1238_v38, %v1198_v37  ;;  %v241_v37 = vld [vmem:[#allocation7 + $0x2a8] sm:$0xff]  ;;  %v243_v38 = vld [vmem:[#allocation7 + $0x2b8] sm:$0xff]  ;;  %v3968_v7 = vpack.c.bf16 %v602_v5, %v562_v4  ;;  %v3982_v30 = vpack.c.bf16 %v841_v27, %v801_v26  ;;  %v881_v32 = vld [vmem:[#allocation8 + $0xf20] sm:$0xff] }
  0x8e   :  { %3871 = vmatpush1.bf16.msra.mxu0 %v3870_v36  ;;  %v236_v36 = vld [vmem:[#allocation7 + $0x280] sm:$0xff]  ;;  %v3820_v40 = vpack.c.bf16 %v243_v38, %v241_v37  ;;  %v642_v10 = vld [vmem:[#allocation8 + $0x7a8] sm:$0xff] }
  0x8f   :  { %3873 = vmatprep.subr.bf16.mxu0 %v3872_v39  ;;  %v682_v11 = vld [vmem:[#allocation8 + $0x8e8] sm:$0xff]  ;;  %v921_v33 = vld [vmem:[#allocation8 + $0x1060] sm:$0xff] }
  0x90   :  { %v762_v18 = vld [vmem:[#allocation8 + $0xb68] sm:$0xff]  ;;  %v961_v37 = vld [vmem:[#allocation8 + $0x11a0] sm:$0xff] }
  0x91   :  { %v1001_v38 = vld [vmem:[#allocation8 + $0x12e0] sm:$0xff] }
  0x92   :  { %3875 = vmatpush1.bf16.msra.mxu0 %v3874_v42  ;;  %v242_v42 = vld [vmem:[#allocation7 + $0x2b0] sm:$0xff]  ;;  %v1041_v43 = vld [vmem:[#allocation8 + $0x1420] sm:$0xff] }
  0x93   :  { %3877 = vmatprep.subr.bf16.mxu0 %v3876_v45  ;;  %v3822_v45 = vpack.c.bf16 %v242_v42, %v240_v41  ;;  %v3990_v41 = vpack.c.bf16 %v1001_v38, %v961_v37  ;;  %v1081_v44 = vld [vmem:[#allocation8 + $0x1560] sm:$0xff]  ;;  %v480_v37 = vld [vmem:[#allocation8 + $0x298] sm:$0xff] }
  0x94   :  { %v1121_v49 = vld [vmem:[#allocation8 + $0x16a0] sm:$0xff] }
  0x95   :  { %v1161_v50 = vld [vmem:[#allocation8 + $0x17e0] sm:$0xff] }
  0x96   :  { %3879 = vmatpush1.bf16.msra.mxu0 %v3878_v48  ;;  %v246_v48 = vld [vmem:[#allocation7 + $0x2d0] sm:$0xff]  ;;  %v1201_v55 = vld [vmem:[#allocation8 + $0x1920] sm:$0xff] }
  0x97   :  { %3881 = vmatprep.subr.bf16.mxu0 %v3880_v51  ;;  %v3826_v51 = vpack.c.bf16 %v246_v48, %v244_v47  ;;  %v3994_v47 = vpack.c.bf16 %v1081_v44, %v1041_v43  ;;  %v1241_v56 = vld [vmem:[#allocation8 + $0x1a60] sm:$0xff] }
  0x98   :  { %v1281_v61 = vld [vmem:[#allocation8 + $0x1ba0] sm:$0xff] }
  0x99   :  { %v1321_v62 = vld [vmem:[#allocation8 + $0x1ce0] sm:$0xff] }
  0x9a   :  { %3883 = vmatpush1.bf16.msra.mxu0 %v3882_v54  ;;  %v250_v54 = vld [vmem:[#allocation7 + $0x2f0] sm:$0xff]  ;;  %v1361_v4 = vld [vmem:[#allocation8 + $0x1e20] sm:$0xff] }
  0x9b   :  { %3885 = vmatprep.subr.bf16.mxu0 %v3884_v57  ;;  %v3830_v57 = vpack.c.bf16 %v250_v54, %v248_v53  ;;  %v3998_v53 = vpack.c.bf16 %v1161_v50, %v1121_v49  ;;  %v1401_v5 = vld [vmem:[#allocation8 + $0x1f60] sm:$0xff]  ;;  %v560_v50 = vld [vmem:[#allocation8 + $0x518] sm:$0xff] }
  0x9c   :  { %v1641_v26 = vld [vmem:[#allocation8 + $0x26e0] sm:$0xff] }
  0x9d   :  { %v525_v49 = vld [vmem:[#allocation8 + $0x400] sm:$0xff] }
  0x9e   :  { %3887 = vmatpush1.bf16.msra.mxu0 %v3886_v60  ;;  %v441_v60 = vld [vmem:[#allocation8 + $0x160] sm:$0xff] }
  0x9f   :  { %3889 = vmatprep.subr.bf16.mxu0 %v3888_v63  ;;  %v3962_v63 = vpack.c.bf16 %v441_v60, %v401_v59  ;;  %v4002_v59 = vpack.c.bf16 %v1241_v56, %v1201_v55  ;;  %v566_v55 = vld [vmem:[#allocation8 + $0x548] sm:$0xff] }
  0xa0   :  { %v606_v56 = vld [vmem:[#allocation8 + $0x688] sm:$0xff] }
  0xa2   :  { %3891 = vmatpush1.bf16.msra.mxu0 %v3890_v3  ;;  %v521_v3 = vld [vmem:[#allocation8 + $0x3e0] sm:$0xff] }
  0xa3   :  { %3893 = vmatprep.subr.bf16.mxu0 %v3892_v6  ;;  %v3966_v6 = vpack.c.bf16 %v521_v3, %v481_v2  ;;  %v4006_v2 = vpack.c.bf16 %v1321_v62, %v1281_v61  ;;  %v4096_v62 = vpack.c.bf16 %v606_v56, %v566_v55 }
 0x122   :  { %v148_v9 = vpop.f32.mrb[0].mxu1 }
 0x123   :  { %v150_v12 = vpop.f32.mrb[1].mxu1 }
 0x124   :  { %v153_v13 = vadd.f32 %v150_v12, %v148_v9  ;;  %v154_v14 = vsub.f32 %v148_v9, %v150_v12  ;;  %v5337_v15 = vmul.f32 %v150_v12, %v148_v9  ;;  %v601_v9 = vld [vmem:[#allocation8 + $0x660] sm:$0xff] }
 0x125   :  { %v3970_v12 = vpack.c.bf16 %v601_v9, %v561_v8  ;;  %v4010_v8 = vpack.c.bf16 %v1401_v5, %v1361_v4  ;;  %v646_v4 = vld [vmem:[#allocation8 + $0x7c8] sm:$0xff] }
 0x126   :  { %316 = vmatprep.mubr.f32.mxu1 %v154_v14  ;;  %v641_v14 = vld [vmem:[#allocation8 + $0x7a0] sm:$0xff]  ;;  %v686_v5 = vld [vmem:[#allocation8 + $0x908] sm:$0xff] }
 0x127   :  { %317 = vmatmul.mubr.f32.vlgmr.msra.gmra.mrb[2].mxu1 %v153_v13  ;;  %v3972_v13 = vpack.c.bf16 %v682_v11, %v642_v10  ;;  %v1441_v10 = vld [vmem:[#allocation8 + $0x20a0] sm:$0xff] }
 0x128   :  { %3803 = vmatpush1.bf16.msra.mxu1 %v3802_v16  ;;  %387 = vmatprep.mubr.f32.mxu1 %v5255_v0  ;;  %v238_v0 = vld [vmem:[#allocation7 + $0x290] sm:$0xff]  ;;  %v681_v16 = vld [vmem:[#allocation8 + $0x8e0] sm:$0xff] }
 0x129   :  { %3805 = vmatprep.subr.bf16.mxu1 %v3804_v17  ;;  %v3818_v39 = vpack.c.bf16 %v238_v0, %v236_v36  ;;  %v722_v17 = vld [vmem:[#allocation8 + $0xa28] sm:$0xff]  ;;  %v3974_v19 = vpack.c.bf16 %v681_v16, %v641_v14  ;;  %v3986_v36 = vpack.c.bf16 %v921_v33, %v881_v32  ;;  %v1481_v11 = vld [vmem:[#allocation8 + $0x21e0] sm:$0xff] }
 0x12a   :  { %v4014_v14 = vpack.c.bf16 %v1481_v11, %v1441_v10  ;;  %v446_v32 = vld [vmem:[#allocation8 + $0x188] sm:$0xff]  ;;  %v4100_v11 = vpack.c.bf16 %v686_v5, %v646_v4 }
 0x12c   :  { %3807 = vmatpush1.bf16.msra.mxu1 %v3806_v22  ;;  %v802_v22 = vld [vmem:[#allocation8 + $0xca8] sm:$0xff] }
 0x12d   :  { %3809 = vmatprep.subr.bf16.mxu1 %v3808_v23  ;;  %v842_v23 = vld [vmem:[#allocation8 + $0xde8] sm:$0xff] }
 0x12e   :  { %v3980_v25 = vpack.c.bf16 %v842_v23, %v802_v22  ;;  %v1597_v22 = vld [vmem:[#allocation8 + $0x2580] sm:$0xff] }
 0x12f   :  { %v1637_v23 = vld [vmem:[#allocation8 + $0x26c0] sm:$0xff] }
 0x130   :  { %3811 = vmatpush1.bf16.msra.mxu1 %v3810_v28  ;;  %v882_v28 = vld [vmem:[#allocation8 + $0xf28] sm:$0xff] }
 0x131   :  { %3813 = vmatprep.subr.bf16.mxu1 %v3812_v29  ;;  %v922_v29 = vld [vmem:[#allocation8 + $0x1068] sm:$0xff] }
 0x132   :  { %v3984_v31 = vpack.c.bf16 %v922_v29, %v882_v28  ;;  %v400_v28 = vld [vmem:[#allocation8 + $0x18] sm:$0xff] }
 0x133   :  { %v440_v29 = vld [vmem:[#allocation8 + $0x158] sm:$0xff] }
 0x134   :  { %3815 = vmatpush1.bf16.msra.mxu1 %v3814_v34  ;;  %v962_v34 = vld [vmem:[#allocation8 + $0x11a8] sm:$0xff] }
 0x135   :  { %3817 = vmatprep.subr.bf16.mxu1 %v3816_v35  ;;  %v1002_v35 = vld [vmem:[#allocation8 + $0x12e8] sm:$0xff] }
 0x136   :  { %v3988_v0 = vpack.c.bf16 %v1002_v35, %v962_v34  ;;  %v399_v34 = vld [vmem:[#allocation8 + $0x10] sm:$0xff] }
 0x137   :  { %v439_v35 = vld [vmem:[#allocation8 + $0x150] sm:$0xff] }
 0x138   :  { %3819 = vmatpush1.bf16.msra.mxu1 %v3818_v39  ;;  %v1042_v39 = vld [vmem:[#allocation8 + $0x1428] sm:$0xff]  ;;  %v3898_v43 = vpack.c.bf16 %v439_v35, %v399_v34 }
 0x139   :  { %3821 = vmatprep.subr.bf16.mxu1 %v3820_v40  ;;  %v1082_v40 = vld [vmem:[#allocation8 + $0x1568] sm:$0xff] }
 0x13a   :  { %v3992_v42 = vpack.c.bf16 %v1082_v40, %v1042_v39  ;;  %v520_v39 = vld [vmem:[#allocation8 + $0x3d8] sm:$0xff]  ;;  %v486_v40 = vld [vmem:[#allocation8 + $0x2c8] sm:$0xff] }
 0x13c   :  { %3823 = vmatpush1.bf16.msra.mxu1 %v3822_v45  ;;  %v1122_v45 = vld [vmem:[#allocation8 + $0x16a8] sm:$0xff] }
 0x13d   :  { %3825 = vmatprep.subr.bf16.mxu1 %v3824_v46  ;;  %v1162_v46 = vld [vmem:[#allocation8 + $0x17e8] sm:$0xff] }
 0x13e   :  { %v3996_v48 = vpack.c.bf16 %v1162_v46, %v1122_v45  ;;  %v479_v45 = vld [vmem:[#allocation8 + $0x290] sm:$0xff] }
 0x13f   :  { %v519_v46 = vld [vmem:[#allocation8 + $0x3d0] sm:$0xff] }
 0x140   :  { %3827 = vmatpush1.bf16.msra.mxu1 %v3826_v51  ;;  %v1202_v51 = vld [vmem:[#allocation8 + $0x1928] sm:$0xff] }
 0x141   :  { %3829 = vmatprep.subr.bf16.mxu1 %v3828_v52  ;;  %v1242_v52 = vld [vmem:[#allocation8 + $0x1a68] sm:$0xff] }
 0x142   :  { %v4000_v54 = vpack.c.bf16 %v1242_v52, %v1202_v51  ;;  %v5256_v51 = vmov 1.0   ;;  %v3900_v52 = vpack.c.bf16 %v520_v39, %v480_v37  ;;  %v880_v37 = vld [vmem:[#allocation8 + $0xf18] sm:$0xff]  ;;  %v886_v39 = vld [vmem:[#allocation8 + $0xf48] sm:$0xff] }
 0x144   :  { %3831 = vmatpush1.bf16.msra.mxu1 %v3830_v57  ;;  %v1282_v57 = vld [vmem:[#allocation8 + $0x1ba8] sm:$0xff] }
 0x145   :  { %3961 = vmatprep.subr.bf16.mxu1 %v3960_v58  ;;  %v1322_v58 = vld [vmem:[#allocation8 + $0x1ce8] sm:$0xff] }
 0x146   :  { %v4004_v60 = vpack.c.bf16 %v1322_v58, %v1282_v57  ;;  %v3902_v57 = vpack.c.bf16 %v519_v46, %v479_v45 }
 0x147   :  { %388 = vmatmul.mubr.f32.vlgmr.msra.gmra.mrb[2].mxu1 %v5337_v15  ;;  %v3976_v15 = vpack.c.bf16 %v762_v18, %v722_v17  ;;  %v1521_v17 = vld [vmem:[#allocation8 + $0x2320] sm:$0xff] }
 0x148   :  { %3963 = vmatpush1.bf16.msra.mxu1 %v3962_v63  ;;  %v1362_v63 = vld [vmem:[#allocation8 + $0x1e28] sm:$0xff]  ;;  %v1561_v18 = vld [vmem:[#allocation8 + $0x2460] sm:$0xff] }
 0x149   :  { %3965 = vmatprep.subr.bf16.mxu1 %v3964_v1  ;;  %v1402_v1 = vld [vmem:[#allocation8 + $0x1f68] sm:$0xff]  ;;  %v4018_v20 = vpack.c.bf16 %v1561_v18, %v1521_v17 }
 0x14a   :  { %v4008_v3 = vpack.c.bf16 %v1402_v1, %v1362_v63  ;;  %v565_v63 = vld [vmem:[#allocation8 + $0x540] sm:$0xff]  ;;  %v726_v17 = vld [vmem:[#allocation8 + $0xa48] sm:$0xff] }
 0x14b   :  { %v605_v1 = vld [vmem:[#allocation8 + $0x680] sm:$0xff]  ;;  %v766_v18 = vld [vmem:[#allocation8 + $0xb88] sm:$0xff] }
 0x14c   :  { %3967 = vmatpush1.bf16.msra.mxu1 %v3966_v6  ;;  %v1442_v6 = vld [vmem:[#allocation8 + $0x20a8] sm:$0xff] }
 0x14d   :  { %3969 = vmatprep.subr.bf16.mxu1 %v3968_v7  ;;  %v1482_v7 = vld [vmem:[#allocation8 + $0x21e8] sm:$0xff] }
 0x14e   :  { %v4012_v9 = vpack.c.bf16 %v1482_v7, %v1442_v6  ;;  %v4098_v7 = vpack.c.bf16 %v605_v1, %v565_v63  ;;  %v1040_v63 = vld [vmem:[#allocation8 + $0x1418] sm:$0xff] }
 0x14f   :  { %v1080_v1 = vld [vmem:[#allocation8 + $0x1558] sm:$0xff] }
 0x150   :  { %3971 = vmatpush1.bf16.msra.mxu1 %v3970_v12  ;;  %v1522_v12 = vld [vmem:[#allocation8 + $0x2328] sm:$0xff] }
 0x151   :  { %3973 = vmatprep.subr.bf16.mxu1 %v3972_v13  ;;  %v1562_v13 = vld [vmem:[#allocation8 + $0x2468] sm:$0xff] }
 0x152   :  { %v4016_v16 = vpack.c.bf16 %v1562_v13, %v1522_v12  ;;  %v645_v12 = vld [vmem:[#allocation8 + $0x7c0] sm:$0xff] }
 0x153   :  { %v685_v13 = vld [vmem:[#allocation8 + $0x900] sm:$0xff] }
 0x154   :  { %3975 = vmatpush1.bf16.msra.mxu1 %v3974_v19  ;;  %v1602_v19 = vld [vmem:[#allocation8 + $0x25a8] sm:$0xff] }
 0x155   :  { %3977 = vmatprep.subr.bf16.mxu1 %v3976_v15  ;;  %v1642_v15 = vld [vmem:[#allocation8 + $0x26e8] sm:$0xff] }
 0x156   :  { %v4020_v21 = vpack.c.bf16 %v1642_v15, %v1602_v19  ;;  %v4102_v15 = vpack.c.bf16 %v685_v13, %v645_v12  ;;  %v1120_v12 = vld [vmem:[#allocation8 + $0x1698] sm:$0xff] }
 0x157   :  { %v1160_v13 = vld [vmem:[#allocation8 + $0x17d8] sm:$0xff] }
 0x158   :  { %3979 = vmatpush1.bf16.msra.mxu1 %v3978_v24  ;;  %v1601_v24 = vld [vmem:[#allocation8 + $0x25a0] sm:$0xff] }
 0x159   :  { %3981 = vmatprep.subr.bf16.mxu1 %v3980_v25  ;;  %v3894_v25 = vpack.c.bf16 %v1637_v23, %v1597_v22  ;;  %v4022_v27 = vpack.c.bf16 %v1641_v26, %v1601_v24  ;;  %v4104_v23 = vpack.c.bf16 %v766_v18, %v726_v17  ;;  %v725_v24 = vld [vmem:[#allocation8 + $0xa40] sm:$0xff]  ;;  %v800_v26 = vld [vmem:[#allocation8 + $0xc98] sm:$0xff] }
 0x15b   :  { %3895 = vmatpush1.bf16.msra.mxu0 %v3894_v25  ;;  %v765_v25 = vld [vmem:[#allocation8 + $0xb80] sm:$0xff] }
 0x15c   :  { %3983 = vmatpush1.bf16.msra.mxu1 %v3982_v30  ;;  %v406_v30 = vld [vmem:[#allocation8 + $0x48] sm:$0xff] }
 0x15d   :  { %3985 = vmatprep.subr.bf16.mxu1 %v3984_v31  ;;  %v3896_v31 = vpack.c.bf16 %v440_v29, %v400_v28  ;;  %v4088_v33 = vpack.c.bf16 %v446_v32, %v406_v30  ;;  %v806_v28 = vld [vmem:[#allocation8 + $0xcc8] sm:$0xff]  ;;  %v799_v32 = vld [vmem:[#allocation8 + $0xc90] sm:$0xff] }
 0x15e   :  { %v846_v29 = vld [vmem:[#allocation8 + $0xe08] sm:$0xff] }
 0x15f   :  { %3897 = vmatprep.subr.bf16.mxu0 %v3896_v31  ;;  %v4106_v31 = vpack.c.bf16 %v765_v25, %v725_v24  ;;  %v4108_v35 = vpack.c.bf16 %v846_v29, %v806_v28  ;;  %v1200_v24 = vld [vmem:[#allocation8 + $0x1918] sm:$0xff] }
 0x160   :  { %3987 = vmatpush1.bf16.msra.mxu1 %v3986_v36  ;;  %v405_v36 = vld [vmem:[#allocation8 + $0x40] sm:$0xff]  ;;  %v1240_v25 = vld [vmem:[#allocation8 + $0x1a58] sm:$0xff] }
 0x161   :  { %3989 = vmatprep.subr.bf16.mxu1 %v3988_v0  ;;  %v445_v0 = vld [vmem:[#allocation8 + $0x180] sm:$0xff] }
 0x162   :  { %v4090_v44 = vpack.c.bf16 %v445_v0, %v405_v36  ;;  %v805_v36 = vld [vmem:[#allocation8 + $0xcc0] sm:$0xff] }
 0x163   :  { %v845_v0 = vld [vmem:[#allocation8 + $0xe00] sm:$0xff] }
 0x164   :  { %3991 = vmatpush1.bf16.msra.mxu1 %v3990_v41  ;;  %v526_v41 = vld [vmem:[#allocation8 + $0x408] sm:$0xff] }
 0x165   :  { %3993 = vmatprep.subr.bf16.mxu1 %v3992_v42 }
 0x168   :  { %3995 = vmatpush1.bf16.msra.mxu1 %v3994_v47 }
 0x169   :  { %3997 = vmatprep.subr.bf16.mxu1 %v3996_v48  ;;  %v485_v48 = vld [vmem:[#allocation8 + $0x2c0] sm:$0xff] }
 0x16a   :  { %v4094_v58 = vpack.c.bf16 %v525_v49, %v485_v48  ;;  %v885_v48 = vld [vmem:[#allocation8 + $0xf40] sm:$0xff] }
 0x16b   :  { %v925_v49 = vld [vmem:[#allocation8 + $0x1080] sm:$0xff] }
 0x16c   :  { %3999 = vmatpush1.bf16.msra.mxu1 %v3998_v53  ;;  %v4092_v53 = vpack.c.bf16 %v526_v41, %v486_v40  ;;  %v926_v40 = vld [vmem:[#allocation8 + $0x1088] sm:$0xff]  ;;  %v4114_v56 = vpack.c.bf16 %v925_v49, %v885_v48  ;;  %v1360_v48 = vld [vmem:[#allocation8 + $0x1e18] sm:$0xff] }
 0x16d   :  { %4001 = vmatprep.subr.bf16.mxu1 %v4000_v54  ;;  %v600_v54 = vld [vmem:[#allocation8 + $0x658] sm:$0xff]  ;;  %v4112_v46 = vpack.c.bf16 %v926_v40, %v886_v39 }
 0x16e   :  { %v3904_v61 = vpack.c.bf16 %v600_v54, %v560_v50  ;;  %v960_v50 = vld [vmem:[#allocation8 + $0x1198] sm:$0xff]  ;;  %v1006_v54 = vld [vmem:[#allocation8 + $0x1308] sm:$0xff] }
 0x16f   :  { %v1400_v49 = vld [vmem:[#allocation8 + $0x1f58] sm:$0xff] }
 0x170   :  { %4003 = vmatpush1.bf16.msra.mxu1 %v4002_v59  ;;  %v559_v59 = vld [vmem:[#allocation8 + $0x510] sm:$0xff] }
 0x171   :  { %4005 = vmatprep.subr.bf16.mxu1 %v4004_v60  ;;  %v599_v60 = vld [vmem:[#allocation8 + $0x650] sm:$0xff] }
 0x172   :  { %v3906_v6 = vpack.c.bf16 %v599_v60, %v559_v59 }
 0x174   :  { %4007 = vmatpush1.bf16.msra.mxu1 %v4006_v2  ;;  %v640_v2 = vld [vmem:[#allocation8 + $0x798] sm:$0xff] }
 0x175   :  { %4009 = vmatprep.subr.bf16.mxu1 %v4008_v3  ;;  %v680_v3 = vld [vmem:[#allocation8 + $0x8d8] sm:$0xff] }
 0x176   :  { %v3908_v10 = vpack.c.bf16 %v680_v3, %v640_v2  ;;  %v1046_v2 = vld [vmem:[#allocation8 + $0x1448] sm:$0xff] }
 0x177   :  { %v1086_v3 = vld [vmem:[#allocation8 + $0x1588] sm:$0xff] }
 0x178   :  { %4011 = vmatpush1.bf16.msra.mxu1 %v4010_v8  ;;  %v639_v8 = vld [vmem:[#allocation8 + $0x790] sm:$0xff] }
 0x179   :  { %4013 = vmatprep.subr.bf16.mxu1 %v4012_v9  ;;  %v679_v9 = vld [vmem:[#allocation8 + $0x8d0] sm:$0xff] }
 0x17a   :  { %v3910_v19 = vpack.c.bf16 %v679_v9, %v639_v8  ;;  %v3928_v8 = vpack.c.bf16 %v1080_v1, %v1040_v63  ;;  %v4120_v9 = vpack.c.bf16 %v1086_v3, %v1046_v2  ;;  %v1446_v63 = vld [vmem:[#allocation8 + $0x20c8] sm:$0xff] }
 0x17b   :  { %v1486_v1 = vld [vmem:[#allocation8 + $0x2208] sm:$0xff] }
 0x17c   :  { %4015 = vmatpush1.bf16.msra.mxu1 %v4014_v14  ;;  %v720_v14 = vld [vmem:[#allocation8 + $0xa18] sm:$0xff] }
 0x17d   :  { %4017 = vmatprep.subr.bf16.mxu1 %v4016_v16  ;;  %v760_v16 = vld [vmem:[#allocation8 + $0xb58] sm:$0xff] }
 0x17e   :  { %v3912_v22 = vpack.c.bf16 %v760_v16, %v720_v14  ;;  %v1126_v14 = vld [vmem:[#allocation8 + $0x16c8] sm:$0xff] }
 0x17f   :  { %v1166_v16 = vld [vmem:[#allocation8 + $0x1808] sm:$0xff] }
 0x180   :  { %4019 = vmatpush1.bf16.msra.mxu1 %v4018_v20  ;;  %v719_v20 = vld [vmem:[#allocation8 + $0xa10] sm:$0xff] }
 0x181   :  { %4021 = vmatprep.subr.bf16.mxu1 %v4020_v21  ;;  %v759_v21 = vld [vmem:[#allocation8 + $0xb50] sm:$0xff] }
 0x182   :  { %v3914_v30 = vpack.c.bf16 %v759_v21, %v719_v20  ;;  %v3932_v20 = vpack.c.bf16 %v1160_v13, %v1120_v12  ;;  %v4124_v21 = vpack.c.bf16 %v1166_v16, %v1126_v14  ;;  %v1526_v12 = vld [vmem:[#allocation8 + $0x2348] sm:$0xff] }
 0x183   :  { %v1566_v13 = vld [vmem:[#allocation8 + $0x2488] sm:$0xff] }
 0x184   :  { %4023 = vmatpush1.bf16.msra.mxu1 %v4022_v27  ;;  %v840_v27 = vld [vmem:[#allocation8 + $0xdd8] sm:$0xff] }
 0x185   :  { %4089 = vmatprep.subr.bf16.mxu1 %v4088_v33  ;;  %v839_v33 = vld [vmem:[#allocation8 + $0xdd0] sm:$0xff]  ;;  %v3916_v34 = vpack.c.bf16 %v840_v27, %v800_v26  ;;  %v1206_v26 = vld [vmem:[#allocation8 + $0x1948] sm:$0xff] }
 0x186   :  { %v3918_v41 = vpack.c.bf16 %v839_v33, %v799_v32  ;;  %v1246_v27 = vld [vmem:[#allocation8 + $0x1a88] sm:$0xff]  ;;  %v3936_v32 = vpack.c.bf16 %v1240_v25, %v1200_v24 }
 0x187   :  { %v4128_v33 = vpack.c.bf16 %v1246_v27, %v1206_v26  ;;  %v1606_v24 = vld [vmem:[#allocation8 + $0x25c8] sm:$0xff] }
 0x188   :  { %v1646_v25 = vld [vmem:[#allocation8 + $0x2708] sm:$0xff] }
 0x21a   :  { %v389_v38 = vpop.f32.mrb[2].mxu1 }
 0x21b   :  { %v391_v42 = vpop.f32.mrb[3].mxu1 }
 0x21c   :  { %vm5341_vm2 = vcmp.eq.f32.partialorder %v389_v38, %v391_v42  ;;  %v920_v38 = vld [vmem:[#allocation8 + $0x1058] sm:$0xff]  ;;  %v4110_v42 = vpack.c.bf16 %v845_v0, %v805_v36 }
 0x21d   :  { %3696 = vmatprep.mubr.msk.f32.mxu0 %vm5341_vm2, %v5256_v51  ;;  %3700 = vmatprep.mubr.msk.f32.mxu1 %vm5341_vm2, %v5256_v51  ;;  %v3920_v45 = vpack.c.bf16 %v920_v38, %v880_v37  ;;  %v1280_v36 = vld [vmem:[#allocation8 + $0x1b98] sm:$0xff]  ;;  %v1286_v37 = vld [vmem:[#allocation8 + $0x1bc8] sm:$0xff] }
 0x21e   :  { %3697 = vmatmul.mubr.msk.f32.vlgmr.msra.gmra.mrb[0].mxu0 %vm5341_vm2, %v5256_v51  ;;  %3701 = vmatmul.mubr.msk.f32.vlgmr.msra.gmra.mrb[4].mxu1 %vm5341_vm2, %v5256_v51  ;;  %v1320_v0 = vld [vmem:[#allocation8 + $0x1cd8] sm:$0xff]  ;;  %v1326_v38 = vld [vmem:[#allocation8 + $0x1d08] sm:$0xff] }
 0x21f   :  { %3899 = vmatpush1.bf16.msra.mxu0 %v3898_v43  ;;  %4091 = vmatpush1.bf16.msra.mxu1 %v4090_v44  ;;  %v879_v43 = vld [vmem:[#allocation8 + $0xf10] sm:$0xff] }
 0x220   :  { %3698 = vmatprep.mubr.msk.f32.mxu0 %vm5341_vm2, %v5256_v51  ;;  %3704 = vmatprep.mubr.msk.f32.mxu1 %vm5341_vm2, %v5256_v51  ;;  %v919_v44 = vld [vmem:[#allocation8 + $0x1050] sm:$0xff] }
 0x221   :  { %3901 = vmatprep.subr.bf16.mxu0 %v3900_v52  ;;  %4093 = vmatprep.subr.bf16.mxu1 %v4092_v53  ;;  %v1000_v52 = vld [vmem:[#allocation8 + $0x12d8] sm:$0xff]  ;;  %v966_v53 = vld [vmem:[#allocation8 + $0x11c8] sm:$0xff]  ;;  %v3922_v55 = vpack.c.bf16 %v919_v44, %v879_v43  ;;  %v3940_v43 = vpack.c.bf16 %v1320_v0, %v1280_v36  ;;  %v4132_v44 = vpack.c.bf16 %v1326_v38, %v1286_v37 }
 0x222   :  { %v3924_v59 = vpack.c.bf16 %v1000_v52, %v960_v50  ;;  %v4116_v60 = vpack.c.bf16 %v1006_v54, %v966_v53  ;;  %v1366_v50 = vld [vmem:[#allocation8 + $0x1e48] sm:$0xff] }
 0x223   :  { %3903 = vmatpush1.bf16.msra.mxu0 %v3902_v57  ;;  %4095 = vmatpush1.bf16.msra.mxu1 %v4094_v58  ;;  %v959_v57 = vld [vmem:[#allocation8 + $0x1190] sm:$0xff]  ;;  %v1406_v52 = vld [vmem:[#allocation8 + $0x1f88] sm:$0xff] }
 0x224   :  { %3905 = vmatprep.subr.bf16.mxu0 %v3904_v61  ;;  %4097 = vmatprep.subr.bf16.mxu1 %v4096_v62  ;;  %v999_v58 = vld [vmem:[#allocation8 + $0x12d0] sm:$0xff]  ;;  %v965_v61 = vld [vmem:[#allocation8 + $0x11c0] sm:$0xff]  ;;  %v410_v36 = vld [vmem:[#allocation8 + $0x68] sm:$0xff] }
 0x225   :  { %v1005_v62 = vld [vmem:[#allocation8 + $0x1300] sm:$0xff]  ;;  %v3926_v4 = vpack.c.bf16 %v999_v58, %v959_v57  ;;  %v3944_v57 = vpack.c.bf16 %v1400_v49, %v1360_v48  ;;  %v4136_v58 = vpack.c.bf16 %v1406_v52, %v1366_v50  ;;  %v450_v0 = vld [vmem:[#allocation8 + $0x1a8] sm:$0xff] }
 0x226   :  { %v4118_v5 = vpack.c.bf16 %v1005_v62, %v965_v61  ;;  %v1440_v61 = vld [vmem:[#allocation8 + $0x2098] sm:$0xff]  ;;  %v490_v48 = vld [vmem:[#allocation8 + $0x2e8] sm:$0xff] }
 0x227   :  { %3907 = vmatpush1.bf16.msra.mxu0 %v3906_v6  ;;  %4099 = vmatpush1.bf16.msra.mxu1 %v4098_v7  ;;  %v1039_v6 = vld [vmem:[#allocation8 + $0x1410] sm:$0xff]  ;;  %v1480_v62 = vld [vmem:[#allocation8 + $0x21d8] sm:$0xff]  ;;  %v530_v49 = vld [vmem:[#allocation8 + $0x428] sm:$0xff] }
 0x228   :  { %3909 = vmatprep.subr.bf16.mxu0 %v3908_v10  ;;  %4101 = vmatprep.subr.bf16.mxu1 %v4100_v11  ;;  %v1079_v7 = vld [vmem:[#allocation8 + $0x1550] sm:$0xff]  ;;  %v1045_v10 = vld [vmem:[#allocation8 + $0x1440] sm:$0xff] }
 0x229   :  { %v1085_v11 = vld [vmem:[#allocation8 + $0x1580] sm:$0xff]  ;;  %v3930_v17 = vpack.c.bf16 %v1079_v7, %v1039_v6  ;;  %v3948_v6 = vpack.c.bf16 %v1480_v62, %v1440_v61  ;;  %v4140_v7 = vpack.c.bf16 %v1486_v1, %v1446_v63  ;;  %v570_v61 = vld [vmem:[#allocation8 + $0x568] sm:$0xff] }
 0x22a   :  { %v4122_v18 = vpack.c.bf16 %v1085_v11, %v1045_v10  ;;  %v1520_v10 = vld [vmem:[#allocation8 + $0x2318] sm:$0xff]  ;;  %v610_v62 = vld [vmem:[#allocation8 + $0x6a8] sm:$0xff] }
 0x22b   :  { %3911 = vmatpush1.bf16.msra.mxu0 %v3910_v19  ;;  %4103 = vmatpush1.bf16.msra.mxu1 %v4102_v15  ;;  %v1119_v19 = vld [vmem:[#allocation8 + $0x1690] sm:$0xff]  ;;  %v1560_v11 = vld [vmem:[#allocation8 + $0x2458] sm:$0xff] }
 0x22c   :  { %3913 = vmatprep.subr.bf16.mxu0 %v3912_v22  ;;  %4105 = vmatprep.subr.bf16.mxu1 %v4104_v23  ;;  %v1159_v15 = vld [vmem:[#allocation8 + $0x17d0] sm:$0xff]  ;;  %v1125_v22 = vld [vmem:[#allocation8 + $0x16c0] sm:$0xff] }
 0x22d   :  { %v1165_v23 = vld [vmem:[#allocation8 + $0x1800] sm:$0xff]  ;;  %v3934_v28 = vpack.c.bf16 %v1159_v15, %v1119_v19  ;;  %v3952_v19 = vpack.c.bf16 %v1560_v11, %v1520_v10  ;;  %v4144_v15 = vpack.c.bf16 %v1566_v13, %v1526_v12  ;;  %v650_v10 = vld [vmem:[#allocation8 + $0x7e8] sm:$0xff] }
 0x22e   :  { %v4126_v29 = vpack.c.bf16 %v1165_v23, %v1125_v22  ;;  %v1600_v22 = vld [vmem:[#allocation8 + $0x2598] sm:$0xff]  ;;  %v690_v11 = vld [vmem:[#allocation8 + $0x928] sm:$0xff] }
 0x22f   :  { %3915 = vmatpush1.bf16.msra.mxu0 %v3914_v30  ;;  %4107 = vmatpush1.bf16.msra.mxu1 %v4106_v31  ;;  %v1199_v30 = vld [vmem:[#allocation8 + $0x1910] sm:$0xff]  ;;  %v1640_v23 = vld [vmem:[#allocation8 + $0x26d8] sm:$0xff] }
 0x230   :  { %3917 = vmatprep.subr.bf16.mxu0 %v3916_v34  ;;  %4109 = vmatprep.subr.bf16.mxu1 %v4108_v35  ;;  %v1239_v31 = vld [vmem:[#allocation8 + $0x1a50] sm:$0xff]  ;;  %v1205_v34 = vld [vmem:[#allocation8 + $0x1940] sm:$0xff] }
 0x231   :  { %v1245_v35 = vld [vmem:[#allocation8 + $0x1a80] sm:$0xff]  ;;  %v3938_v39 = vpack.c.bf16 %v1239_v31, %v1199_v30  ;;  %v3956_v30 = vpack.c.bf16 %v1640_v23, %v1600_v22  ;;  %v4148_v31 = vpack.c.bf16 %v1646_v25, %v1606_v24  ;;  %v730_v22 = vld [vmem:[#allocation8 + $0xa68] sm:$0xff] }
 0x232   :  { %v4130_v40 = vpack.c.bf16 %v1245_v35, %v1205_v34  ;;  %v404_v34 = vld [vmem:[#allocation8 + $0x38] sm:$0xff]  ;;  %v770_v23 = vld [vmem:[#allocation8 + $0xba8] sm:$0xff] }
 0x233   :  { %3919 = vmatpush1.bf16.msra.mxu0 %v3918_v41  ;;  %4111 = vmatpush1.bf16.msra.mxu1 %v4110_v42  ;;  %v1279_v41 = vld [vmem:[#allocation8 + $0x1b90] sm:$0xff]  ;;  %v444_v35 = vld [vmem:[#allocation8 + $0x178] sm:$0xff] }
 0x234   :  { %3921 = vmatprep.subr.bf16.mxu0 %v3920_v45  ;;  %4113 = vmatprep.subr.bf16.mxu1 %v4112_v46  ;;  %v1319_v42 = vld [vmem:[#allocation8 + $0x1cd0] sm:$0xff]  ;;  %v1285_v45 = vld [vmem:[#allocation8 + $0x1bc0] sm:$0xff] }
 0x235   :  { %v1325_v46 = vld [vmem:[#allocation8 + $0x1d00] sm:$0xff]  ;;  %v3942_v53 = vpack.c.bf16 %v1319_v42, %v1279_v41  ;;  %v403_v41 = vld [vmem:[#allocation8 + $0x30] sm:$0xff] }
 0x236   :  { %v4134_v54 = vpack.c.bf16 %v1325_v46, %v1285_v45  ;;  %v443_v42 = vld [vmem:[#allocation8 + $0x170] sm:$0xff]  ;;  %v484_v45 = vld [vmem:[#allocation8 + $0x2b8] sm:$0xff] }
 0x237   :  { %3923 = vmatpush1.bf16.msra.mxu0 %v3922_v55  ;;  %4115 = vmatpush1.bf16.msra.mxu1 %v4114_v56  ;;  %v1359_v55 = vld [vmem:[#allocation8 + $0x1e10] sm:$0xff]  ;;  %v524_v46 = vld [vmem:[#allocation8 + $0x3f8] sm:$0xff]  ;;  %v4026_v50 = vpack.c.bf16 %v443_v42, %v403_v41  ;;  %v849_v42 = vld [vmem:[#allocation8 + $0xe20] sm:$0xff] }
 0x238   :  { %3925 = vmatprep.subr.bf16.mxu0 %v3924_v59  ;;  %4117 = vmatprep.subr.bf16.mxu1 %v4116_v60  ;;  %v1399_v56 = vld [vmem:[#allocation8 + $0x1f50] sm:$0xff]  ;;  %v1365_v59 = vld [vmem:[#allocation8 + $0x1e40] sm:$0xff] }
 0x239   :  { %v1405_v60 = vld [vmem:[#allocation8 + $0x1f80] sm:$0xff]  ;;  %v3946_v2 = vpack.c.bf16 %v1399_v56, %v1359_v55  ;;  %v4028_v56 = vpack.c.bf16 %v524_v46, %v484_v45  ;;  %v890_v45 = vld [vmem:[#allocation8 + $0xf68] sm:$0xff] }
 0x23a   :  { %v4138_v3 = vpack.c.bf16 %v1405_v60, %v1365_v59  ;;  %v489_v55 = vld [vmem:[#allocation8 + $0x2e0] sm:$0xff]  ;;  %v564_v59 = vld [vmem:[#allocation8 + $0x538] sm:$0xff]  ;;  %v930_v46 = vld [vmem:[#allocation8 + $0x10a8] sm:$0xff] }
 0x23b   :  { %3927 = vmatpush1.bf16.msra.mxu0 %v3926_v4  ;;  %4119 = vmatpush1.bf16.msra.mxu1 %v4118_v5  ;;  %v1439_v4 = vld [vmem:[#allocation8 + $0x2090] sm:$0xff]  ;;  %v604_v60 = vld [vmem:[#allocation8 + $0x678] sm:$0xff] }
 0x23c   :  { %3929 = vmatprep.subr.bf16.mxu0 %v3928_v8  ;;  %4121 = vmatprep.subr.bf16.mxu1 %v4120_v9  ;;  %v1479_v5 = vld [vmem:[#allocation8 + $0x21d0] sm:$0xff]  ;;  %v1445_v8 = vld [vmem:[#allocation8 + $0x20c0] sm:$0xff] }
 0x23d   :  { %v1485_v9 = vld [vmem:[#allocation8 + $0x2200] sm:$0xff]  ;;  %v3950_v14 = vpack.c.bf16 %v1479_v5, %v1439_v4  ;;  %v603_v4 = vld [vmem:[#allocation8 + $0x670] sm:$0xff] }
 0x23e   :  { %v4142_v16 = vpack.c.bf16 %v1485_v9, %v1445_v8  ;;  %v569_v5 = vld [vmem:[#allocation8 + $0x560] sm:$0xff]  ;;  %v644_v8 = vld [vmem:[#allocation8 + $0x7b8] sm:$0xff] }
 0x23f   :  { %3931 = vmatpush1.bf16.msra.mxu0 %v3930_v17  ;;  %4123 = vmatpush1.bf16.msra.mxu1 %v4122_v18  ;;  %v1519_v17 = vld [vmem:[#allocation8 + $0x2310] sm:$0xff]  ;;  %v684_v9 = vld [vmem:[#allocation8 + $0x8f8] sm:$0xff] }
 0x240   :  { %3933 = vmatprep.subr.bf16.mxu0 %v3932_v20  ;;  %4125 = vmatprep.subr.bf16.mxu1 %v4124_v21  ;;  %v1559_v18 = vld [vmem:[#allocation8 + $0x2450] sm:$0xff]  ;;  %v1525_v20 = vld [vmem:[#allocation8 + $0x2340] sm:$0xff] }
 0x241   :  { %v1565_v21 = vld [vmem:[#allocation8 + $0x2480] sm:$0xff]  ;;  %v3954_v26 = vpack.c.bf16 %v1559_v18, %v1519_v17  ;;  %v683_v17 = vld [vmem:[#allocation8 + $0x8f0] sm:$0xff] }
 0x242   :  { %v4146_v27 = vpack.c.bf16 %v1565_v21, %v1525_v20  ;;  %v649_v18 = vld [vmem:[#allocation8 + $0x7e0] sm:$0xff]  ;;  %v724_v20 = vld [vmem:[#allocation8 + $0xa38] sm:$0xff] }
 0x243   :  { %3935 = vmatpush1.bf16.msra.mxu0 %v3934_v28  ;;  %4127 = vmatpush1.bf16.msra.mxu1 %v4126_v29  ;;  %v1599_v28 = vld [vmem:[#allocation8 + $0x2590] sm:$0xff]  ;;  %v764_v21 = vld [vmem:[#allocation8 + $0xb78] sm:$0xff] }
 0x244   :  { %3937 = vmatprep.subr.bf16.mxu0 %v3936_v32  ;;  %4129 = vmatprep.subr.bf16.mxu1 %v4128_v33  ;;  %v1639_v29 = vld [vmem:[#allocation8 + $0x26d0] sm:$0xff]  ;;  %v1605_v32 = vld [vmem:[#allocation8 + $0x25c0] sm:$0xff] }
 0x245   :  { %v1645_v33 = vld [vmem:[#allocation8 + $0x2700] sm:$0xff]  ;;  %v3958_v37 = vpack.c.bf16 %v1639_v29, %v1599_v28  ;;  %v763_v28 = vld [vmem:[#allocation8 + $0xb70] sm:$0xff] }
 0x246   :  { %v4150_v38 = vpack.c.bf16 %v1645_v33, %v1605_v32  ;;  %v729_v29 = vld [vmem:[#allocation8 + $0xa60] sm:$0xff]  ;;  %v804_v32 = vld [vmem:[#allocation8 + $0xcb8] sm:$0xff] }
 0x247   :  { %3939 = vmatpush1.bf16.msra.mxu0 %v3938_v39  ;;  %4131 = vmatpush1.bf16.msra.mxu1 %v4130_v40  ;;  %v4024_v39 = vpack.c.bf16 %v444_v35, %v404_v34  ;;  %v4216_v40 = vpack.c.bf16 %v450_v0, %v410_v36  ;;  %v844_v33 = vld [vmem:[#allocation8 + $0xdf8] sm:$0xff]  ;;  %v810_v34 = vld [vmem:[#allocation8 + $0xce8] sm:$0xff] }
 0x248   :  { %3941 = vmatprep.subr.bf16.mxu0 %v3940_v43  ;;  %4133 = vmatprep.subr.bf16.mxu1 %v4132_v44  ;;  %v409_v43 = vld [vmem:[#allocation8 + $0x60] sm:$0xff]  ;;  %v850_v35 = vld [vmem:[#allocation8 + $0xe28] sm:$0xff] }
 0x249   :  { %v449_v44 = vld [vmem:[#allocation8 + $0x1a0] sm:$0xff]  ;;  %v4236_v41 = vpack.c.bf16 %v850_v35, %v810_v34 }
 0x24a   :  { %v4218_v52 = vpack.c.bf16 %v449_v44, %v409_v43  ;;  %v884_v43 = vld [vmem:[#allocation8 + $0xf38] sm:$0xff] }
 0x24b   :  { %3943 = vmatpush1.bf16.msra.mxu0 %v3942_v53  ;;  %4135 = vmatpush1.bf16.msra.mxu1 %v4134_v54  ;;  %v483_v53 = vld [vmem:[#allocation8 + $0x2b0] sm:$0xff]  ;;  %v924_v44 = vld [vmem:[#allocation8 + $0x1078] sm:$0xff] }
 0x24c   :  { %3945 = vmatprep.subr.bf16.mxu0 %v3944_v57  ;;  %4137 = vmatprep.subr.bf16.mxu1 %v4136_v58  ;;  %v523_v54 = vld [vmem:[#allocation8 + $0x3f0] sm:$0xff]  ;;  %v4220_v57 = vpack.c.bf16 %v530_v49, %v490_v48  ;;  %v529_v58 = vld [vmem:[#allocation8 + $0x420] sm:$0xff] }
 0x24d   :  { %v4030_v63 = vpack.c.bf16 %v523_v54, %v483_v53  ;;  %v4222_v1 = vpack.c.bf16 %v529_v58, %v489_v55  ;;  %v923_v53 = vld [vmem:[#allocation8 + $0x1070] sm:$0xff]  ;;  %v889_v54 = vld [vmem:[#allocation8 + $0xf60] sm:$0xff]  ;;  %v4240_v55 = vpack.c.bf16 %v930_v46, %v890_v45  ;;  %v1004_v58 = vld [vmem:[#allocation8 + $0x12f8] sm:$0xff] }
 0x24f   :  { %3947 = vmatpush1.bf16.msra.mxu0 %v3946_v2  ;;  %4139 = vmatpush1.bf16.msra.mxu1 %v4138_v3  ;;  %v4032_v2 = vpack.c.bf16 %v604_v60, %v564_v59  ;;  %v563_v3 = vld [vmem:[#allocation8 + $0x530] sm:$0xff]  ;;  %v970_v59 = vld [vmem:[#allocation8 + $0x11e8] sm:$0xff] }
 0x250   :  { %3949 = vmatprep.subr.bf16.mxu0 %v3948_v6  ;;  %4141 = vmatprep.subr.bf16.mxu1 %v4140_v7  ;;  %v4224_v6 = vpack.c.bf16 %v610_v62, %v570_v61  ;;  %v609_v7 = vld [vmem:[#allocation8 + $0x6a0] sm:$0xff]  ;;  %v4034_v12 = vpack.c.bf16 %v603_v4, %v563_v3  ;;  %v1010_v60 = vld [vmem:[#allocation8 + $0x1328] sm:$0xff] }
 0x251   :  { %v4226_v13 = vpack.c.bf16 %v609_v7, %v569_v5  ;;  %v969_v3 = vld [vmem:[#allocation8 + $0x11e0] sm:$0xff]  ;;  %v4244_v4 = vpack.c.bf16 %v1010_v60, %v970_v59  ;;  %v1084_v7 = vld [vmem:[#allocation8 + $0x1578] sm:$0xff] }
 0x252   :  { %v1009_v5 = vld [vmem:[#allocation8 + $0x1320] sm:$0xff] }
 0x253   :  { %3951 = vmatpush1.bf16.msra.mxu0 %v3950_v14  ;;  %4143 = vmatpush1.bf16.msra.mxu1 %v4142_v16  ;;  %v4036_v14 = vpack.c.bf16 %v684_v9, %v644_v8  ;;  %v643_v16 = vld [vmem:[#allocation8 + $0x7b0] sm:$0xff]  ;;  %v1050_v8 = vld [vmem:[#allocation8 + $0x1468] sm:$0xff] }
 0x254   :  { %3953 = vmatprep.subr.bf16.mxu0 %v3952_v19  ;;  %4145 = vmatprep.subr.bf16.mxu1 %v4144_v15  ;;  %v4228_v19 = vpack.c.bf16 %v690_v11, %v650_v10  ;;  %v689_v15 = vld [vmem:[#allocation8 + $0x920] sm:$0xff]  ;;  %v4038_v24 = vpack.c.bf16 %v683_v17, %v643_v16  ;;  %v1090_v9 = vld [vmem:[#allocation8 + $0x15a8] sm:$0xff]  ;;  %v4246_v11 = vpack.c.bf16 %v1009_v5, %v969_v3  ;;  %v1484_v5 = vld [vmem:[#allocation8 + $0x21f8] sm:$0xff] }
 0x255   :  { %v4230_v25 = vpack.c.bf16 %v689_v15, %v649_v18  ;;  %v1049_v16 = vld [vmem:[#allocation8 + $0x1460] sm:$0xff]  ;;  %v4248_v17 = vpack.c.bf16 %v1090_v9, %v1050_v8  ;;  %v1164_v15 = vld [vmem:[#allocation8 + $0x17f8] sm:$0xff] }
 0x256   :  { %v1089_v18 = vld [vmem:[#allocation8 + $0x15a0] sm:$0xff] }
 0x257   :  { %3955 = vmatpush1.bf16.msra.mxu0 %v3954_v26  ;;  %4147 = vmatpush1.bf16.msra.mxu1 %v4146_v27  ;;  %v4040_v26 = vpack.c.bf16 %v764_v21, %v724_v20  ;;  %v723_v27 = vld [vmem:[#allocation8 + $0xa30] sm:$0xff]  ;;  %v1130_v20 = vld [vmem:[#allocation8 + $0x16e8] sm:$0xff]  ;;  %v1409_v3 = vld [vmem:[#allocation8 + $0x1fa0] sm:$0xff] }
 0x258   :  { %3957 = vmatprep.subr.bf16.mxu0 %v3956_v30  ;;  %4149 = vmatprep.subr.bf16.mxu1 %v4148_v31  ;;  %v4232_v30 = vpack.c.bf16 %v770_v23, %v730_v22  ;;  %v769_v31 = vld [vmem:[#allocation8 + $0xba0] sm:$0xff]  ;;  %v4042_v36 = vpack.c.bf16 %v763_v28, %v723_v27  ;;  %v1170_v21 = vld [vmem:[#allocation8 + $0x1828] sm:$0xff]  ;;  %v4250_v23 = vpack.c.bf16 %v1089_v18, %v1049_v16  ;;  %v1564_v18 = vld [vmem:[#allocation8 + $0x2478] sm:$0xff] }
 0x259   :  { %v4234_v0 = vpack.c.bf16 %v769_v31, %v729_v29  ;;  %v1129_v27 = vld [vmem:[#allocation8 + $0x16e0] sm:$0xff]  ;;  %v4252_v28 = vpack.c.bf16 %v1170_v21, %v1130_v20  ;;  %v1244_v31 = vld [vmem:[#allocation8 + $0x1a78] sm:$0xff] }
 0x25a   :  { %v1169_v29 = vld [vmem:[#allocation8 + $0x1820] sm:$0xff] }
 0x25b   :  { %3959 = vmatpush1.bf16.msra.mxu0 %v3958_v37  ;;  %4151 = vmatpush1.bf16.msra.mxu1 %v4150_v38  ;;  %v4044_v37 = vpack.c.bf16 %v844_v33, %v804_v32  ;;  %v803_v38 = vld [vmem:[#allocation8 + $0xcb0] sm:$0xff]  ;;  %v1210_v32 = vld [vmem:[#allocation8 + $0x1968] sm:$0xff]  ;;  %v4254_v35 = vpack.c.bf16 %v1169_v29, %v1129_v27  ;;  %v1489_v16 = vld [vmem:[#allocation8 + $0x2220] sm:$0xff] }
 0x25c   :  { %4025 = vmatprep.subr.bf16.mxu0 %v4024_v39  ;;  %4217 = vmatprep.subr.bf16.mxu1 %v4216_v40  ;;  %v843_v39 = vld [vmem:[#allocation8 + $0xdf0] sm:$0xff]  ;;  %v809_v40 = vld [vmem:[#allocation8 + $0xce0] sm:$0xff]  ;;  %v1250_v33 = vld [vmem:[#allocation8 + $0x1aa8] sm:$0xff] }
 0x25d   :  { %v4046_v48 = vpack.c.bf16 %v843_v39, %v803_v38  ;;  %v4238_v49 = vpack.c.bf16 %v849_v42, %v809_v40  ;;  %v1209_v38 = vld [vmem:[#allocation8 + $0x1960] sm:$0xff]  ;;  %v4256_v39 = vpack.c.bf16 %v1250_v33, %v1210_v32  ;;  %v1324_v42 = vld [vmem:[#allocation8 + $0x1cf8] sm:$0xff] }
 0x25e   :  { %3699 = vmatmul.mubr.msk.f32.vlgmr.msra.gmra.mrb[2].mxu0 %vm5341_vm2, %v5256_v51  ;;  %3705 = vmatmul.mubr.msk.f32.vlgmr.msra.gmra.mrb[6].mxu1 %vm5341_vm2, %v5256_v51  ;;  %v1249_v40 = vld [vmem:[#allocation8 + $0x1aa0] sm:$0xff]  ;;  %v1644_v29 = vld [vmem:[#allocation8 + $0x26f8] sm:$0xff] }
 0x25f   :  { %4027 = vmatpush1.bf16.msra.mxu0 %v4026_v50  ;;  %3702 = vmatprep.mubr.msk.f32.mxu0 %vm5341_vm2, %v5256_v51  ;;  %v4048_v50 = vpack.c.bf16 %v924_v44, %v884_v43  ;;  %v1290_v43 = vld [vmem:[#allocation8 + $0x1be8] sm:$0xff]  ;;  %v4258_v46 = vpack.c.bf16 %v1249_v40, %v1209_v38  ;;  %v1569_v27 = vld [vmem:[#allocation8 + $0x24a0] sm:$0xff]  ;;  %v448_v40 = vld [vmem:[#allocation8 + $0x198] sm:$0xff] }
 0x260   :  { %4219 = vmatpush1.bf16.msra.mxu1 %v4218_v52  ;;  %3708 = vmatprep.mubr.msk.f32.mxu1 %vm5341_vm2, %v5256_v51  ;;  %v883_v52 = vld [vmem:[#allocation8 + $0xf30] sm:$0xff]  ;;  %v1330_v44 = vld [vmem:[#allocation8 + $0x1d28] sm:$0xff]  ;;  %v1649_v38 = vld [vmem:[#allocation8 + $0x2720] sm:$0xff] }
 0x261   :  { %4029 = vmatprep.subr.bf16.mxu0 %v4028_v56  ;;  %4221 = vmatprep.subr.bf16.mxu1 %v4220_v57  ;;  %v929_v56 = vld [vmem:[#allocation8 + $0x10a0] sm:$0xff]  ;;  %v964_v57 = vld [vmem:[#allocation8 + $0x11b8] sm:$0xff]  ;;  %v4050_v61 = vpack.c.bf16 %v923_v53, %v883_v52  ;;  %v4260_v53 = vpack.c.bf16 %v1330_v44, %v1290_v43 }
 0x262   :  { %v4242_v62 = vpack.c.bf16 %v929_v56, %v889_v54  ;;  %v1289_v52 = vld [vmem:[#allocation8 + $0x1be0] sm:$0xff]  ;;  %v1404_v56 = vld [vmem:[#allocation8 + $0x1f78] sm:$0xff] }
 0x263   :  { %4031 = vmatpush1.bf16.msra.mxu0 %v4030_v63  ;;  %v4052_v63 = vpack.c.bf16 %v1004_v58, %v964_v57  ;;  %v1329_v54 = vld [vmem:[#allocation8 + $0x1d20] sm:$0xff]  ;;  %v1370_v57 = vld [vmem:[#allocation8 + $0x1e68] sm:$0xff] }
 0x264   :  { %4223 = vmatpush1.bf16.msra.mxu1 %v4222_v1  ;;  %4033 = vmatprep.subr.bf16.mxu0 %v4032_v2  ;;  %v963_v1 = vld [vmem:[#allocation8 + $0x11b0] sm:$0xff]  ;;  %v1410_v58 = vld [vmem:[#allocation8 + $0x1fa8] sm:$0xff]  ;;  %v4262_v60 = vpack.c.bf16 %v1329_v54, %v1289_v52  ;;  %v453_v52 = vld [vmem:[#allocation8 + $0x1c0] sm:$0xff] }
 0x265   :  { %4225 = vmatprep.subr.bf16.mxu1 %v4224_v6  ;;  %v1003_v2 = vld [vmem:[#allocation8 + $0x12f0] sm:$0xff]  ;;  %v1044_v6 = vld [vmem:[#allocation8 + $0x1438] sm:$0xff] }
 0x266   :  { %v4054_v10 = vpack.c.bf16 %v1003_v2, %v963_v1  ;;  %v1369_v1 = vld [vmem:[#allocation8 + $0x1e60] sm:$0xff]  ;;  %v4264_v2 = vpack.c.bf16 %v1410_v58, %v1370_v57  ;;  %v528_v54 = vld [vmem:[#allocation8 + $0x418] sm:$0xff]  ;;  %v534_v57 = vld [vmem:[#allocation8 + $0x448] sm:$0xff] }
 0x267   :  { %4035 = vmatpush1.bf16.msra.mxu0 %v4034_v12  ;;  %v4056_v12 = vpack.c.bf16 %v1084_v7, %v1044_v6  ;;  %v1450_v6 = vld [vmem:[#allocation8 + $0x20e8] sm:$0xff]  ;;  %v4266_v9 = vpack.c.bf16 %v1409_v3, %v1369_v1  ;;  %v568_v1 = vld [vmem:[#allocation8 + $0x558] sm:$0xff] }
 0x268   :  { %4227 = vmatpush1.bf16.msra.mxu1 %v4226_v13  ;;  %4037 = vmatprep.subr.bf16.mxu0 %v4036_v14  ;;  %v1043_v13 = vld [vmem:[#allocation8 + $0x1430] sm:$0xff]  ;;  %v1490_v7 = vld [vmem:[#allocation8 + $0x2228] sm:$0xff] }
 0x269   :  { %4229 = vmatprep.subr.bf16.mxu1 %v4228_v19  ;;  %v1083_v14 = vld [vmem:[#allocation8 + $0x1570] sm:$0xff]  ;;  %v1124_v19 = vld [vmem:[#allocation8 + $0x16b8] sm:$0xff] }
 0x26a   :  { %v4058_v22 = vpack.c.bf16 %v1083_v14, %v1043_v13  ;;  %v1449_v13 = vld [vmem:[#allocation8 + $0x20e0] sm:$0xff]  ;;  %v4268_v14 = vpack.c.bf16 %v1490_v7, %v1450_v6 }
 0x26b   :  { %4039 = vmatpush1.bf16.msra.mxu0 %v4038_v24  ;;  %v4060_v24 = vpack.c.bf16 %v1164_v15, %v1124_v19  ;;  %v1530_v19 = vld [vmem:[#allocation8 + $0x2368] sm:$0xff]  ;;  %v4270_v21 = vpack.c.bf16 %v1489_v16, %v1449_v13  ;;  %v613_v13 = vld [vmem:[#allocation8 + $0x6c0] sm:$0xff]  ;;  %v688_v16 = vld [vmem:[#allocation8 + $0x918] sm:$0xff] }
 0x26c   :  { %4231 = vmatpush1.bf16.msra.mxu1 %v4230_v25  ;;  %4041 = vmatprep.subr.bf16.mxu0 %v4040_v26  ;;  %v1123_v25 = vld [vmem:[#allocation8 + $0x16b0] sm:$0xff]  ;;  %v1570_v15 = vld [vmem:[#allocation8 + $0x24a8] sm:$0xff] }
 0x26d   :  { %4233 = vmatprep.subr.bf16.mxu1 %v4232_v30  ;;  %v1163_v26 = vld [vmem:[#allocation8 + $0x17f0] sm:$0xff]  ;;  %v1204_v30 = vld [vmem:[#allocation8 + $0x1938] sm:$0xff] }
 0x26e   :  { %v4062_v34 = vpack.c.bf16 %v1163_v26, %v1123_v25  ;;  %v1529_v25 = vld [vmem:[#allocation8 + $0x2360] sm:$0xff]  ;;  %v4272_v26 = vpack.c.bf16 %v1570_v15, %v1530_v19 }
 0x26f   :  { %4043 = vmatpush1.bf16.msra.mxu0 %v4042_v36  ;;  %v4064_v36 = vpack.c.bf16 %v1244_v31, %v1204_v30  ;;  %v1610_v30 = vld [vmem:[#allocation8 + $0x25e8] sm:$0xff]  ;;  %v4274_v33 = vpack.c.bf16 %v1569_v27, %v1529_v25  ;;  %v693_v25 = vld [vmem:[#allocation8 + $0x940] sm:$0xff]  ;;  %v768_v27 = vld [vmem:[#allocation8 + $0xb98] sm:$0xff] }
 0x270   :  { %4235 = vmatpush1.bf16.msra.mxu1 %v4234_v0  ;;  %4045 = vmatprep.subr.bf16.mxu0 %v4044_v37  ;;  %v1203_v0 = vld [vmem:[#allocation8 + $0x1930] sm:$0xff]  ;;  %v1650_v31 = vld [vmem:[#allocation8 + $0x2728] sm:$0xff] }
 0x271   :  { %4237 = vmatprep.subr.bf16.mxu1 %v4236_v41  ;;  %v1243_v37 = vld [vmem:[#allocation8 + $0x1a70] sm:$0xff]  ;;  %v1284_v41 = vld [vmem:[#allocation8 + $0x1bb8] sm:$0xff] }
 0x272   :  { %v4066_v45 = vpack.c.bf16 %v1243_v37, %v1203_v0  ;;  %v1609_v0 = vld [vmem:[#allocation8 + $0x25e0] sm:$0xff]  ;;  %v4276_v37 = vpack.c.bf16 %v1650_v31, %v1610_v30 }
 0x273   :  { %4047 = vmatpush1.bf16.msra.mxu0 %v4046_v48  ;;  %v4068_v48 = vpack.c.bf16 %v1324_v42, %v1284_v41  ;;  %v414_v41 = vld [vmem:[#allocation8 + $0x88] sm:$0xff]  ;;  %v4278_v44 = vpack.c.bf16 %v1649_v38, %v1609_v0  ;;  %v773_v0 = vld [vmem:[#allocation8 + $0xbc0] sm:$0xff]  ;;  %v848_v38 = vld [vmem:[#allocation8 + $0xe18] sm:$0xff] }
 0x274   :  { %4239 = vmatpush1.bf16.msra.mxu1 %v4238_v49  ;;  %4049 = vmatprep.subr.bf16.mxu0 %v4048_v50  ;;  %v1283_v49 = vld [vmem:[#allocation8 + $0x1bb0] sm:$0xff]  ;;  %v454_v42 = vld [vmem:[#allocation8 + $0x1c8] sm:$0xff] }
 0x275   :  { %4241 = vmatprep.subr.bf16.mxu1 %v4240_v55  ;;  %v1323_v50 = vld [vmem:[#allocation8 + $0x1cf0] sm:$0xff]  ;;  %v1364_v55 = vld [vmem:[#allocation8 + $0x1e38] sm:$0xff] }
 0x276   :  { %v4070_v59 = vpack.c.bf16 %v1323_v50, %v1283_v49  ;;  %v4344_v49 = vpack.c.bf16 %v454_v42, %v414_v41  ;;  %v413_v50 = vld [vmem:[#allocation8 + $0x80] sm:$0xff] }
 0x277   :  { %4051 = vmatpush1.bf16.msra.mxu0 %v4050_v61  ;;  %v4072_v61 = vpack.c.bf16 %v1404_v56, %v1364_v55  ;;  %v494_v56 = vld [vmem:[#allocation8 + $0x308] sm:$0xff]  ;;  %v4346_v58 = vpack.c.bf16 %v453_v52, %v413_v50  ;;  %v888_v50 = vld [vmem:[#allocation8 + $0xf58] sm:$0xff] }
 0x278   :  { %4243 = vmatpush1.bf16.msra.mxu1 %v4242_v62  ;;  %4053 = vmatprep.subr.bf16.mxu0 %v4052_v63  ;;  %v1363_v62 = vld [vmem:[#allocation8 + $0x1e30] sm:$0xff]  ;;  %v4348_v3 = vpack.c.bf16 %v534_v57, %v494_v56  ;;  %v928_v52 = vld [vmem:[#allocation8 + $0x1098] sm:$0xff] }
 0x279   :  { %4245 = vmatprep.subr.bf16.mxu1 %v4244_v4  ;;  %v1403_v63 = vld [vmem:[#allocation8 + $0x1f70] sm:$0xff]  ;;  %v1444_v4 = vld [vmem:[#allocation8 + $0x20b8] sm:$0xff]  ;;  %v4176_v57 = vpack.c.bf16 %v928_v52, %v888_v50  ;;  %v1294_v50 = vld [vmem:[#allocation8 + $0x1c08] sm:$0xff] }
 0x27a   :  { %v4074_v8 = vpack.c.bf16 %v1403_v63, %v1363_v62  ;;  %v533_v63 = vld [vmem:[#allocation8 + $0x440] sm:$0xff]  ;;  %v1334_v52 = vld [vmem:[#allocation8 + $0x1d48] sm:$0xff] }
 0x27b   :  { %4055 = vmatpush1.bf16.msra.mxu0 %v4054_v10  ;;  %v4076_v10 = vpack.c.bf16 %v1484_v5, %v1444_v4  ;;  %v574_v4 = vld [vmem:[#allocation8 + $0x588] sm:$0xff] }
 0x27c   :  { %4247 = vmatpush1.bf16.msra.mxu1 %v4246_v11  ;;  %4057 = vmatprep.subr.bf16.mxu0 %v4056_v12  ;;  %v1443_v11 = vld [vmem:[#allocation8 + $0x20b0] sm:$0xff]  ;;  %v614_v5 = vld [vmem:[#allocation8 + $0x6c8] sm:$0xff] }
 0x27d   :  { %4249 = vmatprep.subr.bf16.mxu1 %v4248_v17  ;;  %v1483_v12 = vld [vmem:[#allocation8 + $0x21f0] sm:$0xff]  ;;  %v1524_v17 = vld [vmem:[#allocation8 + $0x2338] sm:$0xff] }
 0x27e   :  { %v4078_v20 = vpack.c.bf16 %v1483_v12, %v1443_v11  ;;  %v573_v11 = vld [vmem:[#allocation8 + $0x580] sm:$0xff]  ;;  %v4352_v12 = vpack.c.bf16 %v614_v5, %v574_v4 }
 0x27f   :  { %4059 = vmatpush1.bf16.msra.mxu0 %v4058_v22  ;;  %v4080_v22 = vpack.c.bf16 %v1564_v18, %v1524_v17  ;;  %v654_v17 = vld [vmem:[#allocation8 + $0x808] sm:$0xff]  ;;  %v4354_v15 = vpack.c.bf16 %v613_v13, %v573_v11  ;;  %v1013_v11 = vld [vmem:[#allocation8 + $0x1340] sm:$0xff]  ;;  %v1088_v13 = vld [vmem:[#allocation8 + $0x1598] sm:$0xff] }
 0x280   :  { %4251 = vmatpush1.bf16.msra.mxu1 %v4250_v23  ;;  %4061 = vmatprep.subr.bf16.mxu0 %v4060_v24  ;;  %v1523_v23 = vld [vmem:[#allocation8 + $0x2330] sm:$0xff]  ;;  %v694_v18 = vld [vmem:[#allocation8 + $0x948] sm:$0xff] }
 0x281   :  { %4253 = vmatprep.subr.bf16.mxu1 %v4252_v28  ;;  %v1563_v24 = vld [vmem:[#allocation8 + $0x2470] sm:$0xff]  ;;  %v1604_v28 = vld [vmem:[#allocation8 + $0x25b8] sm:$0xff] }
 0x282   :  { %v4082_v32 = vpack.c.bf16 %v1563_v24, %v1523_v23  ;;  %v653_v23 = vld [vmem:[#allocation8 + $0x800] sm:$0xff]  ;;  %v4356_v24 = vpack.c.bf16 %v694_v18, %v654_v17 }
 0x283   :  { %4063 = vmatpush1.bf16.msra.mxu0 %v4062_v34  ;;  %v4084_v34 = vpack.c.bf16 %v1644_v29, %v1604_v28  ;;  %v734_v28 = vld [vmem:[#allocation8 + $0xa88] sm:$0xff]  ;;  %v4358_v31 = vpack.c.bf16 %v693_v25, %v653_v23  ;;  %v1093_v23 = vld [vmem:[#allocation8 + $0x15c0] sm:$0xff]  ;;  %v1168_v25 = vld [vmem:[#allocation8 + $0x1818] sm:$0xff] }
 0x284   :  { %4255 = vmatpush1.bf16.msra.mxu1 %v4254_v35  ;;  %4065 = vmatprep.subr.bf16.mxu0 %v4064_v36  ;;  %v1603_v35 = vld [vmem:[#allocation8 + $0x25b0] sm:$0xff]  ;;  %v774_v29 = vld [vmem:[#allocation8 + $0xbc8] sm:$0xff] }
 0x285   :  { %4257 = vmatprep.subr.bf16.mxu1 %v4256_v39  ;;  %v1643_v36 = vld [vmem:[#allocation8 + $0x26f0] sm:$0xff]  ;;  %v408_v39 = vld [vmem:[#allocation8 + $0x58] sm:$0xff] }
 0x286   :  { %v4086_v43 = vpack.c.bf16 %v1643_v36, %v1603_v35  ;;  %v733_v35 = vld [vmem:[#allocation8 + $0xa80] sm:$0xff]  ;;  %v4360_v36 = vpack.c.bf16 %v774_v29, %v734_v28 }
 0x287   :  { %4067 = vmatpush1.bf16.msra.mxu0 %v4066_v45  ;;  %v4152_v45 = vpack.c.bf16 %v448_v40, %v408_v39  ;;  %v814_v39 = vld [vmem:[#allocation8 + $0xd08] sm:$0xff]  ;;  %v4362_v42 = vpack.c.bf16 %v773_v0, %v733_v35  ;;  %v1173_v35 = vld [vmem:[#allocation8 + $0x1840] sm:$0xff]  ;;  %v1248_v0 = vld [vmem:[#allocation8 + $0x1a98] sm:$0xff] }
 0x288   :  { %4259 = vmatpush1.bf16.msra.mxu1 %v4258_v46  ;;  %4069 = vmatprep.subr.bf16.mxu0 %v4068_v48  ;;  %v407_v46 = vld [vmem:[#allocation8 + $0x50] sm:$0xff]  ;;  %v854_v40 = vld [vmem:[#allocation8 + $0xe48] sm:$0xff] }
 0x289   :  { %4261 = vmatprep.subr.bf16.mxu1 %v4260_v53  ;;  %v447_v48 = vld [vmem:[#allocation8 + $0x190] sm:$0xff]  ;;  %v488_v53 = vld [vmem:[#allocation8 + $0x2d8] sm:$0xff] }
 0x28a   :  { %v4154_v55 = vpack.c.bf16 %v447_v48, %v407_v46  ;;  %v4156_v62 = vpack.c.bf16 %v528_v54, %v488_v53  ;;  %v813_v46 = vld [vmem:[#allocation8 + $0xd00] sm:$0xff]  ;;  %v4364_v48 = vpack.c.bf16 %v854_v40, %v814_v39  ;;  %v894_v53 = vld [vmem:[#allocation8 + $0xf88] sm:$0xff] }
 0x28b   :  { %4071 = vmatpush1.bf16.msra.mxu0 %v4070_v59  ;;  %v487_v59 = vld [vmem:[#allocation8 + $0x2d0] sm:$0xff]  ;;  %v934_v54 = vld [vmem:[#allocation8 + $0x10c8] sm:$0xff] }
 0x28c   :  { %4263 = vmatpush1.bf16.msra.mxu1 %v4262_v60  ;;  %4073 = vmatprep.subr.bf16.mxu0 %v4072_v61  ;;  %v527_v60 = vld [vmem:[#allocation8 + $0x410] sm:$0xff]  ;;  %v493_v61 = vld [vmem:[#allocation8 + $0x300] sm:$0xff] }
 0x28d   :  { %4265 = vmatprep.subr.bf16.mxu1 %v4264_v2  ;;  %v608_v2 = vld [vmem:[#allocation8 + $0x698] sm:$0xff]  ;;  %v4158_v6 = vpack.c.bf16 %v527_v60, %v487_v59  ;;  %v4350_v7 = vpack.c.bf16 %v533_v63, %v493_v61  ;;  %v927_v59 = vld [vmem:[#allocation8 + $0x1090] sm:$0xff]  ;;  %v893_v60 = vld [vmem:[#allocation8 + $0xf80] sm:$0xff]  ;;  %v4368_v61 = vpack.c.bf16 %v934_v54, %v894_v53 }
 0x28e   :  { %v968_v63 = vld [vmem:[#allocation8 + $0x11d8] sm:$0xff] }
 0x28f   :  { %4075 = vmatpush1.bf16.msra.mxu0 %v4074_v8  ;;  %v4160_v8 = vpack.c.bf16 %v608_v2, %v568_v1  ;;  %v1008_v1 = vld [vmem:[#allocation8 + $0x1318] sm:$0xff]  ;;  %v974_v2 = vld [vmem:[#allocation8 + $0x1208] sm:$0xff] }
 0x290   :  { %4267 = vmatpush1.bf16.msra.mxu1 %v4266_v9  ;;  %4077 = vmatprep.subr.bf16.mxu0 %v4076_v10  ;;  %v567_v9 = vld [vmem:[#allocation8 + $0x550] sm:$0xff] }
 0x291   :  { %4269 = vmatprep.subr.bf16.mxu1 %v4268_v14  ;;  %v607_v10 = vld [vmem:[#allocation8 + $0x690] sm:$0xff]  ;;  %v648_v14 = vld [vmem:[#allocation8 + $0x7d8] sm:$0xff] }
 0x292   :  { %v4162_v19 = vpack.c.bf16 %v607_v10, %v567_v9  ;;  %v973_v9 = vld [vmem:[#allocation8 + $0x1200] sm:$0xff] }
 0x293   :  { %4079 = vmatpush1.bf16.msra.mxu0 %v4078_v20  ;;  %v4164_v20 = vpack.c.bf16 %v688_v16, %v648_v14  ;;  %v1054_v14 = vld [vmem:[#allocation8 + $0x1488] sm:$0xff]  ;;  %v4374_v18 = vpack.c.bf16 %v1013_v11, %v973_v9  ;;  %v1413_v9 = vld [vmem:[#allocation8 + $0x1fc0] sm:$0xff]  ;;  %v1488_v11 = vld [vmem:[#allocation8 + $0x2218] sm:$0xff] }
 0x294   :  { %4271 = vmatpush1.bf16.msra.mxu1 %v4270_v21  ;;  %4081 = vmatprep.subr.bf16.mxu0 %v4080_v22  ;;  %v647_v21 = vld [vmem:[#allocation8 + $0x7d0] sm:$0xff]  ;;  %v1094_v16 = vld [vmem:[#allocation8 + $0x15c8] sm:$0xff] }
 0x295   :  { %4273 = vmatprep.subr.bf16.mxu1 %v4272_v26  ;;  %v687_v22 = vld [vmem:[#allocation8 + $0x910] sm:$0xff]  ;;  %v728_v26 = vld [vmem:[#allocation8 + $0xa58] sm:$0xff] }
 0x296   :  { %v4166_v30 = vpack.c.bf16 %v687_v22, %v647_v21  ;;  %v1053_v21 = vld [vmem:[#allocation8 + $0x1480] sm:$0xff]  ;;  %v4376_v22 = vpack.c.bf16 %v1094_v16, %v1054_v14 }
 0x297   :  { %4083 = vmatpush1.bf16.msra.mxu0 %v4082_v32  ;;  %v4168_v32 = vpack.c.bf16 %v768_v27, %v728_v26  ;;  %v1134_v26 = vld [vmem:[#allocation8 + $0x1708] sm:$0xff]  ;;  %v4378_v29 = vpack.c.bf16 %v1093_v23, %v1053_v21  ;;  %v1493_v21 = vld [vmem:[#allocation8 + $0x2240] sm:$0xff]  ;;  %v1568_v23 = vld [vmem:[#allocation8 + $0x2498] sm:$0xff] }
 0x298   :  { %4275 = vmatpush1.bf16.msra.mxu1 %v4274_v33  ;;  %4085 = vmatprep.subr.bf16.mxu0 %v4084_v34  ;;  %v727_v33 = vld [vmem:[#allocation8 + $0xa50] sm:$0xff]  ;;  %v1174_v27 = vld [vmem:[#allocation8 + $0x1848] sm:$0xff] }
 0x299   :  { %4277 = vmatprep.subr.bf16.mxu1 %v4276_v37  ;;  %v767_v34 = vld [vmem:[#allocation8 + $0xb90] sm:$0xff]  ;;  %v808_v37 = vld [vmem:[#allocation8 + $0xcd8] sm:$0xff] }
 0x29a   :  { %v4170_v41 = vpack.c.bf16 %v767_v34, %v727_v33  ;;  %v1133_v33 = vld [vmem:[#allocation8 + $0x1700] sm:$0xff]  ;;  %v4380_v34 = vpack.c.bf16 %v1174_v27, %v1134_v26 }
 0x29b   :  { %4087 = vmatpush1.bf16.msra.mxu0 %v4086_v43  ;;  %v4172_v43 = vpack.c.bf16 %v848_v38, %v808_v37  ;;  %v1214_v37 = vld [vmem:[#allocation8 + $0x1988] sm:$0xff]  ;;  %v4382_v40 = vpack.c.bf16 %v1173_v35, %v1133_v33  ;;  %v1573_v33 = vld [vmem:[#allocation8 + $0x24c0] sm:$0xff]  ;;  %v1648_v35 = vld [vmem:[#allocation8 + $0x2718] sm:$0xff] }
 0x29c   :  { %4279 = vmatpush1.bf16.msra.mxu1 %v4278_v44  ;;  %4153 = vmatprep.subr.bf16.mxu0 %v4152_v45  ;;  %v807_v44 = vld [vmem:[#allocation8 + $0xcd0] sm:$0xff]  ;;  %v1254_v38 = vld [vmem:[#allocation8 + $0x1ac8] sm:$0xff] }
 0x29d   :  { %4345 = vmatprep.subr.bf16.mxu1 %v4344_v49  ;;  %v847_v45 = vld [vmem:[#allocation8 + $0xe10] sm:$0xff]  ;;  %v853_v49 = vld [vmem:[#allocation8 + $0xe40] sm:$0xff] }
 0x29e   :  { %3703 = vmatmul.mubr.msk.f32.vlgmr.msra.gmra.mrb[4].mxu0 %vm5341_vm2, %v5256_v51  ;;  %v4366_v56 = vpack.c.bf16 %v853_v49, %v813_v46  ;;  %v1253_v46 = vld [vmem:[#allocation8 + $0x1ac0] sm:$0xff]  ;;  %v1328_v49 = vld [vmem:[#allocation8 + $0x1d18] sm:$0xff] }
 0x29f   :  { %3709 = vmatmul.mubr.msk.f32.vlgmr.msra.gmra.mrb[8].mxu1 %vm5341_vm2, %v5256_v51  ;;  %4155 = vmatpush1.bf16.msra.mxu0 %v4154_v55  ;;  %v4174_v55 = vpack.c.bf16 %v847_v45, %v807_v44  ;;  %v1213_v44 = vld [vmem:[#allocation8 + $0x1980] sm:$0xff]  ;;  %v4384_v45 = vpack.c.bf16 %v1254_v38, %v1214_v37 }
 0x2a0   :  { %3706 = vmatprep.mubr.msk.f32.mxu0 %vm5341_vm2, %v5256_v51  ;;  %4347 = vmatpush1.bf16.msra.mxu1 %v4346_v58  ;;  %v887_v58 = vld [vmem:[#allocation8 + $0xf50] sm:$0xff]  ;;  %v4386_v54 = vpack.c.bf16 %v1253_v46, %v1213_v44  ;;  %v1653_v44 = vld [vmem:[#allocation8 + $0x2740] sm:$0xff]  ;;  %v452_v46 = vld [vmem:[#allocation8 + $0x1b8] sm:$0xff] }
 0x2a1   :  { %3712 = vmatprep.mubr.msk.f32.mxu1 %vm5341_vm2, %v5256_v51  ;;  %4157 = vmatprep.subr.bf16.mxu0 %v4156_v62  ;;  %v933_v62 = vld [vmem:[#allocation8 + $0x10c0] sm:$0xff]  ;;  %v4178_v4 = vpack.c.bf16 %v927_v59, %v887_v58  ;;  %v4388_v59 = vpack.c.bf16 %v1334_v52, %v1294_v50 }
 0x2a2   :  { %4349 = vmatprep.subr.bf16.mxu1 %v4348_v3  ;;  %v1014_v3 = vld [vmem:[#allocation8 + $0x1348] sm:$0xff]  ;;  %v4370_v5 = vpack.c.bf16 %v933_v62, %v893_v60  ;;  %v1293_v58 = vld [vmem:[#allocation8 + $0x1c00] sm:$0xff]  ;;  %v1408_v62 = vld [vmem:[#allocation8 + $0x1f98] sm:$0xff] }
 0x2a3   :  { %4159 = vmatpush1.bf16.msra.mxu0 %v4158_v6  ;;  %v4180_v6 = vpack.c.bf16 %v1008_v1, %v968_v63  ;;  %v4372_v10 = vpack.c.bf16 %v1014_v3, %v974_v2  ;;  %v1333_v60 = vld [vmem:[#allocation8 + $0x1d40] sm:$0xff]  ;;  %v1374_v63 = vld [vmem:[#allocation8 + $0x1e88] sm:$0xff] }
 0x2a4   :  { %4351 = vmatpush1.bf16.msra.mxu1 %v4350_v7  ;;  %4161 = vmatprep.subr.bf16.mxu0 %v4160_v8  ;;  %v967_v7 = vld [vmem:[#allocation8 + $0x11d0] sm:$0xff]  ;;  %v1414_v1 = vld [vmem:[#allocation8 + $0x1fc8] sm:$0xff]  ;;  %v4390_v3 = vpack.c.bf16 %v1333_v60, %v1293_v58  ;;  %v457_v58 = vld [vmem:[#allocation8 + $0x1e0] sm:$0xff] }
 0x2a5   :  { %4353 = vmatprep.subr.bf16.mxu1 %v4352_v12  ;;  %v1007_v8 = vld [vmem:[#allocation8 + $0x1310] sm:$0xff]  ;;  %v1048_v12 = vld [vmem:[#allocation8 + $0x1458] sm:$0xff] }
 0x2a6   :  { %v4182_v17 = vpack.c.bf16 %v1007_v8, %v967_v7  ;;  %v1373_v7 = vld [vmem:[#allocation8 + $0x1e80] sm:$0xff]  ;;  %v4392_v8 = vpack.c.bf16 %v1414_v1, %v1374_v63  ;;  %v532_v60 = vld [vmem:[#allocation8 + $0x438] sm:$0xff]  ;;  %v538_v63 = vld [vmem:[#allocation8 + $0x468] sm:$0xff] }
 0x2a7   :  { %4163 = vmatpush1.bf16.msra.mxu0 %v4162_v19  ;;  %v4184_v19 = vpack.c.bf16 %v1088_v13, %v1048_v12  ;;  %v1454_v12 = vld [vmem:[#allocation8 + $0x2108] sm:$0xff]  ;;  %v4394_v16 = vpack.c.bf16 %v1413_v9, %v1373_v7  ;;  %v572_v7 = vld [vmem:[#allocation8 + $0x578] sm:$0xff] }
 0x2a8   :  { %4355 = vmatpush1.bf16.msra.mxu1 %v4354_v15  ;;  %4165 = vmatprep.subr.bf16.mxu0 %v4164_v20  ;;  %v1047_v15 = vld [vmem:[#allocation8 + $0x1450] sm:$0xff]  ;;  %v1494_v13 = vld [vmem:[#allocation8 + $0x2248] sm:$0xff] }
 0x2a9   :  { %4357 = vmatprep.subr.bf16.mxu1 %v4356_v24  ;;  %v1087_v20 = vld [vmem:[#allocation8 + $0x1590] sm:$0xff]  ;;  %v1128_v24 = vld [vmem:[#allocation8 + $0x16d8] sm:$0xff] }
 0x2aa   :  { %v4186_v28 = vpack.c.bf16 %v1087_v20, %v1047_v15  ;;  %v1453_v15 = vld [vmem:[#allocation8 + $0x2100] sm:$0xff]  ;;  %v4396_v20 = vpack.c.bf16 %v1494_v13, %v1454_v12 }
 0x2ab   :  { %4167 = vmatpush1.bf16.msra.mxu0 %v4166_v30  ;;  %v4188_v30 = vpack.c.bf16 %v1168_v25, %v1128_v24  ;;  %v1534_v24 = vld [vmem:[#allocation8 + $0x2388] sm:$0xff]  ;;  %v4398_v27 = vpack.c.bf16 %v1493_v21, %v1453_v15  ;;  %v617_v15 = vld [vmem:[#allocation8 + $0x6e0] sm:$0xff]  ;;  %v692_v21 = vld [vmem:[#allocation8 + $0x938] sm:$0xff] }
 0x2ac   :  { %4359 = vmatpush1.bf16.msra.mxu1 %v4358_v31  ;;  %4169 = vmatprep.subr.bf16.mxu0 %v4168_v32  ;;  %v1127_v31 = vld [vmem:[#allocation8 + $0x16d0] sm:$0xff]  ;;  %v1574_v25 = vld [vmem:[#allocation8 + $0x24c8] sm:$0xff] }
 0x2ad   :  { %4361 = vmatprep.subr.bf16.mxu1 %v4360_v36  ;;  %v1167_v32 = vld [vmem:[#allocation8 + $0x1810] sm:$0xff]  ;;  %v1208_v36 = vld [vmem:[#allocation8 + $0x1958] sm:$0xff] }
 0x2ae   :  { %v4190_v39 = vpack.c.bf16 %v1167_v32, %v1127_v31  ;;  %v1533_v31 = vld [vmem:[#allocation8 + $0x2380] sm:$0xff]  ;;  %v4400_v32 = vpack.c.bf16 %v1574_v25, %v1534_v24 }
 0x2af   :  { %4171 = vmatpush1.bf16.msra.mxu0 %v4170_v41  ;;  %v4192_v41 = vpack.c.bf16 %v1248_v0, %v1208_v36  ;;  %v1614_v36 = vld [vmem:[#allocation8 + $0x2608] sm:$0xff]  ;;  %v4402_v38 = vpack.c.bf16 %v1573_v33, %v1533_v31  ;;  %v697_v31 = vld [vmem:[#allocation8 + $0x960] sm:$0xff]  ;;  %v772_v33 = vld [vmem:[#allocation8 + $0xbb8] sm:$0xff] }
 0x2b0   :  { %4363 = vmatpush1.bf16.msra.mxu1 %v4362_v42  ;;  %4173 = vmatprep.subr.bf16.mxu0 %v4172_v43  ;;  %v1207_v42 = vld [vmem:[#allocation8 + $0x1950] sm:$0xff]  ;;  %v1654_v0 = vld [vmem:[#allocation8 + $0x2748] sm:$0xff] }
 0x2b1   :  { %4365 = vmatprep.subr.bf16.mxu1 %v4364_v48  ;;  %v1247_v43 = vld [vmem:[#allocation8 + $0x1a90] sm:$0xff]  ;;  %v1288_v48 = vld [vmem:[#allocation8 + $0x1bd8] sm:$0xff] }
 0x2b2   :  { %v4194_v53 = vpack.c.bf16 %v1247_v43, %v1207_v42  ;;  %v1613_v42 = vld [vmem:[#allocation8 + $0x2600] sm:$0xff]  ;;  %v4404_v43 = vpack.c.bf16 %v1654_v0, %v1614_v36 }
 0x2b3   :  { %4175 = vmatpush1.bf16.msra.mxu0 %v4174_v55  ;;  %v4196_v55 = vpack.c.bf16 %v1328_v49, %v1288_v48  ;;  %v418_v48 = vld [vmem:[#allocation8 + $0xa8] sm:$0xff]  ;;  %v4406_v52 = vpack.c.bf16 %v1653_v44, %v1613_v42  ;;  %v777_v42 = vld [vmem:[#allocation8 + $0xbe0] sm:$0xff]  ;;  %v852_v44 = vld [vmem:[#allocation8 + $0xe38] sm:$0xff] }
 0x2b4   :  { %4367 = vmatpush1.bf16.msra.mxu1 %v4366_v56  ;;  %4177 = vmatprep.subr.bf16.mxu0 %v4176_v57  ;;  %v1287_v56 = vld [vmem:[#allocation8 + $0x1bd0] sm:$0xff]  ;;  %v458_v49 = vld [vmem:[#allocation8 + $0x1e8] sm:$0xff] }
 0x2b5   :  { %4369 = vmatprep.subr.bf16.mxu1 %v4368_v61  ;;  %v1327_v57 = vld [vmem:[#allocation8 + $0x1d10] sm:$0xff]  ;;  %v1368_v61 = vld [vmem:[#allocation8 + $0x1e58] sm:$0xff] }
 0x2b6   :  { %v4198_v2 = vpack.c.bf16 %v1327_v57, %v1287_v56  ;;  %v4472_v56 = vpack.c.bf16 %v458_v49, %v418_v48  ;;  %v417_v57 = vld [vmem:[#allocation8 + $0xa0] sm:$0xff] }
 0x2b7   :  { %4179 = vmatpush1.bf16.msra.mxu0 %v4178_v4  ;;  %v4200_v4 = vpack.c.bf16 %v1408_v62, %v1368_v61  ;;  %v498_v62 = vld [vmem:[#allocation8 + $0x328] sm:$0xff]  ;;  %v4474_v1 = vpack.c.bf16 %v457_v58, %v417_v57  ;;  %v892_v57 = vld [vmem:[#allocation8 + $0xf78] sm:$0xff] }
 0x2b8   :  { %4371 = vmatpush1.bf16.msra.mxu1 %v4370_v5  ;;  %4181 = vmatprep.subr.bf16.mxu0 %v4180_v6  ;;  %v1367_v5 = vld [vmem:[#allocation8 + $0x1e50] sm:$0xff]  ;;  %v4476_v9 = vpack.c.bf16 %v538_v63, %v498_v62  ;;  %v932_v58 = vld [vmem:[#allocation8 + $0x10b8] sm:$0xff] }
 0x2b9   :  { %4373 = vmatprep.subr.bf16.mxu1 %v4372_v10  ;;  %v1407_v6 = vld [vmem:[#allocation8 + $0x1f90] sm:$0xff]  ;;  %v1448_v10 = vld [vmem:[#allocation8 + $0x20d8] sm:$0xff]  ;;  %v4304_v63 = vpack.c.bf16 %v932_v58, %v892_v57  ;;  %v1218_v57 = vld [vmem:[#allocation8 + $0x19a8] sm:$0xff] }
 0x2ba   :  { %v4202_v14 = vpack.c.bf16 %v1407_v6, %v1367_v5  ;;  %v537_v6 = vld [vmem:[#allocation8 + $0x460] sm:$0xff]  ;;  %v1258_v58 = vld [vmem:[#allocation8 + $0x1ae8] sm:$0xff] }
 0x2bb   :  { %4183 = vmatpush1.bf16.msra.mxu0 %v4182_v17  ;;  %v4204_v17 = vpack.c.bf16 %v1488_v11, %v1448_v10  ;;  %v578_v10 = vld [vmem:[#allocation8 + $0x5a8] sm:$0xff] }
 0x2bc   :  { %4375 = vmatpush1.bf16.msra.mxu1 %v4374_v18  ;;  %4185 = vmatprep.subr.bf16.mxu0 %v4184_v19  ;;  %v1447_v18 = vld [vmem:[#allocation8 + $0x20d0] sm:$0xff]  ;;  %v618_v11 = vld [vmem:[#allocation8 + $0x6e8] sm:$0xff] }
 0x2bd   :  { %4377 = vmatprep.subr.bf16.mxu1 %v4376_v22  ;;  %v1487_v19 = vld [vmem:[#allocation8 + $0x2210] sm:$0xff]  ;;  %v1528_v22 = vld [vmem:[#allocation8 + $0x2358] sm:$0xff] }
 0x2be   :  { %v4206_v26 = vpack.c.bf16 %v1487_v19, %v1447_v18  ;;  %v577_v18 = vld [vmem:[#allocation8 + $0x5a0] sm:$0xff]  ;;  %v4480_v19 = vpack.c.bf16 %v618_v11, %v578_v10 }
 0x2bf   :  { %4187 = vmatpush1.bf16.msra.mxu0 %v4186_v28  ;;  %v4208_v28 = vpack.c.bf16 %v1568_v23, %v1528_v22  ;;  %v658_v22 = vld [vmem:[#allocation8 + $0x828] sm:$0xff]  ;;  %v4482_v25 = vpack.c.bf16 %v617_v15, %v577_v18 }
 0x2c0   :  { %4379 = vmatpush1.bf16.msra.mxu1 %v4378_v29  ;;  %4189 = vmatprep.subr.bf16.mxu0 %v4188_v30  ;;  %v1527_v29 = vld [vmem:[#allocation8 + $0x2350] sm:$0xff]  ;;  %v698_v23 = vld [vmem:[#allocation8 + $0x968] sm:$0xff] }
 0x2c1   :  { %4381 = vmatprep.subr.bf16.mxu1 %v4380_v34  ;;  %v1567_v30 = vld [vmem:[#allocation8 + $0x2490] sm:$0xff]  ;;  %v1608_v34 = vld [vmem:[#allocation8 + $0x25d8] sm:$0xff] }
 0x2c2   :  { %v4210_v37 = vpack.c.bf16 %v1567_v30, %v1527_v29  ;;  %v657_v29 = vld [vmem:[#allocation8 + $0x820] sm:$0xff]  ;;  %v4484_v30 = vpack.c.bf16 %v698_v23, %v658_v22  ;;  %v1011_v22 = vld [vmem:[#allocation8 + $0x1330] sm:$0xff] }
 0x2c3   :  { %4191 = vmatpush1.bf16.msra.mxu0 %v4190_v39  ;;  %v4212_v39 = vpack.c.bf16 %v1648_v35, %v1608_v34  ;;  %v738_v34 = vld [vmem:[#allocation8 + $0xaa8] sm:$0xff]  ;;  %v4486_v0 = vpack.c.bf16 %v697_v31, %v657_v29  ;;  %v977_v23 = vld [vmem:[#allocation8 + $0x1220] sm:$0xff]  ;;  %v1092_v29 = vld [vmem:[#allocation8 + $0x15b8] sm:$0xff] }
 0x2c4   :  { %4383 = vmatpush1.bf16.msra.mxu1 %v4382_v40  ;;  %4193 = vmatprep.subr.bf16.mxu0 %v4192_v41  ;;  %v1607_v40 = vld [vmem:[#allocation8 + $0x25d0] sm:$0xff]  ;;  %v778_v35 = vld [vmem:[#allocation8 + $0xbe8] sm:$0xff] }
 0x2c5   :  { %4385 = vmatprep.subr.bf16.mxu1 %v4384_v45  ;;  %v1647_v41 = vld [vmem:[#allocation8 + $0x2710] sm:$0xff]  ;;  %v412_v45 = vld [vmem:[#allocation8 + $0x78] sm:$0xff]  ;;  %v1098_v31 = vld [vmem:[#allocation8 + $0x15e8] sm:$0xff] }
 0x2c6   :  { %v4214_v50 = vpack.c.bf16 %v1647_v41, %v1607_v40  ;;  %v737_v40 = vld [vmem:[#allocation8 + $0xaa0] sm:$0xff]  ;;  %v4488_v41 = vpack.c.bf16 %v778_v35, %v738_v34 }
 0x2c7   :  { %4195 = vmatpush1.bf16.msra.mxu0 %v4194_v53  ;;  %v4280_v53 = vpack.c.bf16 %v452_v46, %v412_v45  ;;  %v818_v45 = vld [vmem:[#allocation8 + $0xd28] sm:$0xff]  ;;  %v4490_v49 = vpack.c.bf16 %v777_v42, %v737_v40  ;;  %v1097_v40 = vld [vmem:[#allocation8 + $0x15e0] sm:$0xff]  ;;  %v1172_v42 = vld [vmem:[#allocation8 + $0x1838] sm:$0xff] }
 0x2c8   :  { %4387 = vmatpush1.bf16.msra.mxu1 %v4386_v54  ;;  %4197 = vmatprep.subr.bf16.mxu0 %v4196_v55  ;;  %v411_v54 = vld [vmem:[#allocation8 + $0x70] sm:$0xff]  ;;  %v858_v46 = vld [vmem:[#allocation8 + $0xe68] sm:$0xff] }
 0x2c9   :  { %4389 = vmatprep.subr.bf16.mxu1 %v4388_v59  ;;  %v451_v55 = vld [vmem:[#allocation8 + $0x1b0] sm:$0xff]  ;;  %v492_v59 = vld [vmem:[#allocation8 + $0x2f8] sm:$0xff] }
 0x2ca   :  { %v4282_v61 = vpack.c.bf16 %v451_v55, %v411_v54  ;;  %v4284_v5 = vpack.c.bf16 %v532_v60, %v492_v59  ;;  %v817_v54 = vld [vmem:[#allocation8 + $0xd20] sm:$0xff]  ;;  %v4492_v55 = vpack.c.bf16 %v858_v46, %v818_v45  ;;  %v898_v59 = vld [vmem:[#allocation8 + $0xfa8] sm:$0xff] }
 0x2cb   :  { %4199 = vmatpush1.bf16.msra.mxu0 %v4198_v2  ;;  %v491_v2 = vld [vmem:[#allocation8 + $0x2f0] sm:$0xff]  ;;  %v938_v60 = vld [vmem:[#allocation8 + $0x10e8] sm:$0xff] }
 0x2cc   :  { %4391 = vmatpush1.bf16.msra.mxu1 %v4390_v3  ;;  %4201 = vmatprep.subr.bf16.mxu0 %v4200_v4  ;;  %v531_v3 = vld [vmem:[#allocation8 + $0x430] sm:$0xff]  ;;  %v497_v4 = vld [vmem:[#allocation8 + $0x320] sm:$0xff] }
 0x2cd   :  { %4393 = vmatprep.subr.bf16.mxu1 %v4392_v8  ;;  %v612_v8 = vld [vmem:[#allocation8 + $0x6b8] sm:$0xff]  ;;  %v4286_v12 = vpack.c.bf16 %v531_v3, %v491_v2  ;;  %v4478_v13 = vpack.c.bf16 %v537_v6, %v497_v4  ;;  %v931_v2 = vld [vmem:[#allocation8 + $0x10b0] sm:$0xff]  ;;  %v897_v3 = vld [vmem:[#allocation8 + $0xfa0] sm:$0xff]  ;;  %v4496_v6 = vpack.c.bf16 %v938_v60, %v898_v59 }
 0x2cf   :  { %4203 = vmatpush1.bf16.msra.mxu0 %v4202_v14  ;;  %v4288_v14 = vpack.c.bf16 %v612_v8, %v572_v7  ;;  %v937_v7 = vld [vmem:[#allocation8 + $0x10e0] sm:$0xff]  ;;  %v972_v8 = vld [vmem:[#allocation8 + $0x11f8] sm:$0xff] }
 0x2d0   :  { %4395 = vmatpush1.bf16.msra.mxu1 %v4394_v16  ;;  %4205 = vmatprep.subr.bf16.mxu0 %v4204_v17  ;;  %v571_v16 = vld [vmem:[#allocation8 + $0x570] sm:$0xff] }
 0x2d1   :  { %4397 = vmatprep.subr.bf16.mxu1 %v4396_v20  ;;  %v611_v17 = vld [vmem:[#allocation8 + $0x6b0] sm:$0xff]  ;;  %v652_v20 = vld [vmem:[#allocation8 + $0x7f8] sm:$0xff] }
 0x2d2   :  { %v4290_v24 = vpack.c.bf16 %v611_v17, %v571_v16 }
 0x2d3   :  { %4207 = vmatpush1.bf16.msra.mxu0 %v4206_v26  ;;  %v4292_v26 = vpack.c.bf16 %v692_v21, %v652_v20  ;;  %v971_v21 = vld [vmem:[#allocation8 + $0x11f0] sm:$0xff] }
 0x2d4   :  { %4399 = vmatpush1.bf16.msra.mxu1 %v4398_v27  ;;  %4209 = vmatprep.subr.bf16.mxu0 %v4208_v28  ;;  %v651_v27 = vld [vmem:[#allocation8 + $0x7f0] sm:$0xff] }
 0x2d5   :  { %4401 = vmatprep.subr.bf16.mxu1 %v4400_v32  ;;  %v691_v28 = vld [vmem:[#allocation8 + $0x930] sm:$0xff]  ;;  %v732_v32 = vld [vmem:[#allocation8 + $0xa78] sm:$0xff] }
 0x2d6   :  { %v4294_v36 = vpack.c.bf16 %v691_v28, %v651_v27  ;;  %v1017_v27 = vld [vmem:[#allocation8 + $0x1360] sm:$0xff]  ;;  %v1052_v28 = vld [vmem:[#allocation8 + $0x1478] sm:$0xff] }
 0x2d7   :  { %4211 = vmatpush1.bf16.msra.mxu0 %v4210_v37  ;;  %v4296_v37 = vpack.c.bf16 %v772_v33, %v732_v32  ;;  %v4310_v32 = vpack.c.bf16 %v1011_v22, %v971_v21  ;;  %v4502_v33 = vpack.c.bf16 %v1017_v27, %v977_v23  ;;  %v4312_v35 = vpack.c.bf16 %v1092_v29, %v1052_v28  ;;  %v1412_v21 = vld [vmem:[#allocation8 + $0x1fb8] sm:$0xff]  ;;  %v1378_v22 = vld [vmem:[#allocation8 + $0x1ea8] sm:$0xff]  ;;  %v1371_v27 = vld [vmem:[#allocation8 + $0x1e70] sm:$0xff] }
 0x2d8   :  { %4403 = vmatpush1.bf16.msra.mxu1 %v4402_v38  ;;  %4213 = vmatprep.subr.bf16.mxu0 %v4212_v39  ;;  %v731_v38 = vld [vmem:[#allocation8 + $0xa70] sm:$0xff]  ;;  %v1418_v23 = vld [vmem:[#allocation8 + $0x1fe8] sm:$0xff]  ;;  %v1377_v29 = vld [vmem:[#allocation8 + $0x1ea0] sm:$0xff] }
 0x2d9   :  { %4405 = vmatprep.subr.bf16.mxu1 %v4404_v43  ;;  %v771_v39 = vld [vmem:[#allocation8 + $0xbb0] sm:$0xff]  ;;  %v812_v43 = vld [vmem:[#allocation8 + $0xcf8] sm:$0xff] }
 0x2da   :  { %v4298_v48 = vpack.c.bf16 %v771_v39, %v731_v38  ;;  %v1411_v28 = vld [vmem:[#allocation8 + $0x1fb0] sm:$0xff] }
 0x2db   :  { %4215 = vmatpush1.bf16.msra.mxu0 %v4214_v50  ;;  %v4300_v50 = vpack.c.bf16 %v852_v44, %v812_v43  ;;  %v1138_v43 = vld [vmem:[#allocation8 + $0x1728] sm:$0xff] }
 0x2dc   :  { %4407 = vmatpush1.bf16.msra.mxu1 %v4406_v52  ;;  %4281 = vmatprep.subr.bf16.mxu0 %v4280_v53  ;;  %v811_v52 = vld [vmem:[#allocation8 + $0xcf0] sm:$0xff]  ;;  %v1178_v44 = vld [vmem:[#allocation8 + $0x1868] sm:$0xff] }
 0x2dd   :  { %4473 = vmatprep.subr.bf16.mxu1 %v4472_v56  ;;  %v851_v53 = vld [vmem:[#allocation8 + $0xe30] sm:$0xff]  ;;  %v857_v56 = vld [vmem:[#allocation8 + $0xe60] sm:$0xff] }
 0x2de   :  { %3707 = vmatmul.mubr.msk.f32.vlgmr.msra.gmra.mrb[6].mxu0 %vm5341_vm2, %v5256_v51  ;;  %v4494_v62 = vpack.c.bf16 %v857_v56, %v817_v54  ;;  %v1177_v54 = vld [vmem:[#allocation8 + $0x1860] sm:$0xff]  ;;  %v1252_v56 = vld [vmem:[#allocation8 + $0x1ab8] sm:$0xff] }
 0x2df   :  { %3713 = vmatmul.mubr.msk.f32.vlgmr.msra.gmra.mrb[10].mxu1 %vm5341_vm2, %v5256_v51  ;;  %4283 = vmatpush1.bf16.msra.mxu0 %v4282_v61  ;;  %v4302_v61 = vpack.c.bf16 %v851_v53, %v811_v52  ;;  %v1137_v52 = vld [vmem:[#allocation8 + $0x1720] sm:$0xff]  ;;  %v4508_v53 = vpack.c.bf16 %v1178_v44, %v1138_v43  ;;  %v1532_v43 = vld [vmem:[#allocation8 + $0x2378] sm:$0xff] }
 0x2e0   :  { %3710 = vmatprep.mubr.msk.f32.mxu0 %vm5341_vm2, %v5256_v51  ;;  %4475 = vmatpush1.bf16.msra.mxu1 %v4474_v1  ;;  %v891_v1 = vld [vmem:[#allocation8 + $0xf70] sm:$0xff]  ;;  %v4510_v60 = vpack.c.bf16 %v1177_v54, %v1137_v52  ;;  %v1572_v44 = vld [vmem:[#allocation8 + $0x24b8] sm:$0xff]  ;;  %v1537_v54 = vld [vmem:[#allocation8 + $0x23a0] sm:$0xff] }
 0x2e1   :  { %3716 = vmatprep.mubr.msk.f32.mxu1 %vm5341_vm2, %v5256_v51  ;;  %4285 = vmatprep.subr.bf16.mxu0 %v4284_v5  ;;  %v4306_v16 = vpack.c.bf16 %v931_v2, %v891_v1  ;;  %v1217_v1 = vld [vmem:[#allocation8 + $0x19a0] sm:$0xff]  ;;  %v4512_v2 = vpack.c.bf16 %v1258_v58, %v1218_v57  ;;  %v1531_v52 = vld [vmem:[#allocation8 + $0x2370] sm:$0xff]  ;;  %v1612_v57 = vld [vmem:[#allocation8 + $0x25f8] sm:$0xff] }
 0x2e2   :  { %4477 = vmatprep.subr.bf16.mxu1 %v4476_v9  ;;  %v1012_v9 = vld [vmem:[#allocation8 + $0x1338] sm:$0xff] }
 0x2e3   :  { %4287 = vmatpush1.bf16.msra.mxu0 %v4286_v12  ;;  %v4308_v20 = vpack.c.bf16 %v1012_v9, %v972_v8  ;;  %v1298_v8 = vld [vmem:[#allocation8 + $0x1c28] sm:$0xff]  ;;  %v1652_v58 = vld [vmem:[#allocation8 + $0x2738] sm:$0xff] }
 0x2e4   :  { %4479 = vmatpush1.bf16.msra.mxu1 %v4478_v13  ;;  %4289 = vmatprep.subr.bf16.mxu0 %v4288_v14  ;;  %v978_v13 = vld [vmem:[#allocation8 + $0x1228] sm:$0xff] }
 0x2e5   :  { %4481 = vmatprep.subr.bf16.mxu1 %v4480_v19  ;;  %v1018_v14 = vld [vmem:[#allocation8 + $0x1368] sm:$0xff]  ;;  %v4498_v19 = vpack.c.bf16 %v937_v7, %v897_v3  ;;  %v1257_v3 = vld [vmem:[#allocation8 + $0x1ae0] sm:$0xff]  ;;  %v1332_v7 = vld [vmem:[#allocation8 + $0x1d38] sm:$0xff] }
 0x2e6   :  { %v1338_v9 = vld [vmem:[#allocation8 + $0x1d68] sm:$0xff] }
 0x2e7   :  { %4291 = vmatpush1.bf16.msra.mxu0 %v4290_v24 }
 0x2e8   :  { %4483 = vmatpush1.bf16.msra.mxu1 %v4482_v25  ;;  %4293 = vmatprep.subr.bf16.mxu0 %v4292_v26  ;;  %v4500_v26 = vpack.c.bf16 %v1018_v14, %v978_v13  ;;  %v4514_v13 = vpack.c.bf16 %v1257_v3, %v1217_v1  ;;  %v1611_v1 = vld [vmem:[#allocation8 + $0x25f0] sm:$0xff]  ;;  %v1617_v3 = vld [vmem:[#allocation8 + $0x2620] sm:$0xff] }
 0x2e9   :  { %4485 = vmatprep.subr.bf16.mxu1 %v4484_v30  ;;  %v1058_v30 = vld [vmem:[#allocation8 + $0x14a8] sm:$0xff] }
 0x2ea   :  { %v4504_v39 = vpack.c.bf16 %v1098_v31, %v1058_v30  ;;  %v4520_v30 = vpack.c.bf16 %v1418_v23, %v1378_v22  ;;  %v1417_v31 = vld [vmem:[#allocation8 + $0x1fe0] sm:$0xff]  ;;  %v496_v22 = vld [vmem:[#allocation8 + $0x318] sm:$0xff] }
 0x2eb   :  { %4295 = vmatpush1.bf16.msra.mxu0 %v4294_v36  ;;  %v1051_v36 = vld [vmem:[#allocation8 + $0x1470] sm:$0xff]  ;;  %v536_v23 = vld [vmem:[#allocation8 + $0x458] sm:$0xff] }
 0x2ec   :  { %4487 = vmatpush1.bf16.msra.mxu1 %v4486_v0  ;;  %4297 = vmatprep.subr.bf16.mxu0 %v4296_v37  ;;  %v1091_v0 = vld [vmem:[#allocation8 + $0x15b0] sm:$0xff]  ;;  %v1057_v37 = vld [vmem:[#allocation8 + $0x14a0] sm:$0xff] }
 0x2ed   :  { %4489 = vmatprep.subr.bf16.mxu1 %v4488_v41  ;;  %v1132_v41 = vld [vmem:[#allocation8 + $0x16f8] sm:$0xff]  ;;  %v4314_v45 = vpack.c.bf16 %v1091_v0, %v1051_v36  ;;  %v4506_v46 = vpack.c.bf16 %v1097_v40, %v1057_v37  ;;  %v4330_v36 = vpack.c.bf16 %v1411_v28, %v1371_v27  ;;  %v4522_v0 = vpack.c.bf16 %v1417_v31, %v1377_v29  ;;  %v1457_v40 = vld [vmem:[#allocation8 + $0x2120] sm:$0xff]  ;;  %v495_v28 = vld [vmem:[#allocation8 + $0x310] sm:$0xff] }
 0x2ee   :  { %v535_v29 = vld [vmem:[#allocation8 + $0x450] sm:$0xff]  ;;  %v4412_v31 = vpack.c.bf16 %v536_v23, %v496_v22  ;;  %v861_v23 = vld [vmem:[#allocation8 + $0xe80] sm:$0xff] }
 0x2ef   :  { %4299 = vmatpush1.bf16.msra.mxu0 %v4298_v48  ;;  %v4316_v48 = vpack.c.bf16 %v1172_v42, %v1132_v41  ;;  %v1497_v42 = vld [vmem:[#allocation8 + $0x2260] sm:$0xff] }
 0x2f0   :  { %4491 = vmatpush1.bf16.msra.mxu1 %v4490_v49  ;;  %4301 = vmatprep.subr.bf16.mxu0 %v4300_v50  ;;  %v1131_v49 = vld [vmem:[#allocation8 + $0x16f0] sm:$0xff] }
 0x2f1   :  { %v5399_v4 = vpop.f32.mrb[0].mxu0  ;;  %v5401_v5 = vpop.f32.mrb[4].mxu1  ;;  %4493 = vmatprep.subr.bf16.mxu1 %v4492_v55  ;;  %v1171_v50 = vld [vmem:[#allocation8 + $0x1830] sm:$0xff]  ;;  %v1212_v55 = vld [vmem:[#allocation8 + $0x1978] sm:$0xff] }
 0x2f2   :  { %v5403_v10 = vpop.f32.mrb[1].mxu0  ;;  %v5405_v11 = vpop.f32.mrb[5].mxu1  ;;  %v3157_v12 = vadd.f32 1.0, %v5399_v4  ;;  %v3161_v18 = vadd.f32 1.0, %v5401_v5  ;;  %v4318_v59 = vpack.c.bf16 %v1171_v50, %v1131_v49  ;;  %v4526_v49 = vpack.c.bf16 %v1497_v42, %v1457_v40  ;;  %v575_v40 = vld [vmem:[#allocation8 + $0x590] sm:$0xff]  ;;  %v581_v42 = vld [vmem:[#allocation8 + $0x5c0] sm:$0xff] }
 0x2f3   :  { %4303 = vmatpush1.bf16.msra.mxu0 %v4302_v61  ;;  %v3158_v17 = vadd.f32 1.0, %v5403_v10  ;;  %v3162_v24 = vadd.f32 1.0, %v5405_v11  ;;  %v4320_v61 = vpack.c.bf16 %v1252_v56, %v1212_v55  ;;  %v4336_v50 = vpack.c.bf16 %v1572_v44, %v1532_v43  ;;  %v1577_v56 = vld [vmem:[#allocation8 + $0x24e0] sm:$0xff] }
 0x2f4   :  { %4495 = vmatpush1.bf16.msra.mxu1 %v4494_v62  ;;  %4305 = vmatprep.subr.bf16.mxu0 %v4304_v63  ;;  %v3177_v15 = vsub.f32 0.0, %v3157_v12  ;;  %v3181_v34 = vsub.f32 0.0, %v3161_v18  ;;  %v1211_v62 = vld [vmem:[#allocation8 + $0x1970] sm:$0xff]  ;;  %v1297_v18 = vld [vmem:[#allocation8 + $0x1c20] sm:$0xff] }
 0x2f5   :  { %4497 = vmatprep.subr.bf16.mxu1 %v4496_v6  ;;  %v3178_v25 = vsub.f32 0.0, %v3158_v17  ;;  %v3182_v38 = vsub.f32 0.0, %v3162_v24  ;;  %v1251_v63 = vld [vmem:[#allocation8 + $0x1ab0] sm:$0xff]  ;;  %v1292_v6 = vld [vmem:[#allocation8 + $0x1bf8] sm:$0xff]  ;;  %v621_v44 = vld [vmem:[#allocation8 + $0x700] sm:$0xff] }
 0x2f6   :  { %3299 = vrot.lane.b32.xlu0 %v3177_v15, %s5257_s3  ;;  %v4322_v12 = vpack.c.bf16 %v1251_v63, %v1211_v62  ;;  %v4324_v14 = vpack.c.bf16 %v1332_v7, %v1292_v6  ;;  %v1331_v17 = vld [vmem:[#allocation8 + $0x1d30] sm:$0xff]  ;;  %v1337_v15 = vld [vmem:[#allocation8 + $0x1d60] sm:$0xff]  ;;  %v4530_v62 = vpack.c.bf16 %v1577_v56, %v1537_v54  ;;  %v4340_v63 = vpack.c.bf16 %v1652_v58, %v1612_v57 }
 0x2f7   :  { %4307 = vmatpush1.bf16.msra.mxu0 %v4306_v16  ;;  %3301 = vrot.lane.b32.xlu1 %v3178_v25, %s5257_s3  ;;  %v1291_v16 = vld [vmem:[#allocation8 + $0x1bf0] sm:$0xff]  ;;  %v4518_v25 = vpack.c.bf16 %v1337_v15, %v1297_v18  ;;  %v1657_v7 = vld [vmem:[#allocation8 + $0x2760] sm:$0xff] }
 0x2f8   :  { %4499 = vmatpush1.bf16.msra.mxu1 %v4498_v19  ;;  %4309 = vmatprep.subr.bf16.mxu0 %v4308_v20  ;;  %v4516_v19 = vpack.c.bf16 %v1338_v9, %v1298_v8  ;;  %v1372_v20 = vld [vmem:[#allocation8 + $0x1e78] sm:$0xff]  ;;  %v4326_v24 = vpack.c.bf16 %v1331_v17, %v1291_v16  ;;  %v4534_v16 = vpack.c.bf16 %v1657_v7, %v1617_v3  ;;  %v415_v18 = vld [vmem:[#allocation8 + $0x90] sm:$0xff]  ;;  %v661_v56 = vld [vmem:[#allocation8 + $0x840] sm:$0xff] }
 0x2f9   :  { %4501 = vmatprep.subr.bf16.mxu1 %v4500_v26  ;;  %v4328_v26 = vpack.c.bf16 %v1412_v21, %v1372_v20  ;;  %v416_v8 = vld [vmem:[#allocation8 + $0x98] sm:$0xff]  ;;  %v421_v20 = vld [vmem:[#allocation8 + $0xc0] sm:$0xff]  ;;  %v655_v54 = vld [vmem:[#allocation8 + $0x810] sm:$0xff] }
 0x2fa   :  { %3307 = vrot.lane.b32.xlu0 %v3181_v34, %s5257_s3  ;;  %v1458_v34 = vld [vmem:[#allocation8 + $0x2128] sm:$0xff]  ;;  %v456_v9 = vld [vmem:[#allocation8 + $0x1d8] sm:$0xff]  ;;  %v461_v21 = vld [vmem:[#allocation8 + $0x200] sm:$0xff] }
 0x2fb   :  { %4311 = vmatpush1.bf16.msra.mxu0 %v4310_v32  ;;  %3309 = vrot.lane.b32.xlu1 %v3182_v38, %s5257_s3  ;;  %v1452_v32 = vld [vmem:[#allocation8 + $0x20f8] sm:$0xff]  ;;  %v1451_v38 = vld [vmem:[#allocation8 + $0x20f0] sm:$0xff]  ;;  %v4408_v17 = vpack.c.bf16 %v456_v9, %v416_v8  ;;  %v4602_v27 = vpack.c.bf16 %v461_v21, %v421_v20  ;;  %v701_v58 = vld [vmem:[#allocation8 + $0x980] sm:$0xff] }
 0x2fc   :  { %4503 = vmatpush1.bf16.msra.mxu1 %v4502_v33  ;;  %4313 = vmatprep.subr.bf16.mxu0 %v4312_v35  ;;  %v1492_v33 = vld [vmem:[#allocation8 + $0x2238] sm:$0xff]  ;;  %v1498_v35 = vld [vmem:[#allocation8 + $0x2268] sm:$0xff]  ;;  %v735_v3 = vld [vmem:[#allocation8 + $0xa90] sm:$0xff] }
 0x2fd   :  { %4505 = vmatprep.subr.bf16.mxu1 %v4504_v39  ;;  %v4332_v37 = vpack.c.bf16 %v1492_v33, %v1452_v32  ;;  %v1491_v39 = vld [vmem:[#allocation8 + $0x2230] sm:$0xff]  ;;  %v4524_v41 = vpack.c.bf16 %v1498_v35, %v1458_v34  ;;  %v541_v32 = vld [vmem:[#allocation8 + $0x480] sm:$0xff]  ;;  %v576_v33 = vld [vmem:[#allocation8 + $0x598] sm:$0xff] }
 0x2fe   :  { %v616_v34 = vld [vmem:[#allocation8 + $0x6d8] sm:$0xff]  ;;  %v741_v7 = vld [vmem:[#allocation8 + $0xac0] sm:$0xff]  ;;  %v855_v20 = vld [vmem:[#allocation8 + $0xe50] sm:$0xff] }
 0x2ff   :  { %4315 = vmatpush1.bf16.msra.mxu0 %v4314_v45  ;;  %v1538_v45 = vld [vmem:[#allocation8 + $0x23a8] sm:$0xff]  ;;  %v781_v9 = vld [vmem:[#allocation8 + $0xc00] sm:$0xff] }
 0x300   :  { %4507 = vmatpush1.bf16.msra.mxu1 %v4506_v46  ;;  %4317 = vmatprep.subr.bf16.mxu0 %v4316_v48  ;;  %v1578_v46 = vld [vmem:[#allocation8 + $0x24e8] sm:$0xff]  ;;  %v4334_v48 = vpack.c.bf16 %v1491_v39, %v1451_v38  ;;  %v4416_v39 = vpack.c.bf16 %v616_v34, %v576_v33  ;;  %v821_v21 = vld [vmem:[#allocation8 + $0xd40] sm:$0xff] }
 0x301   :  { %4509 = vmatprep.subr.bf16.mxu1 %v4508_v53  ;;  %v1571_v53 = vld [vmem:[#allocation8 + $0x24b0] sm:$0xff]  ;;  %v4528_v55 = vpack.c.bf16 %v1578_v46, %v1538_v45  ;;  %v656_v45 = vld [vmem:[#allocation8 + $0x818] sm:$0xff]  ;;  %v901_v33 = vld [vmem:[#allocation8 + $0xfc0] sm:$0xff] }
 0x302   :  { %v696_v46 = vld [vmem:[#allocation8 + $0x958] sm:$0xff] }
 0x303   :  { %4319 = vmatpush1.bf16.msra.mxu0 %v4318_v59  ;;  %v1618_v59 = vld [vmem:[#allocation8 + $0x2628] sm:$0xff] }
 0x304   :  { %4511 = vmatpush1.bf16.msra.mxu1 %v4510_v60  ;;  %4321 = vmatprep.subr.bf16.mxu0 %v4320_v61  ;;  %v1658_v60 = vld [vmem:[#allocation8 + $0x2768] sm:$0xff]  ;;  %v4338_v61 = vpack.c.bf16 %v1571_v53, %v1531_v52  ;;  %v4610_v52 = vpack.c.bf16 %v621_v44, %v581_v42  ;;  %v4420_v53 = vpack.c.bf16 %v696_v46, %v656_v45 }
 0x305   :  { %4513 = vmatprep.subr.bf16.mxu1 %v4512_v2  ;;  %v1651_v2 = vld [vmem:[#allocation8 + $0x2730] sm:$0xff]  ;;  %v4532_v6 = vpack.c.bf16 %v1658_v60, %v1618_v59  ;;  %v736_v59 = vld [vmem:[#allocation8 + $0xa98] sm:$0xff]  ;;  %v982_v42 = vld [vmem:[#allocation8 + $0x1248] sm:$0xff] }
 0x306   :  { %v776_v60 = vld [vmem:[#allocation8 + $0xbd8] sm:$0xff] }
 0x307   :  { %4323 = vmatpush1.bf16.msra.mxu0 %v4322_v12  ;;  %v422_v12 = vld [vmem:[#allocation8 + $0xc8] sm:$0xff] }
 0x308   :  { %4515 = vmatpush1.bf16.msra.mxu1 %v4514_v13  ;;  %4325 = vmatprep.subr.bf16.mxu0 %v4324_v14  ;;  %v462_v13 = vld [vmem:[#allocation8 + $0x208] sm:$0xff]  ;;  %v4342_v14 = vpack.c.bf16 %v1651_v2, %v1611_v1  ;;  %v4614_v1 = vpack.c.bf16 %v701_v58, %v661_v56  ;;  %v4424_v2 = vpack.c.bf16 %v776_v60, %v736_v59  ;;  %v1021_v58 = vld [vmem:[#allocation8 + $0x1380] sm:$0xff]  ;;  %v1056_v59 = vld [vmem:[#allocation8 + $0x1498] sm:$0xff] }
 0x309   :  { %4517 = vmatprep.subr.bf16.mxu1 %v4516_v19  ;;  %v455_v19 = vld [vmem:[#allocation8 + $0x1d0] sm:$0xff]  ;;  %v4600_v15 = vpack.c.bf16 %v462_v13, %v422_v12  ;;  %v816_v12 = vld [vmem:[#allocation8 + $0xd18] sm:$0xff] }
 0x30a   :  { %v856_v13 = vld [vmem:[#allocation8 + $0xe58] sm:$0xff] }
 0x30b   :  { %4327 = vmatpush1.bf16.msra.mxu0 %v4326_v24  ;;  %v4410_v24 = vpack.c.bf16 %v455_v19, %v415_v18  ;;  %v4618_v18 = vpack.c.bf16 %v781_v9, %v741_v7  ;;  %v4428_v19 = vpack.c.bf16 %v856_v13, %v816_v12  ;;  %v1096_v60 = vld [vmem:[#allocation8 + $0x15d8] sm:$0xff]  ;;  %v1095_v7 = vld [vmem:[#allocation8 + $0x15d0] sm:$0xff]  ;;  %v1101_v13 = vld [vmem:[#allocation8 + $0x1600] sm:$0xff] }
 0x30c   :  { %4519 = vmatpush1.bf16.msra.mxu1 %v4518_v25  ;;  %4329 = vmatprep.subr.bf16.mxu0 %v4328_v26  ;;  %v502_v25 = vld [vmem:[#allocation8 + $0x348] sm:$0xff] }
 0x30d   :  { %4521 = vmatprep.subr.bf16.mxu1 %v4520_v30  ;;  %v542_v26 = vld [vmem:[#allocation8 + $0x488] sm:$0xff]  ;;  %v501_v30 = vld [vmem:[#allocation8 + $0x340] sm:$0xff] }
 0x30e   :  { %v4604_v35 = vpack.c.bf16 %v542_v26, %v502_v25  ;;  %v4606_v38 = vpack.c.bf16 %v541_v32, %v501_v30  ;;  %v936_v25 = vld [vmem:[#allocation8 + $0x10d8] sm:$0xff]  ;;  %v902_v26 = vld [vmem:[#allocation8 + $0xfc8] sm:$0xff]  ;;  %v935_v32 = vld [vmem:[#allocation8 + $0x10d0] sm:$0xff] }
 0x30f   :  { %4331 = vmatpush1.bf16.msra.mxu0 %v4330_v36  ;;  %v582_v36 = vld [vmem:[#allocation8 + $0x5c8] sm:$0xff] }
 0x310   :  { %4523 = vmatpush1.bf16.msra.mxu1 %v4522_v0  ;;  %4333 = vmatprep.subr.bf16.mxu0 %v4332_v37  ;;  %v622_v0 = vld [vmem:[#allocation8 + $0x708] sm:$0xff]  ;;  %v4414_v37 = vpack.c.bf16 %v535_v29, %v495_v28  ;;  %v4622_v29 = vpack.c.bf16 %v861_v23, %v821_v21  ;;  %v1135_v21 = vld [vmem:[#allocation8 + $0x1710] sm:$0xff]  ;;  %v1141_v23 = vld [vmem:[#allocation8 + $0x1740] sm:$0xff] }
 0x311   :  { %4525 = vmatprep.subr.bf16.mxu1 %v4524_v41  ;;  %v615_v41 = vld [vmem:[#allocation8 + $0x6d0] sm:$0xff]  ;;  %v4608_v43 = vpack.c.bf16 %v622_v0, %v582_v36  ;;  %v941_v0 = vld [vmem:[#allocation8 + $0x1100] sm:$0xff] }
 0x313   :  { %4335 = vmatpush1.bf16.msra.mxu0 %v4334_v48  ;;  %v662_v48 = vld [vmem:[#allocation8 + $0x848] sm:$0xff] }
 0x314   :  { %4527 = vmatpush1.bf16.msra.mxu1 %v4526_v49  ;;  %4337 = vmatprep.subr.bf16.mxu0 %v4336_v50  ;;  %v702_v49 = vld [vmem:[#allocation8 + $0x988] sm:$0xff]  ;;  %v4418_v50 = vpack.c.bf16 %v615_v41, %v575_v40 }
 0x315   :  { %4529 = vmatprep.subr.bf16.mxu1 %v4528_v55  ;;  %v695_v55 = vld [vmem:[#allocation8 + $0x950] sm:$0xff]  ;;  %v4612_v57 = vpack.c.bf16 %v702_v49, %v662_v48  ;;  %v4626_v49 = vpack.c.bf16 %v941_v0, %v901_v33  ;;  %v1221_v0 = vld [vmem:[#allocation8 + $0x19c0] sm:$0xff] }
 0x316   :  { %v1215_v33 = vld [vmem:[#allocation8 + $0x1990] sm:$0xff] }
 0x317   :  { %4339 = vmatpush1.bf16.msra.mxu0 %v4338_v61  ;;  %v742_v61 = vld [vmem:[#allocation8 + $0xac8] sm:$0xff] }
 0x318   :  { %4531 = vmatpush1.bf16.msra.mxu1 %v4530_v62  ;;  %4341 = vmatprep.subr.bf16.mxu0 %v4340_v63  ;;  %v782_v62 = vld [vmem:[#allocation8 + $0xc08] sm:$0xff]  ;;  %v4422_v63 = vpack.c.bf16 %v695_v55, %v655_v54  ;;  %v981_v54 = vld [vmem:[#allocation8 + $0x1240] sm:$0xff] }
 0x319   :  { %4533 = vmatprep.subr.bf16.mxu1 %v4532_v6  ;;  %v775_v6 = vld [vmem:[#allocation8 + $0xbd0] sm:$0xff]  ;;  %v4616_v8 = vpack.c.bf16 %v782_v62, %v742_v61  ;;  %v1062_v61 = vld [vmem:[#allocation8 + $0x14c8] sm:$0xff] }
 0x31a   :  { %v1102_v62 = vld [vmem:[#allocation8 + $0x1608] sm:$0xff] }
 0x31b   :  { %4343 = vmatpush1.bf16.msra.mxu0 %v4342_v14  ;;  %v822_v14 = vld [vmem:[#allocation8 + $0xd48] sm:$0xff]  ;;  %v4632_v12 = vpack.c.bf16 %v1102_v62, %v1062_v61  ;;  %v1375_v62 = vld [vmem:[#allocation8 + $0x1e90] sm:$0xff] }
 0x31c   :  { %4535 = vmatpush1.bf16.msra.mxu1 %v4534_v16  ;;  %4409 = vmatprep.subr.bf16.mxu0 %v4408_v17  ;;  %v862_v16 = vld [vmem:[#allocation8 + $0xe88] sm:$0xff]  ;;  %v4426_v17 = vpack.c.bf16 %v775_v6, %v735_v3  ;;  %v4440_v3 = vpack.c.bf16 %v1096_v60, %v1056_v59  ;;  %v1055_v6 = vld [vmem:[#allocation8 + $0x1490] sm:$0xff] }
 0x31d   :  { %4601 = vmatprep.subr.bf16.mxu1 %v4600_v15  ;;  %v815_v15 = vld [vmem:[#allocation8 + $0xd10] sm:$0xff]  ;;  %v4620_v22 = vpack.c.bf16 %v862_v16, %v822_v14  ;;  %v1136_v14 = vld [vmem:[#allocation8 + $0x1718] sm:$0xff] }
 0x31e   :  { %3711 = vmatmul.mubr.msk.f32.vlgmr.msra.gmra.mrb[8].mxu0 %vm5341_vm2, %v5256_v51  ;;  %v4430_v28 = vpack.c.bf16 %v855_v20, %v815_v15  ;;  %v1176_v16 = vld [vmem:[#allocation8 + $0x1858] sm:$0xff] }
 0x31f   :  { %3717 = vmatmul.mubr.msk.f32.vlgmr.msra.gmra.mrb[12].mxu1 %vm5341_vm2, %v5256_v51  ;;  %4411 = vmatpush1.bf16.msra.mxu0 %v4410_v24  ;;  %v896_v24 = vld [vmem:[#allocation8 + $0xf98] sm:$0xff]  ;;  %v4444_v20 = vpack.c.bf16 %v1176_v16, %v1136_v14  ;;  %v1455_v16 = vld [vmem:[#allocation8 + $0x2110] sm:$0xff] }
 0x320   :  { %3714 = vmatprep.mubr.msk.f32.mxu0 %vm5341_vm2, %v5256_v51  ;;  %4603 = vmatpush1.bf16.msra.mxu1 %v4602_v27  ;;  %v942_v27 = vld [vmem:[#allocation8 + $0x1108] sm:$0xff]  ;;  %v4432_v30 = vpack.c.bf16 %v936_v25, %v896_v24  ;;  %v1181_v25 = vld [vmem:[#allocation8 + $0x1880] sm:$0xff] }
 0x321   :  { %3720 = vmatprep.mubr.msk.f32.mxu1 %vm5341_vm2, %v5256_v51  ;;  %4413 = vmatprep.subr.bf16.mxu0 %v4412_v31  ;;  %v895_v31 = vld [vmem:[#allocation8 + $0xf90] sm:$0xff]  ;;  %v4624_v36 = vpack.c.bf16 %v942_v27, %v902_v26  ;;  %v1216_v26 = vld [vmem:[#allocation8 + $0x1998] sm:$0xff] }
 0x322   :  { %4605 = vmatprep.subr.bf16.mxu1 %v4604_v35  ;;  %v4434_v45 = vpack.c.bf16 %v935_v32, %v895_v31  ;;  %v1256_v27 = vld [vmem:[#allocation8 + $0x1ad8] sm:$0xff]  ;;  %v4638_v31 = vpack.c.bf16 %v1181_v25, %v1141_v23  ;;  %v1582_v23 = vld [vmem:[#allocation8 + $0x2508] sm:$0xff] }
 0x323   :  { %4415 = vmatpush1.bf16.msra.mxu0 %v4414_v37  ;;  %v976_v37 = vld [vmem:[#allocation8 + $0x1218] sm:$0xff]  ;;  %v4448_v32 = vpack.c.bf16 %v1256_v27, %v1216_v26  ;;  %v1535_v27 = vld [vmem:[#allocation8 + $0x2390] sm:$0xff] }
 0x324   :  { %4607 = vmatpush1.bf16.msra.mxu1 %v4606_v38  ;;  %4417 = vmatprep.subr.bf16.mxu0 %v4416_v39  ;;  %v1016_v38 = vld [vmem:[#allocation8 + $0x1358] sm:$0xff] }
 0x325   :  { %4609 = vmatprep.subr.bf16.mxu1 %v4608_v43  ;;  %v1022_v43 = vld [vmem:[#allocation8 + $0x1388] sm:$0xff] }
 0x327   :  { %4419 = vmatpush1.bf16.msra.mxu0 %v4418_v50  ;;  %v4436_v50 = vpack.c.bf16 %v1016_v38, %v976_v37  ;;  %v1261_v38 = vld [vmem:[#allocation8 + $0x1b00] sm:$0xff] }
 0x328   :  { %4611 = vmatpush1.bf16.msra.mxu1 %v4610_v52  ;;  %4421 = vmatprep.subr.bf16.mxu0 %v4420_v53  ;;  %v975_v52 = vld [vmem:[#allocation8 + $0x1210] sm:$0xff] }
 0x329   :  { %4613 = vmatprep.subr.bf16.mxu1 %v4612_v57  ;;  %v1015_v53 = vld [vmem:[#allocation8 + $0x1350] sm:$0xff]  ;;  %v4628_v57 = vpack.c.bf16 %v1022_v43, %v982_v42  ;;  %v1336_v42 = vld [vmem:[#allocation8 + $0x1d58] sm:$0xff]  ;;  %v1302_v43 = vld [vmem:[#allocation8 + $0x1c48] sm:$0xff] }
 0x32b   :  { %4423 = vmatpush1.bf16.msra.mxu0 %v4422_v63  ;;  %v4438_v63 = vpack.c.bf16 %v1015_v53, %v975_v52  ;;  %v1301_v52 = vld [vmem:[#allocation8 + $0x1c40] sm:$0xff] }
 0x32c   :  { %4615 = vmatpush1.bf16.msra.mxu1 %v4614_v1  ;;  %4425 = vmatprep.subr.bf16.mxu0 %v4424_v2  ;;  %v4630_v2 = vpack.c.bf16 %v1021_v58, %v981_v54  ;;  %v1341_v54 = vld [vmem:[#allocation8 + $0x1d80] sm:$0xff]  ;;  %v1422_v58 = vld [vmem:[#allocation8 + $0x2008] sm:$0xff] }
 0x32d   :  { %4617 = vmatprep.subr.bf16.mxu1 %v4616_v8  ;;  %v1061_v8 = vld [vmem:[#allocation8 + $0x14c0] sm:$0xff]  ;;  %v4646_v60 = vpack.c.bf16 %v1341_v54, %v1301_v52  ;;  %v466_v52 = vld [vmem:[#allocation8 + $0x228] sm:$0xff] }
 0x32e   :  { %v4634_v15 = vpack.c.bf16 %v1101_v13, %v1061_v8  ;;  %v1462_v8 = vld [vmem:[#allocation8 + $0x2148] sm:$0xff] }
 0x32f   :  { %4427 = vmatpush1.bf16.msra.mxu0 %v4426_v17  ;;  %v1142_v17 = vld [vmem:[#allocation8 + $0x1748] sm:$0xff] }
 0x330   :  { %4619 = vmatpush1.bf16.msra.mxu1 %v4618_v18  ;;  %4429 = vmatprep.subr.bf16.mxu0 %v4428_v19  ;;  %v1182_v18 = vld [vmem:[#allocation8 + $0x1888] sm:$0xff]  ;;  %v4442_v19 = vpack.c.bf16 %v1095_v7, %v1055_v6  ;;  %v1456_v6 = vld [vmem:[#allocation8 + $0x2118] sm:$0xff] }
 0x331   :  { %v5427_v34 = vpop.f32.mrb[2].mxu0  ;;  %v5429_v35 = vpop.f32.mrb[6].mxu1  ;;  %4621 = vmatprep.subr.bf16.mxu1 %v4620_v22  ;;  %v1175_v22 = vld [vmem:[#allocation8 + $0x1850] sm:$0xff]  ;;  %v4636_v24 = vpack.c.bf16 %v1182_v18, %v1142_v17  ;;  %v1496_v7 = vld [vmem:[#allocation8 + $0x2258] sm:$0xff]  ;;  %v1461_v18 = vld [vmem:[#allocation8 + $0x2140] sm:$0xff] }
 0x332   :  { %v3159_v39 = vadd.f32 1.0, %v5427_v34  ;;  %v5432_v40 = vpop.f32.mrb[3].mxu0  ;;  %v5434_v41 = vpop.f32.mrb[7].mxu1  ;;  %v3165_v46 = vadd.f32 1.0, %v5429_v35  ;;  %v4460_v14 = vpack.c.bf16 %v1496_v7, %v1456_v6  ;;  %v1495_v17 = vld [vmem:[#allocation8 + $0x2250] sm:$0xff] }
 0x333   :  { %v3160_v44 = vadd.f32 1.0, %v5432_v40  ;;  %4431 = vmatpush1.bf16.msra.mxu0 %v4430_v28  ;;  %v3166_v55 = vadd.f32 1.0, %v5434_v41  ;;  %v1222_v28 = vld [vmem:[#allocation8 + $0x19c8] sm:$0xff]  ;;  %v499_v6 = vld [vmem:[#allocation8 + $0x330] sm:$0xff] }
 0x334   :  { %4623 = vmatpush1.bf16.msra.mxu1 %v4622_v29  ;;  %4433 = vmatprep.subr.bf16.mxu0 %v4432_v30  ;;  %v3179_v48 = vsub.f32 0.0, %v3159_v39  ;;  %v3185_v1 = vsub.f32 0.0, %v3165_v46  ;;  %v1262_v29 = vld [vmem:[#allocation8 + $0x1b08] sm:$0xff]  ;;  %v4446_v30 = vpack.c.bf16 %v1175_v22, %v1135_v21  ;;  %v1296_v39 = vld [vmem:[#allocation8 + $0x1c18] sm:$0xff]  ;;  %v4642_v46 = vpack.c.bf16 %v1261_v38, %v1221_v0  ;;  %v539_v7 = vld [vmem:[#allocation8 + $0x470] sm:$0xff] }
 0x335   :  { %4625 = vmatprep.subr.bf16.mxu1 %v4624_v36  ;;  %v3180_v56 = vsub.f32 0.0, %v3160_v44  ;;  %v3186_v9 = vsub.f32 0.0, %v3166_v55  ;;  %v1255_v36 = vld [vmem:[#allocation8 + $0x1ad0] sm:$0xff]  ;;  %v4640_v37 = vpack.c.bf16 %v1262_v29, %v1222_v28  ;;  %v1342_v44 = vld [vmem:[#allocation8 + $0x1d88] sm:$0xff]  ;;  %v1376_v55 = vld [vmem:[#allocation8 + $0x1e98] sm:$0xff] }
 0x336   :  { %3303 = vrot.lane.b32.xlu0 %v3179_v48, %s5257_s3  ;;  %v4452_v48 = vpack.c.bf16 %v1336_v42, %v1296_v39  ;;  %v4644_v53 = vpack.c.bf16 %v1342_v44, %v1302_v43  ;;  %v1576_v21 = vld [vmem:[#allocation8 + $0x24d8] sm:$0xff]  ;;  %v1542_v22 = vld [vmem:[#allocation8 + $0x23c8] sm:$0xff]  ;;  %v1575_v28 = vld [vmem:[#allocation8 + $0x24d0] sm:$0xff] }
 0x337   :  { %4435 = vmatpush1.bf16.msra.mxu0 %v4434_v45  ;;  %3305 = vrot.lane.b32.xlu1 %v3180_v56, %s5257_s3  ;;  %v4450_v45 = vpack.c.bf16 %v1255_v36, %v1215_v33  ;;  %v1416_v56 = vld [vmem:[#allocation8 + $0x1fd8] sm:$0xff]  ;;  %v1541_v29 = vld [vmem:[#allocation8 + $0x23c0] sm:$0xff]  ;;  %v1622_v36 = vld [vmem:[#allocation8 + $0x2648] sm:$0xff] }
 0x338   :  { %4627 = vmatpush1.bf16.msra.mxu1 %v4626_v49  ;;  %4437 = vmatprep.subr.bf16.mxu0 %v4436_v50  ;;  %v1295_v49 = vld [vmem:[#allocation8 + $0x1c10] sm:$0xff]  ;;  %v4456_v61 = vpack.c.bf16 %v1416_v56, %v1376_v55  ;;  %v1656_v33 = vld [vmem:[#allocation8 + $0x2758] sm:$0xff]  ;;  %v1662_v0 = vld [vmem:[#allocation8 + $0x2788] sm:$0xff] }
 0x339   :  { %4629 = vmatprep.subr.bf16.mxu1 %v4628_v57  ;;  %v1335_v50 = vld [vmem:[#allocation8 + $0x1d50] sm:$0xff]  ;;  %v1382_v57 = vld [vmem:[#allocation8 + $0x1ec8] sm:$0xff]  ;;  %v1621_v44 = vld [vmem:[#allocation8 + $0x2640] sm:$0xff] }
 0x33a   :  { %3315 = vrot.lane.b32.xlu0 %v3185_v1, %s5257_s3  ;;  %v4454_v59 = vpack.c.bf16 %v1335_v50, %v1295_v49  ;;  %v1381_v1 = vld [vmem:[#allocation8 + $0x1ec0] sm:$0xff]  ;;  %v1615_v42 = vld [vmem:[#allocation8 + $0x2610] sm:$0xff]  ;;  %v460_v49 = vld [vmem:[#allocation8 + $0x1f8] sm:$0xff] }
 0x33b   :  { %4439 = vmatpush1.bf16.msra.mxu0 %v4438_v63  ;;  %3317 = vrot.lane.b32.xlu1 %v3186_v9, %s5257_s3  ;;  %v1415_v63 = vld [vmem:[#allocation8 + $0x1fd0] sm:$0xff]  ;;  %v1502_v9 = vld [vmem:[#allocation8 + $0x2288] sm:$0xff] }
 0x33c   :  { %4631 = vmatpush1.bf16.msra.mxu1 %v4630_v2  ;;  %4441 = vmatprep.subr.bf16.mxu0 %v4440_v3  ;;  %v4648_v2 = vpack.c.bf16 %v1422_v58, %v1382_v57  ;;  %v1421_v3 = vld [vmem:[#allocation8 + $0x2000] sm:$0xff]  ;;  %v1655_v43 = vld [vmem:[#allocation8 + $0x2750] sm:$0xff]  ;;  %v426_v50 = vld [vmem:[#allocation8 + $0xe8] sm:$0xff] }
 0x33d   :  { %4633 = vmatprep.subr.bf16.mxu1 %v4632_v12  ;;  %v4458_v12 = vpack.c.bf16 %v1415_v63, %v1375_v62  ;;  %v4650_v13 = vpack.c.bf16 %v1421_v3, %v1381_v1  ;;  %v419_v56 = vld [vmem:[#allocation8 + $0xb0] sm:$0xff]  ;;  %v4728_v58 = vpack.c.bf16 %v466_v52, %v426_v50  ;;  %v540_v62 = vld [vmem:[#allocation8 + $0x478] sm:$0xff]  ;;  %v506_v1 = vld [vmem:[#allocation8 + $0x368] sm:$0xff] }
 0x33e   :  { %v459_v57 = vld [vmem:[#allocation8 + $0x1f0] sm:$0xff]  ;;  %v745_v52 = vld [vmem:[#allocation8 + $0xae0] sm:$0xff] }
 0x33f   :  { %4443 = vmatpush1.bf16.msra.mxu0 %v4442_v19  ;;  %v4652_v19 = vpack.c.bf16 %v1502_v9, %v1462_v8  ;;  %v4538_v63 = vpack.c.bf16 %v459_v57, %v419_v56  ;;  %v505_v8 = vld [vmem:[#allocation8 + $0x360] sm:$0xff]  ;;  %v779_v50 = vld [vmem:[#allocation8 + $0xbf0] sm:$0xff]  ;;  %v860_v56 = vld [vmem:[#allocation8 + $0xe78] sm:$0xff] }
 0x340   :  { %4635 = vmatpush1.bf16.msra.mxu1 %v4634_v15  ;;  %4445 = vmatprep.subr.bf16.mxu0 %v4444_v20  ;;  %v1501_v15 = vld [vmem:[#allocation8 + $0x2280] sm:$0xff]  ;;  %v1536_v20 = vld [vmem:[#allocation8 + $0x2398] sm:$0xff]  ;;  %v826_v57 = vld [vmem:[#allocation8 + $0xd68] sm:$0xff] }
 0x341   :  { %4637 = vmatprep.subr.bf16.mxu1 %v4636_v24  ;;  %v4462_v24 = vpack.c.bf16 %v1495_v17, %v1455_v16  ;;  %v4654_v25 = vpack.c.bf16 %v1501_v15, %v1461_v18  ;;  %v4464_v26 = vpack.c.bf16 %v1576_v21, %v1536_v20  ;;  %v586_v17 = vld [vmem:[#allocation8 + $0x5e8] sm:$0xff]  ;;  %v579_v21 = vld [vmem:[#allocation8 + $0x5b0] sm:$0xff] }
 0x342   :  { %v626_v18 = vld [vmem:[#allocation8 + $0x728] sm:$0xff] }
 0x343   :  { %4447 = vmatpush1.bf16.msra.mxu0 %v4446_v30  ;;  %v4656_v30 = vpack.c.bf16 %v1582_v23, %v1542_v22  ;;  %v619_v22 = vld [vmem:[#allocation8 + $0x6f0] sm:$0xff]  ;;  %v585_v23 = vld [vmem:[#allocation8 + $0x5e0] sm:$0xff] }
 0x344   :  { %4639 = vmatpush1.bf16.msra.mxu1 %v4638_v31  ;;  %4449 = vmatprep.subr.bf16.mxu0 %v4448_v32  ;;  %v1581_v31 = vld [vmem:[#allocation8 + $0x2500] sm:$0xff]  ;;  %v1616_v32 = vld [vmem:[#allocation8 + $0x2618] sm:$0xff] }
 0x345   :  { %4641 = vmatprep.subr.bf16.mxu1 %v4640_v37  ;;  %v4466_v37 = vpack.c.bf16 %v1575_v28, %v1535_v27  ;;  %v4658_v38 = vpack.c.bf16 %v1581_v31, %v1541_v29  ;;  %v4468_v39 = vpack.c.bf16 %v1656_v33, %v1616_v32  ;;  %v700_v27 = vld [vmem:[#allocation8 + $0x978] sm:$0xff]  ;;  %v666_v28 = vld [vmem:[#allocation8 + $0x868] sm:$0xff]  ;;  %v659_v33 = vld [vmem:[#allocation8 + $0x830] sm:$0xff] }
 0x346   :  { %v706_v29 = vld [vmem:[#allocation8 + $0x9a8] sm:$0xff] }
 0x347   :  { %4451 = vmatpush1.bf16.msra.mxu0 %v4450_v45  ;;  %v4660_v45 = vpack.c.bf16 %v1662_v0, %v1622_v36  ;;  %v699_v36 = vld [vmem:[#allocation8 + $0x970] sm:$0xff]  ;;  %v665_v0 = vld [vmem:[#allocation8 + $0x860] sm:$0xff] }
 0x348   :  { %4643 = vmatpush1.bf16.msra.mxu1 %v4642_v46  ;;  %4453 = vmatprep.subr.bf16.mxu0 %v4452_v48  ;;  %v1661_v46 = vld [vmem:[#allocation8 + $0x2780] sm:$0xff]  ;;  %v420_v48 = vld [vmem:[#allocation8 + $0xb8] sm:$0xff] }
 0x349   :  { %4645 = vmatprep.subr.bf16.mxu1 %v4644_v53  ;;  %v4470_v53 = vpack.c.bf16 %v1655_v43, %v1615_v42  ;;  %v4662_v54 = vpack.c.bf16 %v1661_v46, %v1621_v44  ;;  %v4536_v55 = vpack.c.bf16 %v460_v49, %v420_v48  ;;  %v780_v42 = vld [vmem:[#allocation8 + $0xbf8] sm:$0xff]  ;;  %v746_v43 = vld [vmem:[#allocation8 + $0xae8] sm:$0xff]  ;;  %v739_v49 = vld [vmem:[#allocation8 + $0xab0] sm:$0xff] }
 0x34a   :  { %v786_v44 = vld [vmem:[#allocation8 + $0xc28] sm:$0xff] }
 0x34b   :  { %4455 = vmatpush1.bf16.msra.mxu0 %v4454_v59  ;;  %v425_v59 = vld [vmem:[#allocation8 + $0xe0] sm:$0xff] }
 0x34c   :  { %4647 = vmatpush1.bf16.msra.mxu1 %v4646_v60  ;;  %4457 = vmatprep.subr.bf16.mxu0 %v4456_v61  ;;  %v465_v60 = vld [vmem:[#allocation8 + $0x220] sm:$0xff]  ;;  %v500_v61 = vld [vmem:[#allocation8 + $0x338] sm:$0xff] }
 0x34d   :  { %4649 = vmatprep.subr.bf16.mxu1 %v4648_v2  ;;  %v546_v2 = vld [vmem:[#allocation8 + $0x4a8] sm:$0xff]  ;;  %v4730_v3 = vpack.c.bf16 %v465_v60, %v425_v59  ;;  %v4540_v9 = vpack.c.bf16 %v540_v62, %v500_v61  ;;  %v4554_v59 = vpack.c.bf16 %v779_v50, %v739_v49  ;;  %v819_v62 = vld [vmem:[#allocation8 + $0xd30] sm:$0xff] }
 0x34e   :  { %v4732_v16 = vpack.c.bf16 %v546_v2, %v506_v1  ;;  %v825_v1 = vld [vmem:[#allocation8 + $0xd60] sm:$0xff]  ;;  %v1106_v49 = vld [vmem:[#allocation8 + $0x1628] sm:$0xff] }
 0x34f   :  { %4459 = vmatpush1.bf16.msra.mxu0 %v4458_v12  ;;  %v545_v12 = vld [vmem:[#allocation8 + $0x4a0] sm:$0xff] }
 0x350   :  { %4651 = vmatpush1.bf16.msra.mxu1 %v4650_v13  ;;  %4461 = vmatprep.subr.bf16.mxu0 %v4460_v14  ;;  %v580_v13 = vld [vmem:[#allocation8 + $0x5b8] sm:$0xff]  ;;  %v4734_v15 = vpack.c.bf16 %v545_v12, %v505_v8  ;;  %v906_v8 = vld [vmem:[#allocation8 + $0xfe8] sm:$0xff] }
 0x351   :  { %4653 = vmatprep.subr.bf16.mxu1 %v4652_v19  ;;  %v620_v14 = vld [vmem:[#allocation8 + $0x6f8] sm:$0xff]  ;;  %v4542_v19 = vpack.c.bf16 %v539_v7, %v499_v6 }
 0x352   :  { %v4544_v20 = vpack.c.bf16 %v620_v14, %v580_v13  ;;  %v900_v6 = vld [vmem:[#allocation8 + $0xfb8] sm:$0xff] }
 0x353   :  { %4463 = vmatpush1.bf16.msra.mxu0 %v4462_v24  ;;  %v4736_v24 = vpack.c.bf16 %v626_v18, %v586_v17  ;;  %v940_v7 = vld [vmem:[#allocation8 + $0x10f8] sm:$0xff]  ;;  %v939_v17 = vld [vmem:[#allocation8 + $0x10f0] sm:$0xff]  ;;  %v905_v18 = vld [vmem:[#allocation8 + $0xfe0] sm:$0xff] }
 0x354   :  { %4655 = vmatpush1.bf16.msra.mxu1 %v4654_v25  ;;  %4465 = vmatprep.subr.bf16.mxu0 %v4464_v26  ;;  %v625_v25 = vld [vmem:[#allocation8 + $0x720] sm:$0xff]  ;;  %v660_v26 = vld [vmem:[#allocation8 + $0x838] sm:$0xff]  ;;  %v4560_v14 = vpack.c.bf16 %v940_v7, %v900_v6  ;;  %v1139_v7 = vld [vmem:[#allocation8 + $0x1730] sm:$0xff] }
 0x355   :  { %4657 = vmatprep.subr.bf16.mxu1 %v4656_v30  ;;  %v4546_v30 = vpack.c.bf16 %v619_v22, %v579_v21  ;;  %v4738_v31 = vpack.c.bf16 %v625_v25, %v585_v23  ;;  %v4548_v32 = vpack.c.bf16 %v700_v27, %v660_v26  ;;  %v980_v21 = vld [vmem:[#allocation8 + $0x1238] sm:$0xff]  ;;  %v986_v26 = vld [vmem:[#allocation8 + $0x1268] sm:$0xff] }
 0x356   :  { %v1020_v22 = vld [vmem:[#allocation8 + $0x1378] sm:$0xff]  ;;  %v1026_v27 = vld [vmem:[#allocation8 + $0x13a8] sm:$0xff] }
 0x357   :  { %4467 = vmatpush1.bf16.msra.mxu0 %v4466_v37  ;;  %v4740_v37 = vpack.c.bf16 %v706_v29, %v666_v28 }
 0x358   :  { %4659 = vmatpush1.bf16.msra.mxu1 %v4658_v38  ;;  %4469 = vmatprep.subr.bf16.mxu0 %v4468_v39  ;;  %v705_v38 = vld [vmem:[#allocation8 + $0x9a0] sm:$0xff]  ;;  %v740_v39 = vld [vmem:[#allocation8 + $0xab8] sm:$0xff] }
 0x359   :  { %4661 = vmatprep.subr.bf16.mxu1 %v4660_v45  ;;  %v4550_v45 = vpack.c.bf16 %v699_v36, %v659_v33  ;;  %v4742_v46 = vpack.c.bf16 %v705_v38, %v665_v0  ;;  %v4552_v48 = vpack.c.bf16 %v780_v42, %v740_v39  ;;  %v4564_v36 = vpack.c.bf16 %v1020_v22, %v980_v21  ;;  %v979_v0 = vld [vmem:[#allocation8 + $0x1230] sm:$0xff]  ;;  %v985_v38 = vld [vmem:[#allocation8 + $0x1260] sm:$0xff] }
 0x35a   :  { %v1219_v22 = vld [vmem:[#allocation8 + $0x19b0] sm:$0xff] }
 0x35b   :  { %4471 = vmatpush1.bf16.msra.mxu0 %v4470_v53  ;;  %v4744_v53 = vpack.c.bf16 %v786_v44, %v746_v43  ;;  %v4756_v43 = vpack.c.bf16 %v1026_v27, %v986_v26  ;;  %v1025_v44 = vld [vmem:[#allocation8 + $0x13a0] sm:$0xff] }
 0x35c   :  { %4663 = vmatpush1.bf16.msra.mxu1 %v4662_v54  ;;  %4537 = vmatprep.subr.bf16.mxu0 %v4536_v55  ;;  %v785_v54 = vld [vmem:[#allocation8 + $0xc20] sm:$0xff]  ;;  %v820_v55 = vld [vmem:[#allocation8 + $0xd38] sm:$0xff] }
 0x35d   :  { %4729 = vmatprep.subr.bf16.mxu1 %v4728_v58  ;;  %v866_v58 = vld [vmem:[#allocation8 + $0xea8] sm:$0xff]  ;;  %v4746_v60 = vpack.c.bf16 %v785_v54, %v745_v52  ;;  %v4556_v61 = vpack.c.bf16 %v860_v56, %v820_v55  ;;  %v1059_v55 = vld [vmem:[#allocation8 + $0x14b0] sm:$0xff]  ;;  %v1225_v26 = vld [vmem:[#allocation8 + $0x19e0] sm:$0xff] }
 0x35e   :  { %3715 = vmatmul.mubr.msk.f32.vlgmr.msra.gmra.mrb[10].mxu0 %vm5341_vm2, %v5256_v51  ;;  %v4748_v2 = vpack.c.bf16 %v866_v58, %v826_v57  ;;  %v1099_v56 = vld [vmem:[#allocation8 + $0x15f0] sm:$0xff]  ;;  %v1065_v57 = vld [vmem:[#allocation8 + $0x14e0] sm:$0xff] }
 0x35f   :  { %3721 = vmatmul.mubr.msk.f32.vlgmr.msra.gmra.mrb[14].mxu1 %vm5341_vm2, %v5256_v51  ;;  %4539 = vmatpush1.bf16.msra.mxu0 %v4538_v63  ;;  %v859_v63 = vld [vmem:[#allocation8 + $0xe70] sm:$0xff] }
 0x360   :  { %3718 = vmatprep.mubr.msk.f32.mxu0 %vm5341_vm2, %v5256_v51  ;;  %4731 = vmatpush1.bf16.msra.mxu1 %v4730_v3  ;;  %v865_v3 = vld [vmem:[#allocation8 + $0xea0] sm:$0xff]  ;;  %v4558_v12 = vpack.c.bf16 %v859_v63, %v819_v62  ;;  %v1180_v62 = vld [vmem:[#allocation8 + $0x1878] sm:$0xff]  ;;  %v1146_v63 = vld [vmem:[#allocation8 + $0x1768] sm:$0xff] }
 0x361   :  { %3724 = vmatprep.mubr.msk.f32.mxu1 %vm5341_vm2, %v5256_v51  ;;  %4541 = vmatprep.subr.bf16.mxu0 %v4540_v9  ;;  %v946_v9 = vld [vmem:[#allocation8 + $0x1128] sm:$0xff]  ;;  %v4750_v13 = vpack.c.bf16 %v865_v3, %v825_v1 }
 0x362   :  { %4733 = vmatprep.subr.bf16.mxu1 %v4732_v16  ;;  %v899_v16 = vld [vmem:[#allocation8 + $0xfb0] sm:$0xff]  ;;  %v1186_v1 = vld [vmem:[#allocation8 + $0x18a8] sm:$0xff] }
 0x363   :  { %4543 = vmatpush1.bf16.msra.mxu0 %v4542_v19 }
 0x364   :  { %4735 = vmatpush1.bf16.msra.mxu1 %v4734_v15  ;;  %4545 = vmatprep.subr.bf16.mxu0 %v4544_v20  ;;  %v4752_v15 = vpack.c.bf16 %v946_v9, %v906_v8  ;;  %v945_v20 = vld [vmem:[#allocation8 + $0x1120] sm:$0xff]  ;;  %v1179_v8 = vld [vmem:[#allocation8 + $0x1870] sm:$0xff] }
 0x365   :  { %4737 = vmatprep.subr.bf16.mxu1 %v4736_v24  ;;  %v4754_v33 = vpack.c.bf16 %v945_v20, %v905_v18  ;;  %v1145_v9 = vld [vmem:[#allocation8 + $0x1760] sm:$0xff]  ;;  %v1266_v18 = vld [vmem:[#allocation8 + $0x1b28] sm:$0xff] }
 0x367   :  { %4547 = vmatpush1.bf16.msra.mxu0 %v4546_v30  ;;  %v4562_v30 = vpack.c.bf16 %v939_v17, %v899_v16  ;;  %v1260_v16 = vld [vmem:[#allocation8 + $0x1af8] sm:$0xff]  ;;  %v1226_v17 = vld [vmem:[#allocation8 + $0x19e8] sm:$0xff] }
 0x368   :  { %4739 = vmatpush1.bf16.msra.mxu1 %v4738_v31  ;;  %4549 = vmatprep.subr.bf16.mxu0 %v4548_v32  ;;  %v4768_v27 = vpack.c.bf16 %v1266_v18, %v1226_v17 }
 0x369   :  { %4741 = vmatprep.subr.bf16.mxu1 %v4740_v37  ;;  %v1019_v37 = vld [vmem:[#allocation8 + $0x1370] sm:$0xff] }
 0x36a   :  { %v4566_v50 = vpack.c.bf16 %v1019_v37, %v979_v0 }
 0x36b   :  { %4551 = vmatpush1.bf16.msra.mxu0 %v4550_v45  ;;  %v1060_v45 = vld [vmem:[#allocation8 + $0x14b8] sm:$0xff] }
 0x36c   :  { %4743 = vmatpush1.bf16.msra.mxu1 %v4742_v46  ;;  %4553 = vmatprep.subr.bf16.mxu0 %v4552_v48  ;;  %v1100_v46 = vld [vmem:[#allocation8 + $0x15f8] sm:$0xff]  ;;  %v1066_v48 = vld [vmem:[#allocation8 + $0x14e8] sm:$0xff] }
 0x36d   :  { %4745 = vmatprep.subr.bf16.mxu1 %v4744_v53  ;;  %v4758_v53 = vpack.c.bf16 %v1025_v44, %v985_v38  ;;  %v4568_v54 = vpack.c.bf16 %v1100_v46, %v1060_v45  ;;  %v1299_v38 = vld [vmem:[#allocation8 + $0x1c30] sm:$0xff]  ;;  %v1345_v44 = vld [vmem:[#allocation8 + $0x1da0] sm:$0xff]  ;;  %v1380_v45 = vld [vmem:[#allocation8 + $0x1eb8] sm:$0xff] }
 0x36e   :  { %v1420_v46 = vld [vmem:[#allocation8 + $0x1ff8] sm:$0xff] }
 0x36f   :  { %4555 = vmatpush1.bf16.msra.mxu0 %v4554_v59  ;;  %v4760_v59 = vpack.c.bf16 %v1106_v49, %v1066_v48  ;;  %v1386_v48 = vld [vmem:[#allocation8 + $0x1ee8] sm:$0xff] }
 0x370   :  { %4747 = vmatpush1.bf16.msra.mxu1 %v4746_v60  ;;  %4557 = vmatprep.subr.bf16.mxu0 %v4556_v61  ;;  %v1105_v60 = vld [vmem:[#allocation8 + $0x1620] sm:$0xff]  ;;  %v1140_v61 = vld [vmem:[#allocation8 + $0x1738] sm:$0xff]  ;;  %v1426_v49 = vld [vmem:[#allocation8 + $0x2028] sm:$0xff] }
 0x371   :  { %v5455_v19 = vpop.f32.mrb[4].mxu0  ;;  %4749 = vmatprep.subr.bf16.mxu1 %v4748_v2  ;;  %v4570_v2 = vpack.c.bf16 %v1099_v56, %v1059_v55  ;;  %v4762_v3 = vpack.c.bf16 %v1105_v60, %v1065_v57  ;;  %v4572_v6 = vpack.c.bf16 %v1180_v62, %v1140_v61  ;;  %v1419_v55 = vld [vmem:[#allocation8 + $0x1ff0] sm:$0xff]  ;;  %v1385_v56 = vld [vmem:[#allocation8 + $0x1ee0] sm:$0xff]  ;;  %v4776_v57 = vpack.c.bf16 %v1426_v49, %v1386_v48  ;;  %v1500_v60 = vld [vmem:[#allocation8 + $0x2278] sm:$0xff] }
 0x372   :  { %v3163_v23 = vadd.f32 1.0, %v5455_v19  ;;  %v5458_v24 = vpop.f32.mrb[8].mxu1  ;;  %v5460_v25 = vpop.f32.mrb[5].mxu0  ;;  %v1466_v61 = vld [vmem:[#allocation8 + $0x2168] sm:$0xff] }
 0x373   :  { %v3164_v28 = vadd.f32 1.0, %v5460_v25  ;;  %v5463_v29 = vpop.f32.mrb[9].mxu1  ;;  %4559 = vmatpush1.bf16.msra.mxu0 %v4558_v12  ;;  %v3169_v31 = vadd.f32 1.0, %v5458_v24  ;;  %v4764_v12 = vpack.c.bf16 %v1186_v1, %v1146_v63  ;;  %v1506_v62 = vld [vmem:[#allocation8 + $0x22a8] sm:$0xff] }
 0x374   :  { %4751 = vmatpush1.bf16.msra.mxu1 %v4750_v13  ;;  %4561 = vmatprep.subr.bf16.mxu0 %v4560_v14  ;;  %v3183_v32 = vsub.f32 0.0, %v3163_v23  ;;  %v3170_v39 = vadd.f32 1.0, %v5463_v29  ;;  %v1185_v13 = vld [vmem:[#allocation8 + $0x18a0] sm:$0xff]  ;;  %v1220_v14 = vld [vmem:[#allocation8 + $0x19b8] sm:$0xff]  ;;  %v1259_v23 = vld [vmem:[#allocation8 + $0x1af0] sm:$0xff] }
 0x375   :  { %4753 = vmatprep.subr.bf16.mxu1 %v4752_v15  ;;  %v3184_v42 = vsub.f32 0.0, %v3164_v28  ;;  %v3189_v52 = vsub.f32 0.0, %v3169_v31  ;;  %v4574_v15 = vpack.c.bf16 %v1179_v8, %v1139_v7  ;;  %v4766_v20 = vpack.c.bf16 %v1185_v13, %v1145_v9  ;;  %v1265_v28 = vld [vmem:[#allocation8 + $0x1b20] sm:$0xff]  ;;  %v1340_v31 = vld [vmem:[#allocation8 + $0x1d78] sm:$0xff] }
 0x376   :  { %3311 = vrot.lane.b32.xlu0 %v3183_v32, %s5257_s3  ;;  %v3190_v58 = vsub.f32 0.0, %v3170_v39  ;;  %v4576_v21 = vpack.c.bf16 %v1260_v16, %v1220_v14  ;;  %v1306_v32 = vld [vmem:[#allocation8 + $0x1c68] sm:$0xff]  ;;  %v4770_v0 = vpack.c.bf16 %v1265_v28, %v1225_v26  ;;  %v1339_v39 = vld [vmem:[#allocation8 + $0x1d70] sm:$0xff]  ;;  %v1465_v7 = vld [vmem:[#allocation8 + $0x2160] sm:$0xff]  ;;  %v4780_v8 = vpack.c.bf16 %v1506_v62, %v1466_v61 }
 0x377   :  { %4563 = vmatpush1.bf16.msra.mxu0 %v4562_v30  ;;  %3313 = vrot.lane.b32.xlu1 %v3184_v42, %s5257_s3  ;;  %v1300_v30 = vld [vmem:[#allocation8 + $0x1c38] sm:$0xff]  ;;  %v1305_v42 = vld [vmem:[#allocation8 + $0x1c60] sm:$0xff]  ;;  %v1546_v14 = vld [vmem:[#allocation8 + $0x23e8] sm:$0xff] }
 0x378   :  { %4755 = vmatpush1.bf16.msra.mxu1 %v4754_v33  ;;  %4565 = vmatprep.subr.bf16.mxu0 %v4564_v36  ;;  %v1346_v33 = vld [vmem:[#allocation8 + $0x1da8] sm:$0xff]  ;;  %v4578_v36 = vpack.c.bf16 %v1259_v23, %v1219_v22  ;;  %v4580_v37 = vpack.c.bf16 %v1340_v31, %v1300_v30  ;;  %v1505_v9 = vld [vmem:[#allocation8 + $0x22a0] sm:$0xff]  ;;  %v1580_v13 = vld [vmem:[#allocation8 + $0x24f8] sm:$0xff] }
 0x379   :  { %4757 = vmatprep.subr.bf16.mxu1 %v4756_v43  ;;  %v4772_v43 = vpack.c.bf16 %v1346_v33, %v1306_v32  ;;  %v1586_v16 = vld [vmem:[#allocation8 + $0x2528] sm:$0xff]  ;;  %v4782_v18 = vpack.c.bf16 %v1505_v9, %v1465_v7  ;;  %v1545_v22 = vld [vmem:[#allocation8 + $0x23e0] sm:$0xff]  ;;  %v1660_v28 = vld [vmem:[#allocation8 + $0x2778] sm:$0xff]  ;;  %v5471_v9 = vpop.permute.xlu0 %3299 }
 0x37a   :  { %3323 = vrot.lane.b32.xlu0 %v3189_v52, %s5257_s3  ;;  %v4774_v52 = vpack.c.bf16 %v1345_v44, %v1305_v42  ;;  %v4784_v23 = vpack.c.bf16 %v1586_v16, %v1546_v14  ;;  %v1585_v26 = vld [vmem:[#allocation8 + $0x2520] sm:$0xff]  ;;  %v1626_v30 = vld [vmem:[#allocation8 + $0x2668] sm:$0xff]  ;;  %v464_v44 = vld [vmem:[#allocation8 + $0x218] sm:$0xff]  ;;  %v3302_v16 = vpop.permute.xlu1 %3301 }
 0x37b   :  { %4567 = vmatpush1.bf16.msra.mxu0 %v4566_v50  ;;  %3325 = vrot.lane.b32.xlu1 %v3190_v58, %s5257_s3  ;;  %v4582_v50 = vpack.c.bf16 %v1339_v39, %v1299_v38  ;;  %v1425_v58 = vld [vmem:[#allocation8 + $0x2020] sm:$0xff]  ;;  %v1666_v31 = vld [vmem:[#allocation8 + $0x27a8] sm:$0xff]  ;;  %v4786_v33 = vpack.c.bf16 %v1585_v26, %v1545_v22  ;;  %v584_v7 = vld [vmem:[#allocation8 + $0x5d8] sm:$0xff] }
 0x37c   :  { %4759 = vmatpush1.bf16.msra.mxu1 %v4758_v53  ;;  %4569 = vmatprep.subr.bf16.mxu0 %v4568_v54  ;;  %v4584_v53 = vpack.c.bf16 %v1420_v46, %v1380_v45  ;;  %v1379_v54 = vld [vmem:[#allocation8 + $0x1eb0] sm:$0xff]  ;;  %v4778_v1 = vpack.c.bf16 %v1425_v58, %v1385_v56  ;;  %v1625_v38 = vld [vmem:[#allocation8 + $0x2660] sm:$0xff]  ;;  %v4788_v39 = vpack.c.bf16 %v1666_v31, %v1626_v30  ;;  %v430_v45 = vld [vmem:[#allocation8 + $0x108] sm:$0xff] }
 0x37d   :  { %4761 = vmatprep.subr.bf16.mxu1 %v4760_v59  ;;  %v1460_v59 = vld [vmem:[#allocation8 + $0x2138] sm:$0xff]  ;;  %v4586_v63 = vpack.c.bf16 %v1419_v55, %v1379_v54  ;;  %v1665_v42 = vld [vmem:[#allocation8 + $0x27a0] sm:$0xff]  ;;  %v470_v46 = vld [vmem:[#allocation8 + $0x248] sm:$0xff] }
 0x37e   :  { %v4790_v49 = vpack.c.bf16 %v1665_v42, %v1625_v38  ;;  %v4856_v54 = vpack.c.bf16 %v470_v46, %v430_v45  ;;  %v429_v55 = vld [vmem:[#allocation8 + $0x100] sm:$0xff]  ;;  %v544_v58 = vld [vmem:[#allocation8 + $0x498] sm:$0xff]  ;;  %v550_v61 = vld [vmem:[#allocation8 + $0x4c8] sm:$0xff] }
 0x37f   :  { %4571 = vmatpush1.bf16.msra.mxu0 %v4570_v2  ;;  %v4588_v2 = vpack.c.bf16 %v1500_v60, %v1460_v59  ;;  %v469_v56 = vld [vmem:[#allocation8 + $0x240] sm:$0xff]  ;;  %v510_v60 = vld [vmem:[#allocation8 + $0x388] sm:$0xff]  ;;  %v664_v31 = vld [vmem:[#allocation8 + $0x858] sm:$0xff] }
 0x380   :  { %4763 = vmatpush1.bf16.msra.mxu1 %v4762_v3  ;;  %4573 = vmatprep.subr.bf16.mxu0 %v4572_v6  ;;  %v1459_v3 = vld [vmem:[#allocation8 + $0x2130] sm:$0xff]  ;;  %v4858_v62 = vpack.c.bf16 %v469_v56, %v429_v55  ;;  %v630_v14 = vld [vmem:[#allocation8 + $0x748] sm:$0xff]  ;;  %v589_v22 = vld [vmem:[#allocation8 + $0x600] sm:$0xff] }
 0x381   :  { %4765 = vmatprep.subr.bf16.mxu1 %v4764_v12  ;;  %v1499_v6 = vld [vmem:[#allocation8 + $0x2270] sm:$0xff]  ;;  %v1540_v12 = vld [vmem:[#allocation8 + $0x23b8] sm:$0xff]  ;;  %v629_v30 = vld [vmem:[#allocation8 + $0x740] sm:$0xff] }
 0x382   :  { %v4590_v17 = vpack.c.bf16 %v1499_v6, %v1459_v3  ;;  %v549_v6 = vld [vmem:[#allocation8 + $0x4c0] sm:$0xff]  ;;  %v4866_v38 = vpack.c.bf16 %v629_v30, %v589_v22  ;;  %v703_v45 = vld [vmem:[#allocation8 + $0x990] sm:$0xff]  ;;  %v790_v55 = vld [vmem:[#allocation8 + $0xc48] sm:$0xff] }
 0x383   :  { %4575 = vmatpush1.bf16.msra.mxu0 %v4574_v15  ;;  %v4592_v15 = vpack.c.bf16 %v1580_v13, %v1540_v12  ;;  %v4860_v12 = vpack.c.bf16 %v550_v61, %v510_v60  ;;  %v590_v13 = vld [vmem:[#allocation8 + $0x608] sm:$0xff]  ;;  %v669_v46 = vld [vmem:[#allocation8 + $0x880] sm:$0xff]  ;;  %v743_v61 = vld [vmem:[#allocation8 + $0xad0] sm:$0xff] }
 0x384   :  { %4767 = vmatpush1.bf16.msra.mxu1 %v4766_v20  ;;  %4577 = vmatprep.subr.bf16.mxu0 %v4576_v21  ;;  %v1539_v20 = vld [vmem:[#allocation8 + $0x23b0] sm:$0xff] }
 0x385   :  { %4769 = vmatprep.subr.bf16.mxu1 %v4768_v27  ;;  %v1579_v21 = vld [vmem:[#allocation8 + $0x24f0] sm:$0xff]  ;;  %v1620_v27 = vld [vmem:[#allocation8 + $0x2638] sm:$0xff] }
 0x386   :  { %v4594_v32 = vpack.c.bf16 %v1579_v21, %v1539_v20  ;;  %v583_v20 = vld [vmem:[#allocation8 + $0x5d0] sm:$0xff] }
 0x387   :  { %4579 = vmatpush1.bf16.msra.mxu0 %v4578_v36  ;;  %v4596_v36 = vpack.c.bf16 %v1660_v28, %v1620_v27  ;;  %v623_v21 = vld [vmem:[#allocation8 + $0x710] sm:$0xff]  ;;  %v3388_v27 = vlaneseq  ;;  %v4864_v28 = vpack.c.bf16 %v630_v14, %v590_v13 }
 0x388   :  { %4771 = vmatpush1.bf16.msra.mxu1 %v4770_v0  ;;  %4581 = vmatprep.subr.bf16.mxu0 %v4580_v37  ;;  %v1619_v0 = vld [vmem:[#allocation8 + $0x2630] sm:$0xff] }
 0x389   :  { %4773 = vmatprep.subr.bf16.mxu1 %v4772_v43  ;;  %v1659_v37 = vld [vmem:[#allocation8 + $0x2770] sm:$0xff]  ;;  %v424_v43 = vld [vmem:[#allocation8 + $0xd8] sm:$0xff]  ;;  %v3389_v42 = vshrl.u32 %v3388_v27, 7 }
 0x38a   :  { %v4598_v48 = vpack.c.bf16 %v1659_v37, %v1619_v0  ;;  %v4674_v0 = vpack.c.bf16 %v623_v21, %v583_v20  ;;  %v5485_v37 = vpop.permute.xlu0 %3307  ;;  %v863_v27 = vld [vmem:[#allocation8 + $0xe90] sm:$0xff] }
 0x38b   :  { %4583 = vmatpush1.bf16.msra.mxu0 %v4582_v50  ;;  %v4664_v50 = vpack.c.bf16 %v464_v44, %v424_v43  ;;  %v663_v44 = vld [vmem:[#allocation8 + $0x850] sm:$0xff] }
 0x38c   :  { %4775 = vmatpush1.bf16.msra.mxu1 %v4774_v52  ;;  %4585 = vmatprep.subr.bf16.mxu0 %v4584_v53  ;;  %v423_v52 = vld [vmem:[#allocation8 + $0xd0] sm:$0xff]  ;;  %v4678_v56 = vpack.c.bf16 %v703_v45, %v663_v44 }
 0x38d   :  { %4777 = vmatprep.subr.bf16.mxu1 %v4776_v57  ;;  %v463_v53 = vld [vmem:[#allocation8 + $0x210] sm:$0xff]  ;;  %v504_v57 = vld [vmem:[#allocation8 + $0x358] sm:$0xff] }
 0x38e   :  { %v4666_v59 = vpack.c.bf16 %v463_v53, %v423_v52  ;;  %v4668_v3 = vpack.c.bf16 %v544_v58, %v504_v57  ;;  %v744_v52 = vld [vmem:[#allocation8 + $0xad8] sm:$0xff]  ;;  %v903_v45 = vld [vmem:[#allocation8 + $0xfd0] sm:$0xff] }
 0x38f   :  { %4587 = vmatpush1.bf16.msra.mxu0 %v4586_v63  ;;  %v503_v63 = vld [vmem:[#allocation8 + $0x350] sm:$0xff]  ;;  %v784_v53 = vld [vmem:[#allocation8 + $0xc18] sm:$0xff] }
 0x390   :  { %4779 = vmatpush1.bf16.msra.mxu1 %v4778_v1  ;;  %4589 = vmatprep.subr.bf16.mxu0 %v4588_v2  ;;  %v543_v1 = vld [vmem:[#allocation8 + $0x490] sm:$0xff]  ;;  %v509_v2 = vld [vmem:[#allocation8 + $0x380] sm:$0xff]  ;;  %v4680_v60 = vpack.c.bf16 %v784_v53, %v744_v52 }
 0x391   :  { %4781 = vmatprep.subr.bf16.mxu1 %v4780_v8  ;;  %v624_v8 = vld [vmem:[#allocation8 + $0x718] sm:$0xff]  ;;  %v949_v53 = vld [vmem:[#allocation8 + $0x1140] sm:$0xff] }
 0x393   :  { %4591 = vmatpush1.bf16.msra.mxu0 %v4590_v17  ;;  %v4670_v17 = vpack.c.bf16 %v543_v1, %v503_v63  ;;  %v749_v63 = vld [vmem:[#allocation8 + $0xb00] sm:$0xff]  ;;  %v3340_v1 = vsel %vm3339_vm3, %v5471_v9, %v3302_v16 }
 0x394   :  { %4783 = vmatpush1.bf16.msra.mxu1 %v4782_v18  ;;  %4593 = vmatprep.subr.bf16.mxu0 %v4592_v15  ;;  %v4862_v18 = vpack.c.bf16 %v549_v6, %v509_v2  ;;  %v4672_v15 = vpack.c.bf16 %v624_v8, %v584_v7  ;;  %v789_v7 = vld [vmem:[#allocation8 + $0xc40] sm:$0xff]  ;;  %v824_v8 = vld [vmem:[#allocation8 + $0xd58] sm:$0xff] }
 0x395   :  { %4785 = vmatprep.subr.bf16.mxu1 %v4784_v23  ;;  %v5258_v23 = vmov 1983009808  }
 0x396   :  { %v3386_v26 = vunpack.c.l.s4 %v5258_v23 }
 0x397   :  { %4595 = vmatpush1.bf16.msra.mxu0 %v4594_v32  ;;  %v704_v32 = vld [vmem:[#allocation8 + $0x998] sm:$0xff] }
 0x398   :  { %4787 = vmatpush1.bf16.msra.mxu1 %v4786_v33  ;;  %4597 = vmatprep.subr.bf16.mxu0 %v4596_v36  ;;  %v670_v33 = vld [vmem:[#allocation8 + $0x888] sm:$0xff]  ;;  %v4676_v43 = vpack.c.bf16 %v704_v32, %v664_v31  ;;  %v869_v32 = vld [vmem:[#allocation8 + $0xec0] sm:$0xff] }
 0x399   :  { %4789 = vmatprep.subr.bf16.mxu1 %v4788_v39  ;;  %v710_v36 = vld [vmem:[#allocation8 + $0x9c8] sm:$0xff]  ;;  %v3387_v39 = vunpack.c.0.s8 %v3386_v26  ;;  %v823_v26 = vld [vmem:[#allocation8 + $0xd50] sm:$0xff] }
 0x39b   :  { %4599 = vmatpush1.bf16.msra.mxu0 %v4598_v48  ;;  %v5487_v48 = vpop.permute.xlu1 %3309  ;;  %v5489_v57 = vsub.s32 %v3387_v39, %v3389_v42  ;;  %v4686_v42 = vpack.c.bf16 %v863_v27, %v823_v26 }
 0x39c   :  { %4791 = vmatpush1.bf16.msra.mxu1 %v4790_v49  ;;  %4665 = vmatprep.subr.bf16.mxu0 %v4664_v50  ;;  %v4868_v49 = vpack.c.bf16 %v710_v36, %v670_v33  ;;  %v709_v50 = vld [vmem:[#allocation8 + $0x9c0] sm:$0xff]  ;;  %v904_v33 = vld [vmem:[#allocation8 + $0xfd8] sm:$0xff] }
 0x39d   :  { %4857 = vmatprep.subr.bf16.mxu1 %v4856_v54  ;;  %v750_v54 = vld [vmem:[#allocation8 + $0xb08] sm:$0xff]  ;;  %v944_v36 = vld [vmem:[#allocation8 + $0x1118] sm:$0xff] }
 0x39e   :  { %3719 = vmatmul.mubr.msk.f32.vlgmr.msra.gmra.mrb[12].mxu0 %vm5341_vm2, %v5256_v51  ;;  %v4872_v6 = vpack.c.bf16 %v790_v55, %v750_v54  ;;  %v4688_v44 = vpack.c.bf16 %v944_v36, %v904_v33  ;;  %v984_v54 = vld [vmem:[#allocation8 + $0x1258] sm:$0xff] }
 0x39f   :  { %3725 = vmatmul.mubr.msk.f32.vlgmr.msra.gmra.mrb[16].mxu1 %vm5341_vm2, %v5256_v51  ;;  %4667 = vmatpush1.bf16.msra.mxu0 %v4666_v59  ;;  %v4870_v59 = vpack.c.bf16 %v709_v50, %v669_v46  ;;  %v943_v46 = vld [vmem:[#allocation8 + $0x1110] sm:$0xff]  ;;  %v1024_v55 = vld [vmem:[#allocation8 + $0x1398] sm:$0xff] }
 0x3a0   :  { %3722 = vmatprep.mubr.msk.f32.mxu0 %vm5341_vm2, %v5256_v51  ;;  %4859 = vmatpush1.bf16.msra.mxu1 %v4858_v62  ;;  %v783_v62 = vld [vmem:[#allocation8 + $0xc10] sm:$0xff] }
 0x3a1   :  { %3728 = vmatprep.mubr.msk.f32.mxu1 %vm5341_vm2, %v5256_v51  ;;  %4669 = vmatprep.subr.bf16.mxu0 %v4668_v3  ;;  %v4682_v21 = vpack.c.bf16 %v783_v62, %v743_v61  ;;  %v1030_v61 = vld [vmem:[#allocation8 + $0x13c8] sm:$0xff] }
 0x3a2   :  { %4861 = vmatprep.subr.bf16.mxu1 %v4860_v12  ;;  %v864_v12 = vld [vmem:[#allocation8 + $0xe98] sm:$0xff] }
 0x3a3   :  { %4671 = vmatpush1.bf16.msra.mxu0 %v4670_v17  ;;  %v4684_v23 = vpack.c.bf16 %v864_v12, %v824_v8  ;;  %v983_v8 = vld [vmem:[#allocation8 + $0x1250] sm:$0xff] }
 0x3a4   :  { %4863 = vmatpush1.bf16.msra.mxu1 %v4862_v18  ;;  %4673 = vmatprep.subr.bf16.mxu0 %v4672_v15  ;;  %v830_v18 = vld [vmem:[#allocation8 + $0xd88] sm:$0xff]  ;;  %v1023_v12 = vld [vmem:[#allocation8 + $0x1390] sm:$0xff] }
 0x3a5   :  { %4865 = vmatprep.subr.bf16.mxu1 %v4864_v28  ;;  %v870_v15 = vld [vmem:[#allocation8 + $0xec8] sm:$0xff]  ;;  %v829_v28 = vld [vmem:[#allocation8 + $0xd80] sm:$0xff] }
 0x3a6   :  { %v4876_v31 = vpack.c.bf16 %v870_v15, %v830_v18  ;;  %v1029_v15 = vld [vmem:[#allocation8 + $0x13c0] sm:$0xff] }
 0x3a7   :  { %4675 = vmatpush1.bf16.msra.mxu0 %v4674_v0  ;;  %v910_v0 = vld [vmem:[#allocation8 + $0x1008] sm:$0xff] }
 0x3a8   :  { %4867 = vmatpush1.bf16.msra.mxu1 %v4866_v38  ;;  %v3304_v58 = vpop.permute.xlu0 %3303  ;;  %4677 = vmatprep.subr.bf16.mxu0 %v4676_v43  ;;  %v950_v38 = vld [vmem:[#allocation8 + $0x1148] sm:$0xff]  ;;  %v4878_v43 = vpack.c.bf16 %v869_v32, %v829_v28  ;;  %v1069_v32 = vld [vmem:[#allocation8 + $0x1500] sm:$0xff] }
 0x3a9   :  { %v3341_v2 = vsel %vm3339_vm3, %v3302_v16, %v3304_v58  ;;  %v3306_v3 = vpop.permute.xlu1 %3305  ;;  %4869 = vmatprep.subr.bf16.mxu1 %v4868_v49  ;;  %v4874_v16 = vpack.c.bf16 %v789_v7, %v749_v63  ;;  %v909_v49 = vld [vmem:[#allocation8 + $0x1000] sm:$0xff]  ;;  %v4880_v52 = vpack.c.bf16 %v950_v38, %v910_v0  ;;  %v4692_v7 = vpack.c.bf16 %v1024_v55, %v984_v54  ;;  %v1144_v38 = vld [vmem:[#allocation8 + $0x1758] sm:$0xff] }
 0x3aa   :  { %v3553_v13 = vcombine.low %v3340_v1, %v3341_v2  ;;  %v3342_v14 = vsel %vm3339_vm3, %v3304_v58, %v3306_v3  ;;  %v3343_v17 = vsel %vm3339_vm3, %v3306_v3, %v5485_v37  ;;  %v4690_v1 = vpack.c.bf16 %v943_v46, %v903_v45  ;;  %v1109_v0 = vld [vmem:[#allocation8 + $0x1640] sm:$0xff] }
 0x3ab   :  { %v3554_v20 = vcombine.low %v3342_v14, %v3343_v17  ;;  %4679 = vmatpush1.bf16.msra.mxu0 %v4678_v56  ;;  %v4890_v45 = vpack.c.bf16 %v1109_v0, %v1069_v32  ;;  %v1189_v55 = vld [vmem:[#allocation8 + $0x18c0] sm:$0xff]  ;;  %v1390_v32 = vld [vmem:[#allocation8 + $0x1f08] sm:$0xff] }
 0x3ac   :  { %v3561_v22 = vrot.slane %v3553_v13, %v5489_v57  ;;  %4871 = vmatpush1.bf16.msra.mxu1 %v4870_v59  ;;  %4681 = vmatprep.subr.bf16.mxu0 %v4680_v60  ;;  %v990_v60 = vld [vmem:[#allocation8 + $0x1288] sm:$0xff]  ;;  %v989_v13 = vld [vmem:[#allocation8 + $0x1280] sm:$0xff] }
 0x3ad   :  { %v3568_v30 = vrot.slane %v3554_v20, %v5489_v57  ;;  %4873 = vmatprep.subr.bf16.mxu1 %v4872_v6  ;;  %v4882_v6 = vpack.c.bf16 %v949_v53, %v909_v49  ;;  %v4884_v18 = vpack.c.bf16 %v1030_v61, %v990_v60  ;;  %v1064_v20 = vld [vmem:[#allocation8 + $0x14d8] sm:$0xff]  ;;  %v4886_v27 = vpack.c.bf16 %v1029_v15, %v989_v13  ;;  %v1143_v49 = vld [vmem:[#allocation8 + $0x1750] sm:$0xff]  ;;  %v1149_v53 = vld [vmem:[#allocation8 + $0x1780] sm:$0xff] }
 0x3ae   :  { %v1264_v60 = vld [vmem:[#allocation8 + $0x1b18] sm:$0xff]  ;;  %v1230_v61 = vld [vmem:[#allocation8 + $0x1a08] sm:$0xff]  ;;  %v1269_v13 = vld [vmem:[#allocation8 + $0x1b40] sm:$0xff] }
 0x3af   :  { %v3569_v39 = vcombine.low %v3561_v22, %v3568_v30  ;;  %4683 = vmatpush1.bf16.msra.mxu0 %v4682_v21  ;;  %v1104_v21 = vld [vmem:[#allocation8 + $0x1618] sm:$0xff]  ;;  %v1070_v22 = vld [vmem:[#allocation8 + $0x1508] sm:$0xff]  ;;  %v1063_v30 = vld [vmem:[#allocation8 + $0x14d0] sm:$0xff] }
 0x3b0   :  { %4875 = vmatpush1.bf16.msra.mxu1 %v4874_v16  ;;  %4685 = vmatprep.subr.bf16.mxu0 %v4684_v23  ;;  %v1110_v16 = vld [vmem:[#allocation8 + $0x1648] sm:$0xff]  ;;  %v4694_v23 = vpack.c.bf16 %v1023_v12, %v983_v8  ;;  %v4696_v28 = vpack.c.bf16 %v1104_v21, %v1064_v20  ;;  %v1229_v8 = vld [vmem:[#allocation8 + $0x1a00] sm:$0xff] }
 0x3b1   :  { %3663 = vst [vmem:[#allocation10 + $0x50] sm:$0xff] %v3569_v39  ;;  %v5499_v50 = vpop.f32.mrb[6].mxu0  ;;  %4877 = vmatprep.subr.bf16.mxu1 %v4876_v31  ;;  %v1103_v31 = vld [vmem:[#allocation8 + $0x1610] sm:$0xff]  ;;  %v4888_v36 = vpack.c.bf16 %v1110_v16, %v1070_v22  ;;  %v1184_v39 = vld [vmem:[#allocation8 + $0x1898] sm:$0xff]  ;;  %v1350_v15 = vld [vmem:[#allocation8 + $0x1dc8] sm:$0xff]  ;;  %v4898_v21 = vpack.c.bf16 %v1269_v13, %v1229_v8 }
 0x3b2   :  { %v3167_v56 = vadd.f32 1.0, %v5499_v50  ;;  %v5502_v58 = vpop.f32.mrb[10].mxu1  ;;  %v5504_v59 = vpop.f32.mrb[7].mxu0  ;;  %v4700_v46 = vpack.c.bf16 %v1184_v39, %v1144_v38  ;;  %v1303_v16 = vld [vmem:[#allocation8 + $0x1c50] sm:$0xff]  ;;  %v1590_v8 = vld [vmem:[#allocation8 + $0x2548] sm:$0xff] }
 0x3b3   :  { %v3168_v62 = vadd.f32 1.0, %v5504_v59  ;;  %v5507_v63 = vpop.f32.mrb[11].mxu1  ;;  %4687 = vmatpush1.bf16.msra.mxu0 %v4686_v42  ;;  %v3173_v2 = vadd.f32 1.0, %v5502_v58  ;;  %v1150_v42 = vld [vmem:[#allocation8 + $0x1788] sm:$0xff]  ;;  %v1383_v39 = vld [vmem:[#allocation8 + $0x1ed0] sm:$0xff] }
 0x3b4   :  { %4879 = vmatpush1.bf16.msra.mxu1 %v4878_v43  ;;  %4689 = vmatprep.subr.bf16.mxu0 %v4688_v44  ;;  %v3187_v3 = vsub.f32 0.0, %v3167_v56  ;;  %v3174_v14 = vadd.f32 1.0, %v5507_v63  ;;  %v1190_v43 = vld [vmem:[#allocation8 + $0x18c8] sm:$0xff]  ;;  %v4698_v44 = vpack.c.bf16 %v1103_v31, %v1063_v30  ;;  %v1224_v56 = vld [vmem:[#allocation8 + $0x19d8] sm:$0xff] }
 0x3b5   :  { %4881 = vmatprep.subr.bf16.mxu1 %v4880_v52  ;;  %v3188_v17 = vsub.f32 0.0, %v3168_v62  ;;  %v3193_v26 = vsub.f32 0.0, %v3173_v2  ;;  %v1183_v52 = vld [vmem:[#allocation8 + $0x1890] sm:$0xff]  ;;  %v4892_v54 = vpack.c.bf16 %v1190_v43, %v1150_v42  ;;  %v1270_v62 = vld [vmem:[#allocation8 + $0x1b48] sm:$0xff]  ;;  %v4894_v2 = vpack.c.bf16 %v1189_v55, %v1149_v53  ;;  %v1384_v30 = vld [vmem:[#allocation8 + $0x1ed8] sm:$0xff] }
 0x3b6   :  { %3319 = vrot.lane.b32.xlu0 %v3187_v3, %s5257_s3  ;;  %v3194_v33 = vsub.f32 0.0, %v3174_v14  ;;  %v4704_v3 = vpack.c.bf16 %v1264_v60, %v1224_v56  ;;  %v4896_v12 = vpack.c.bf16 %v1270_v62, %v1230_v61  ;;  %v1304_v14 = vld [vmem:[#allocation8 + $0x1c58] sm:$0xff]  ;;  %v1423_v42 = vld [vmem:[#allocation8 + $0x2010] sm:$0xff]  ;;  %v1389_v43 = vld [vmem:[#allocation8 + $0x1f00] sm:$0xff] }
 0x3b7   :  { %4691 = vmatpush1.bf16.msra.mxu0 %v4690_v1  ;;  %3321 = vrot.lane.b32.xlu1 %v3188_v17, %s5257_s3  ;;  %v4702_v1 = vpack.c.bf16 %v1183_v52, %v1143_v49  ;;  %v1344_v17 = vld [vmem:[#allocation8 + $0x1d98] sm:$0xff]  ;;  %v1470_v52 = vld [vmem:[#allocation8 + $0x2188] sm:$0xff]  ;;  %v1463_v60 = vld [vmem:[#allocation8 + $0x2150] sm:$0xff] }
 0x3b8   :  { %4883 = vmatpush1.bf16.msra.mxu1 %v4882_v6  ;;  %4693 = vmatprep.subr.bf16.mxu0 %v4692_v7  ;;  %v1223_v6 = vld [vmem:[#allocation8 + $0x19d0] sm:$0xff]  ;;  %v4708_v22 = vpack.c.bf16 %v1344_v17, %v1304_v14  ;;  %v1424_v31 = vld [vmem:[#allocation8 + $0x2018] sm:$0xff]  ;;  %v1510_v53 = vld [vmem:[#allocation8 + $0x22c8] sm:$0xff] }
 0x3b9   :  { %4885 = vmatprep.subr.bf16.mxu1 %v4884_v18  ;;  %v1263_v7 = vld [vmem:[#allocation8 + $0x1b10] sm:$0xff]  ;;  %v1310_v18 = vld [vmem:[#allocation8 + $0x1c88] sm:$0xff]  ;;  %v4712_v38 = vpack.c.bf16 %v1424_v31, %v1384_v30  ;;  %v1504_v49 = vld [vmem:[#allocation8 + $0x2298] sm:$0xff] }
 0x3ba   :  { %3331 = vrot.lane.b32.xlu0 %v3193_v26, %s5257_s3  ;;  %v4706_v20 = vpack.c.bf16 %v1263_v7, %v1223_v6  ;;  %v1309_v26 = vld [vmem:[#allocation8 + $0x1c80] sm:$0xff]  ;;  %v1503_v61 = vld [vmem:[#allocation8 + $0x2290] sm:$0xff]  ;;  %v1584_v6 = vld [vmem:[#allocation8 + $0x2518] sm:$0xff] }
 0x3bb   :  { %4695 = vmatpush1.bf16.msra.mxu0 %v4694_v23  ;;  %3333 = vrot.lane.b32.xlu1 %v3194_v33, %s5257_s3  ;;  %v1343_v23 = vld [vmem:[#allocation8 + $0x1d90] sm:$0xff]  ;;  %v1430_v33 = vld [vmem:[#allocation8 + $0x2048] sm:$0xff]  ;;  %v1469_v62 = vld [vmem:[#allocation8 + $0x2180] sm:$0xff] }
 0x3bc   :  { %4887 = vmatpush1.bf16.msra.mxu1 %v4886_v27  ;;  %4697 = vmatprep.subr.bf16.mxu0 %v4696_v28  ;;  %v4900_v27 = vpack.c.bf16 %v1350_v15, %v1310_v18  ;;  %v1349_v28 = vld [vmem:[#allocation8 + $0x1dc0] sm:$0xff]  ;;  %v1550_v7 = vld [vmem:[#allocation8 + $0x2408] sm:$0xff]  ;;  %v1543_v17 = vld [vmem:[#allocation8 + $0x23d0] sm:$0xff] }
 0x3bd   :  { %4889 = vmatprep.subr.bf16.mxu1 %v4888_v36  ;;  %v4710_v36 = vpack.c.bf16 %v1343_v23, %v1303_v16  ;;  %v4902_v0 = vpack.c.bf16 %v1349_v28, %v1309_v26  ;;  %v1583_v18 = vld [vmem:[#allocation8 + $0x2510] sm:$0xff]  ;;  %v1549_v15 = vld [vmem:[#allocation8 + $0x2400] sm:$0xff]  ;;  %v1664_v16 = vld [vmem:[#allocation8 + $0x2798] sm:$0xff] }
 0x3be   :  { %v1630_v23 = vld [vmem:[#allocation8 + $0x2688] sm:$0xff]  ;;  %v1623_v31 = vld [vmem:[#allocation8 + $0x2650] sm:$0xff] }
 0x3bf   :  { %4699 = vmatpush1.bf16.msra.mxu0 %v4698_v44  ;;  %v4904_v44 = vpack.c.bf16 %v1430_v33, %v1390_v32  ;;  %v1670_v26 = vld [vmem:[#allocation8 + $0x27c8] sm:$0xff]  ;;  %v1663_v32 = vld [vmem:[#allocation8 + $0x2790] sm:$0xff]  ;;  %v1629_v33 = vld [vmem:[#allocation8 + $0x2680] sm:$0xff] }
 0x3c0   :  { %4891 = vmatpush1.bf16.msra.mxu1 %v4890_v45  ;;  %4701 = vmatprep.subr.bf16.mxu0 %v4700_v46  ;;  %v1429_v45 = vld [vmem:[#allocation8 + $0x2040] sm:$0xff]  ;;  %v1464_v46 = vld [vmem:[#allocation8 + $0x2158] sm:$0xff] }
 0x3c1   :  { %4893 = vmatprep.subr.bf16.mxu1 %v4892_v54  ;;  %v4714_v54 = vpack.c.bf16 %v1423_v42, %v1383_v39  ;;  %v4906_v55 = vpack.c.bf16 %v1429_v45, %v1389_v43  ;;  %v4716_v56 = vpack.c.bf16 %v1504_v49, %v1464_v46  ;;  %v468_v39 = vld [vmem:[#allocation8 + $0x238] sm:$0xff]  ;;  %v434_v42 = vld [vmem:[#allocation8 + $0x128] sm:$0xff]  ;;  %v427_v49 = vld [vmem:[#allocation8 + $0xf0] sm:$0xff] }
 0x3c2   :  { %v474_v43 = vld [vmem:[#allocation8 + $0x268] sm:$0xff] }
 0x3c3   :  { %4703 = vmatpush1.bf16.msra.mxu0 %v4702_v1  ;;  %v4908_v1 = vpack.c.bf16 %v1510_v53, %v1470_v52  ;;  %v467_v52 = vld [vmem:[#allocation8 + $0x230] sm:$0xff]  ;;  %v4984_v53 = vpack.c.bf16 %v474_v43, %v434_v42 }
 0x3c4   :  { %4895 = vmatpush1.bf16.msra.mxu1 %v4894_v2  ;;  %4705 = vmatprep.subr.bf16.mxu0 %v4704_v3  ;;  %v1509_v2 = vld [vmem:[#allocation8 + $0x22c0] sm:$0xff]  ;;  %v1544_v3 = vld [vmem:[#allocation8 + $0x23d8] sm:$0xff]  ;;  %v667_v42 = vld [vmem:[#allocation8 + $0x870] sm:$0xff] }
 0x3c5   :  { %4897 = vmatprep.subr.bf16.mxu1 %v4896_v12  ;;  %v4718_v12 = vpack.c.bf16 %v1503_v61, %v1463_v60  ;;  %v4910_v13 = vpack.c.bf16 %v1509_v2, %v1469_v62  ;;  %v4720_v14 = vpack.c.bf16 %v1584_v6, %v1544_v3  ;;  %v548_v60 = vld [vmem:[#allocation8 + $0x4b8] sm:$0xff]  ;;  %v4794_v61 = vpack.c.bf16 %v467_v52, %v427_v49  ;;  %v514_v62 = vld [vmem:[#allocation8 + $0x3a8] sm:$0xff]  ;;  %v507_v3 = vld [vmem:[#allocation8 + $0x370] sm:$0xff] }
 0x3c6   :  { %v547_v6 = vld [vmem:[#allocation8 + $0x4b0] sm:$0xff]  ;;  %v713_v49 = vld [vmem:[#allocation8 + $0x9e0] sm:$0xff]  ;;  %v748_v52 = vld [vmem:[#allocation8 + $0xaf8] sm:$0xff] }
 0x3c7   :  { %4707 = vmatpush1.bf16.msra.mxu0 %v4706_v20  ;;  %v4912_v20 = vpack.c.bf16 %v1590_v8, %v1550_v7  ;;  %v513_v7 = vld [vmem:[#allocation8 + $0x3a0] sm:$0xff]  ;;  %v707_v43 = vld [vmem:[#allocation8 + $0x9b0] sm:$0xff] }
 0x3c8   :  { %4899 = vmatpush1.bf16.msra.mxu1 %v4898_v21  ;;  %4709 = vmatprep.subr.bf16.mxu0 %v4708_v22  ;;  %v1589_v21 = vld [vmem:[#allocation8 + $0x2540] sm:$0xff]  ;;  %v1624_v22 = vld [vmem:[#allocation8 + $0x2658] sm:$0xff] }
 0x3c9   :  { %4901 = vmatprep.subr.bf16.mxu1 %v4900_v27  ;;  %v4722_v27 = vpack.c.bf16 %v1583_v18, %v1543_v17  ;;  %v4914_v28 = vpack.c.bf16 %v1589_v21, %v1549_v15  ;;  %v4724_v30 = vpack.c.bf16 %v1664_v16, %v1624_v22  ;;  %v594_v18 = vld [vmem:[#allocation8 + $0x628] sm:$0xff]  ;;  %v587_v16 = vld [vmem:[#allocation8 + $0x5f0] sm:$0xff] }
 0x3ca   :  { %v634_v15 = vld [vmem:[#allocation8 + $0x768] sm:$0xff] }
 0x3cb   :  { %4711 = vmatpush1.bf16.msra.mxu0 %v4710_v36  ;;  %v4916_v36 = vpack.c.bf16 %v1670_v26, %v1630_v23  ;;  %v627_v23 = vld [vmem:[#allocation8 + $0x730] sm:$0xff]  ;;  %v593_v26 = vld [vmem:[#allocation8 + $0x620] sm:$0xff] }
 0x3cc   :  { %4903 = vmatpush1.bf16.msra.mxu1 %v4902_v0  ;;  %4713 = vmatprep.subr.bf16.mxu0 %v4712_v38  ;;  %v1669_v0 = vld [vmem:[#allocation8 + $0x27c0] sm:$0xff]  ;;  %v428_v38 = vld [vmem:[#allocation8 + $0xf8] sm:$0xff] }
 0x3cd   :  { %4905 = vmatprep.subr.bf16.mxu1 %v4904_v44  ;;  %v4726_v44 = vpack.c.bf16 %v1663_v32, %v1623_v31  ;;  %v4918_v45 = vpack.c.bf16 %v1669_v0, %v1629_v33  ;;  %v4792_v46 = vpack.c.bf16 %v468_v39, %v428_v38  ;;  %v708_v31 = vld [vmem:[#allocation8 + $0x9b8] sm:$0xff]  ;;  %v674_v32 = vld [vmem:[#allocation8 + $0x8a8] sm:$0xff]  ;;  %v5527_v0 = vpop.permute.xlu0 %3315 }
 0x3ce   :  { %v714_v33 = vld [vmem:[#allocation8 + $0x9e8] sm:$0xff] }
 0x3cf   :  { %4715 = vmatpush1.bf16.msra.mxu0 %v4714_v54  ;;  %v433_v54 = vld [vmem:[#allocation8 + $0x120] sm:$0xff] }
 0x3d0   :  { %4907 = vmatpush1.bf16.msra.mxu1 %v4906_v55  ;;  %4717 = vmatprep.subr.bf16.mxu0 %v4716_v56  ;;  %v473_v55 = vld [vmem:[#allocation8 + $0x260] sm:$0xff]  ;;  %v508_v56 = vld [vmem:[#allocation8 + $0x378] sm:$0xff] }
 0x3d1   :  { %4909 = vmatprep.subr.bf16.mxu1 %v4908_v1  ;;  %v554_v1 = vld [vmem:[#allocation8 + $0x4e8] sm:$0xff]  ;;  %v4986_v2 = vpack.c.bf16 %v473_v55, %v433_v54  ;;  %v4796_v8 = vpack.c.bf16 %v548_v60, %v508_v56  ;;  %v4806_v56 = vpack.c.bf16 %v707_v43, %v667_v42 }
 0x3d2   :  { %v4988_v17 = vpack.c.bf16 %v554_v1, %v514_v62  ;;  %v754_v54 = vld [vmem:[#allocation8 + $0xb28] sm:$0xff]  ;;  %v747_v1 = vld [vmem:[#allocation8 + $0xaf0] sm:$0xff] }
 0x3d3   :  { %4719 = vmatpush1.bf16.msra.mxu0 %v4718_v12  ;;  %v553_v12 = vld [vmem:[#allocation8 + $0x4e0] sm:$0xff]  ;;  %v794_v55 = vld [vmem:[#allocation8 + $0xc68] sm:$0xff] }
 0x3d4   :  { %4911 = vmatpush1.bf16.msra.mxu1 %v4910_v13  ;;  %4721 = vmatprep.subr.bf16.mxu0 %v4720_v14  ;;  %v588_v13 = vld [vmem:[#allocation8 + $0x5f8] sm:$0xff]  ;;  %v4990_v21 = vpack.c.bf16 %v553_v12, %v513_v7  ;;  %v5000_v12 = vpack.c.bf16 %v794_v55, %v754_v54  ;;  %v954_v42 = vld [vmem:[#allocation8 + $0x1168] sm:$0xff]  ;;  %v913_v54 = vld [vmem:[#allocation8 + $0x1020] sm:$0xff] }
 0x3d5   :  { %4913 = vmatprep.subr.bf16.mxu1 %v4912_v20  ;;  %v628_v14 = vld [vmem:[#allocation8 + $0x738] sm:$0xff]  ;;  %v4798_v20 = vpack.c.bf16 %v547_v6, %v507_v3  ;;  %v753_v3 = vld [vmem:[#allocation8 + $0xb20] sm:$0xff]  ;;  %v3344_v6 = vsel %vm3339_vm3, %v5485_v37, %v5487_v48 }
 0x3d6   :  { %v4800_v22 = vpack.c.bf16 %v628_v14, %v588_v13  ;;  %v793_v13 = vld [vmem:[#allocation8 + $0xc60] sm:$0xff]  ;;  %v828_v14 = vld [vmem:[#allocation8 + $0xd78] sm:$0xff] }
 0x3d7   :  { %4723 = vmatpush1.bf16.msra.mxu0 %v4722_v27  ;;  %v4992_v27 = vpack.c.bf16 %v634_v15, %v594_v18  ;;  %v953_v55 = vld [vmem:[#allocation8 + $0x1160] sm:$0xff] }
 0x3d8   :  { %4915 = vmatpush1.bf16.msra.mxu1 %v4914_v28  ;;  %4725 = vmatprep.subr.bf16.mxu0 %v4724_v30  ;;  %v633_v28 = vld [vmem:[#allocation8 + $0x760] sm:$0xff]  ;;  %v668_v30 = vld [vmem:[#allocation8 + $0x878] sm:$0xff] }
 0x3d9   :  { %4917 = vmatprep.subr.bf16.mxu1 %v4916_v36  ;;  %v4802_v36 = vpack.c.bf16 %v627_v23, %v587_v16  ;;  %v4994_v38 = vpack.c.bf16 %v633_v28, %v593_v26  ;;  %v4804_v39 = vpack.c.bf16 %v708_v31, %v668_v30  ;;  %v867_v28 = vld [vmem:[#allocation8 + $0xeb0] sm:$0xff]  ;;  %v833_v30 = vld [vmem:[#allocation8 + $0xda0] sm:$0xff] }
 0x3db   :  { %4727 = vmatpush1.bf16.msra.mxu0 %v4726_v44  ;;  %v673_v44 = vld [vmem:[#allocation8 + $0x8a0] sm:$0xff] }
 0x3dc   :  { %4919 = vmatpush1.bf16.msra.mxu1 %v4918_v45  ;;  %4793 = vmatprep.subr.bf16.mxu0 %v4792_v46  ;;  %v5529_v45 = vpop.permute.xlu1 %3317  ;;  %v4996_v46 = vpack.c.bf16 %v714_v33, %v674_v32  ;;  %v873_v33 = vld [vmem:[#allocation8 + $0xee0] sm:$0xff] }
 0x3dd   :  { %4985 = vmatprep.subr.bf16.mxu1 %v4984_v53  ;;  %v788_v53 = vld [vmem:[#allocation8 + $0xc38] sm:$0xff] }
 0x3de   :  { %3723 = vmatmul.mubr.msk.f32.vlgmr.msra.gmra.mrb[14].mxu0 %vm5341_vm2, %v5256_v51  ;;  %v4808_v62 = vpack.c.bf16 %v788_v53, %v748_v52  ;;  %v5006_v52 = vpack.c.bf16 %v873_v33, %v833_v30 }
 0x3df   :  { %3729 = vmatmul.mubr.msk.f32.vlgmr.msra.gmra.mrb[18].mxu1 %vm5341_vm2, %v5256_v51  ;;  %4795 = vmatpush1.bf16.msra.mxu0 %v4794_v61  ;;  %v4998_v61 = vpack.c.bf16 %v713_v49, %v673_v44  ;;  %v947_v49 = vld [vmem:[#allocation8 + $0x1130] sm:$0xff] }
 0x3e0   :  { %3726 = vmatprep.mubr.msk.f32.mxu0 %vm5341_vm2, %v5256_v51  ;;  %4987 = vmatpush1.bf16.msra.mxu1 %v4986_v2  ;;  %v787_v2 = vld [vmem:[#allocation8 + $0xc30] sm:$0xff] }
 0x3e1   :  { %3732 = vmatprep.mubr.msk.f32.mxu1 %vm5341_vm2, %v5256_v51  ;;  %4797 = vmatprep.subr.bf16.mxu0 %v4796_v8  ;;  %v4810_v37 = vpack.c.bf16 %v787_v2, %v747_v1 }
 0x3e2   :  { %4989 = vmatprep.subr.bf16.mxu1 %v4988_v17  ;;  %v868_v17 = vld [vmem:[#allocation8 + $0xeb8] sm:$0xff] }
 0x3e3   :  { %4799 = vmatpush1.bf16.msra.mxu0 %v4798_v20  ;;  %v4812_v26 = vpack.c.bf16 %v868_v17, %v828_v14  ;;  %v5010_v17 = vpack.c.bf16 %v953_v55, %v913_v54  ;;  %v1154_v54 = vld [vmem:[#allocation8 + $0x17a8] sm:$0xff] }
 0x3e4   :  { %4991 = vmatpush1.bf16.msra.mxu1 %v4990_v21  ;;  %4801 = vmatprep.subr.bf16.mxu0 %v4800_v22  ;;  %v834_v21 = vld [vmem:[#allocation8 + $0xda8] sm:$0xff] }
 0x3e5   :  { %4993 = vmatprep.subr.bf16.mxu1 %v4992_v27  ;;  %v874_v22 = vld [vmem:[#allocation8 + $0xee8] sm:$0xff]  ;;  %v827_v27 = vld [vmem:[#allocation8 + $0xd70] sm:$0xff] }
 0x3e6   :  { %v5004_v32 = vpack.c.bf16 %v874_v22, %v834_v21  ;;  %v4814_v44 = vpack.c.bf16 %v867_v28, %v827_v27  ;;  %v987_v21 = vld [vmem:[#allocation8 + $0x1270] sm:$0xff]  ;;  %v1068_v27 = vld [vmem:[#allocation8 + $0x14f8] sm:$0xff]  ;;  %v1194_v55 = vld [vmem:[#allocation8 + $0x18e8] sm:$0xff] }
 0x3e7   :  { %4803 = vmatpush1.bf16.msra.mxu0 %v4802_v36  ;;  %v908_v36 = vld [vmem:[#allocation8 + $0xff8] sm:$0xff]  ;;  %v1027_v22 = vld [vmem:[#allocation8 + $0x13b0] sm:$0xff] }
 0x3e8   :  { %4995 = vmatpush1.bf16.msra.mxu1 %v4994_v38  ;;  %v3312_v60 = vpop.permute.xlu0 %3311  ;;  %4805 = vmatprep.subr.bf16.mxu0 %v4804_v39  ;;  %v948_v38 = vld [vmem:[#allocation8 + $0x1138] sm:$0xff]  ;;  %v914_v39 = vld [vmem:[#allocation8 + $0x1028] sm:$0xff]  ;;  %v4822_v33 = vpack.c.bf16 %v1027_v22, %v987_v21 }
 0x3e9   :  { %v3345_v7 = vsel %vm3339_vm3, %v5487_v48, %v3312_v60  ;;  %v3314_v8 = vpop.permute.xlu1 %3313  ;;  %4997 = vmatprep.subr.bf16.mxu1 %v4996_v46  ;;  %v5002_v48 = vpack.c.bf16 %v793_v13, %v753_v3  ;;  %v907_v46 = vld [vmem:[#allocation8 + $0xff0] sm:$0xff]  ;;  %v4816_v53 = vpack.c.bf16 %v948_v38, %v908_v36  ;;  %v1108_v28 = vld [vmem:[#allocation8 + $0x1638] sm:$0xff] }
 0x3ea   :  { %v3570_v18 = vcombine.low %v3344_v6, %v3345_v7  ;;  %v3346_v15 = vsel %vm3339_vm3, %v3312_v60, %v3314_v8  ;;  %v3347_v20 = vsel %vm3339_vm3, %v3314_v8, %v5527_v0  ;;  %v5008_v60 = vpack.c.bf16 %v954_v42, %v914_v39  ;;  %v994_v6 = vld [vmem:[#allocation8 + $0x12a8] sm:$0xff]  ;;  %v1067_v39 = vld [vmem:[#allocation8 + $0x14f0] sm:$0xff] }
 0x3eb   :  { %v3571_v16 = vcombine.low %v3346_v15, %v3347_v20  ;;  %4807 = vmatpush1.bf16.msra.mxu0 %v4806_v56  ;;  %v4818_v3 = vpack.c.bf16 %v947_v49, %v907_v46  ;;  %v1034_v7 = vld [vmem:[#allocation8 + $0x13e8] sm:$0xff]  ;;  %v4824_v38 = vpack.c.bf16 %v1108_v28, %v1068_v27  ;;  %v1107_v42 = vld [vmem:[#allocation8 + $0x1630] sm:$0xff]  ;;  %v1113_v49 = vld [vmem:[#allocation8 + $0x1660] sm:$0xff] }
 0x3ec   :  { %v3578_v23 = vrot.slane %v3570_v18, %v5489_v57  ;;  %4999 = vmatpush1.bf16.msra.mxu1 %v4998_v61  ;;  %4809 = vmatprep.subr.bf16.mxu0 %v4808_v62  ;;  %v988_v61 = vld [vmem:[#allocation8 + $0x1278] sm:$0xff]  ;;  %v1314_v28 = vld [vmem:[#allocation8 + $0x1ca8] sm:$0xff] }
 0x3ed   :  { %v3585_v31 = vrot.slane %v3571_v16, %v5489_v57  ;;  %5001 = vmatprep.subr.bf16.mxu1 %v5000_v12  ;;  %v1028_v62 = vld [vmem:[#allocation8 + $0x13b8] sm:$0xff]  ;;  %v993_v16 = vld [vmem:[#allocation8 + $0x12a0] sm:$0xff] }
 0x3ee   :  { %v4820_v20 = vpack.c.bf16 %v1028_v62, %v988_v61  ;;  %v1348_v27 = vld [vmem:[#allocation8 + $0x1db8] sm:$0xff] }
 0x3ef   :  { %v3586_v43 = vcombine.low %v3578_v23, %v3585_v31  ;;  %4811 = vmatpush1.bf16.msra.mxu0 %v4810_v37  ;;  %v1074_v31 = vld [vmem:[#allocation8 + $0x1528] sm:$0xff] }
 0x3f0   :  { %5003 = vmatpush1.bf16.msra.mxu1 %v5002_v48  ;;  %4813 = vmatprep.subr.bf16.mxu0 %v4812_v26  ;;  %v5012_v48 = vpack.c.bf16 %v1034_v7, %v994_v6  ;;  %v1033_v26 = vld [vmem:[#allocation8 + $0x13e0] sm:$0xff]  ;;  %v5020_v7 = vpack.c.bf16 %v1194_v55, %v1154_v54 }
 0x3f1   :  { %3664 = vst [vmem:[#allocation10 + $0x58] sm:$0xff] %v3586_v43  ;;  %v5541_v56 = vpop.f32.mrb[8].mxu0  ;;  %5005 = vmatprep.subr.bf16.mxu1 %v5004_v32  ;;  %v1114_v32 = vld [vmem:[#allocation8 + $0x1668] sm:$0xff]  ;;  %v5014_v36 = vpack.c.bf16 %v1033_v26, %v993_v16  ;;  %v1073_v43 = vld [vmem:[#allocation8 + $0x1520] sm:$0xff]  ;;  %v1227_v16 = vld [vmem:[#allocation8 + $0x19f0] sm:$0xff] }
 0x3f2   :  { %v2453_v1 = vpop.f32.mrb[12].mxu1  ;;  %v5543_v2 = vpop.f32.mrb[9].mxu0  ;;  %v3171_v37 = vadd.f32 1.0, %v5541_v56  ;;  %v5016_v46 = vpack.c.bf16 %v1114_v32, %v1074_v31  ;;  %v5018_v61 = vpack.c.bf16 %v1113_v49, %v1073_v43  ;;  %v1153_v6 = vld [vmem:[#allocation8 + $0x17a0] sm:$0xff]  ;;  %v1308_v26 = vld [vmem:[#allocation8 + $0x1c78] sm:$0xff]  ;;  %v1354_v31 = vld [vmem:[#allocation8 + $0x1de8] sm:$0xff] }
 0x3f3   :  { %v5546_v8 = vmul.f32 %v2453_v1, %v5399_v4  ;;  %v3117_v12 = vadd.f32 %v2453_v1, %v5399_v4  ;;  %v3172_v13 = vadd.f32 1.0, %v5543_v2  ;;  %v2455_v14 = vpop.f32.mrb[13].mxu1  ;;  %4815 = vmatpush1.bf16.msra.mxu0 %v4814_v44  ;;  %v1147_v1 = vld [vmem:[#allocation8 + $0x1770] sm:$0xff]  ;;  %v1353_v43 = vld [vmem:[#allocation8 + $0x1de0] sm:$0xff]  ;;  %v1394_v49 = vld [vmem:[#allocation8 + $0x1f28] sm:$0xff] }
 0x3f4   :  { %v5551_v18 = vmul.f32 %v2455_v14, %v5403_v10  ;;  %v3118_v15 = vadd.f32 %v2455_v14, %v5403_v10  ;;  %5007 = vmatpush1.bf16.msra.mxu1 %v5006_v52  ;;  %4817 = vmatprep.subr.bf16.mxu0 %v4816_v53  ;;  %v3191_v44 = vsub.f32 0.0, %v3171_v37  ;;  %v1148_v52 = vld [vmem:[#allocation8 + $0x1778] sm:$0xff]  ;;  %v1267_v37 = vld [vmem:[#allocation8 + $0x1b30] sm:$0xff] }
 0x3f5   :  { %v3137_v4 = vsub.f32 %v3117_v12, %v5546_v8  ;;  %5009 = vmatprep.subr.bf16.mxu1 %v5008_v60  ;;  %v3192_v23 = vsub.f32 0.0, %v3172_v13  ;;  %v1188_v53 = vld [vmem:[#allocation8 + $0x18b8] sm:$0xff]  ;;  %v4826_v60 = vpack.c.bf16 %v1107_v42, %v1067_v39  ;;  %v1193_v12 = vld [vmem:[#allocation8 + $0x18e0] sm:$0xff]  ;;  %v4834_v32 = vpack.c.bf16 %v1267_v37, %v1227_v16 }
 0x3f6   :  { %v3138_v30 = vsub.f32 %v3118_v15, %v5551_v18  ;;  %v3383_v10 = vcombine.low %v5546_v8, %v5551_v18  ;;  %v4828_v62 = vpack.c.bf16 %v1188_v53, %v1148_v52  ;;  %v1228_v13 = vld [vmem:[#allocation8 + $0x19f8] sm:$0xff]  ;;  %v1274_v15 = vld [vmem:[#allocation8 + $0x1b68] sm:$0xff]  ;;  %v5022_v21 = vpack.c.bf16 %v1193_v12, %v1153_v6  ;;  %v1313_v39 = vld [vmem:[#allocation8 + $0x1ca0] sm:$0xff] }
 0x3f7   :  { %3217 = vrot.lane.b32.xlu0 %v3137_v4, %s5259_s11  ;;  %4819 = vmatpush1.bf16.msra.mxu0 %v4818_v3  ;;  %v1187_v3 = vld [vmem:[#allocation8 + $0x18b0] sm:$0xff]  ;;  %v1268_v14 = vld [vmem:[#allocation8 + $0x1b38] sm:$0xff]  ;;  %v1233_v4 = vld [vmem:[#allocation8 + $0x1a20] sm:$0xff]  ;;  %v5028_v42 = vpack.c.bf16 %v1354_v31, %v1314_v28  ;;  %v5030_v54 = vpack.c.bf16 %v1353_v43, %v1313_v39 }
 0x3f8   :  { %5011 = vmatpush1.bf16.msra.mxu1 %v5010_v17  ;;  %3329 = vrot.lane.b32.xlu1 %v3192_v23, %s5257_s3  ;;  %v1234_v17 = vld [vmem:[#allocation8 + $0x1a28] sm:$0xff]  ;;  %v4832_v22 = vpack.c.bf16 %v1268_v14, %v1228_v13  ;;  %v1468_v6 = vld [vmem:[#allocation8 + $0x2178] sm:$0xff]  ;;  %v1513_v37 = vld [vmem:[#allocation8 + $0x22e0] sm:$0xff] }
 0x3f9   :  { %4821 = vmatprep.subr.bf16.mxu0 %v4820_v20  ;;  %5013 = vmatprep.subr.bf16.mxu1 %v5012_v48  ;;  %v4830_v20 = vpack.c.bf16 %v1187_v3, %v1147_v1  ;;  %v5024_v23 = vpack.c.bf16 %v1274_v15, %v1234_v17  ;;  %v1273_v48 = vld [vmem:[#allocation8 + $0x1b60] sm:$0xff]  ;;  %v1434_v52 = vld [vmem:[#allocation8 + $0x2068] sm:$0xff]  ;;  %v1628_v39 = vld [vmem:[#allocation8 + $0x2678] sm:$0xff] }
 0x3fa   :  { %v5032_v1 = vpack.c.bf16 %v1434_v52, %v1394_v49  ;;  %v1433_v3 = vld [vmem:[#allocation8 + $0x2060] sm:$0xff]  ;;  %v1474_v12 = vld [vmem:[#allocation8 + $0x21a8] sm:$0xff]  ;;  %v1155_v18 = vld [vmem:[#allocation8 + $0x17b0] sm:$0xff] }
 0x3fb   :  { %3327 = vrot.lane.b32.xlu0 %v3191_v44, %s5257_s3  ;;  %4823 = vmatpush1.bf16.msra.mxu0 %v4822_v33  ;;  %v4836_v33 = vpack.c.bf16 %v1348_v27, %v1308_v26  ;;  %v1388_v44 = vld [vmem:[#allocation8 + $0x1ef8] sm:$0xff]  ;;  %v1514_v13 = vld [vmem:[#allocation8 + $0x22e8] sm:$0xff] }
 0x3fc   :  { %5015 = vmatpush1.bf16.msra.mxu1 %v5014_v36  ;;  %4825 = vmatprep.subr.bf16.mxu0 %v4824_v38  ;;  %v1307_v36 = vld [vmem:[#allocation8 + $0x1c70] sm:$0xff]  ;;  %v5036_v16 = vpack.c.bf16 %v1514_v13, %v1474_v12  ;;  %v1594_v26 = vld [vmem:[#allocation8 + $0x2568] sm:$0xff] }
 0x3fd   :  { %5017 = vmatprep.subr.bf16.mxu1 %v5016_v46  ;;  %v1347_v38 = vld [vmem:[#allocation8 + $0x1db0] sm:$0xff]  ;;  %v1428_v46 = vld [vmem:[#allocation8 + $0x2038] sm:$0xff]  ;;  %v1634_v43 = vld [vmem:[#allocation8 + $0x26a8] sm:$0xff] }
 0x3fe   :  { %v4838_v53 = vpack.c.bf16 %v1347_v38, %v1307_v36  ;;  %v4840_v55 = vpack.c.bf16 %v1428_v46, %v1388_v44  ;;  %v1593_v38 = vld [vmem:[#allocation8 + $0x2560] sm:$0xff]  ;;  %v1674_v44 = vld [vmem:[#allocation8 + $0x27e8] sm:$0xff]  ;;  %v431_v12 = vld [vmem:[#allocation8 + $0x110] sm:$0xff] }
 0x3ff   :  { %3219 = vrot.lane.b32.xlu0 %v3138_v30, %s5259_s11  ;;  %4827 = vmatpush1.bf16.msra.mxu0 %v4826_v60  ;;  %v5026_v30 = vpack.c.bf16 %v1273_v48, %v1233_v4  ;;  %v1387_v60 = vld [vmem:[#allocation8 + $0x1ef0] sm:$0xff]  ;;  %v1548_v4 = vld [vmem:[#allocation8 + $0x23f8] sm:$0xff]  ;;  %v1554_v48 = vld [vmem:[#allocation8 + $0x2428] sm:$0xff] }
 0x400   :  { %5019 = vmatpush1.bf16.msra.mxu1 %v5018_v61  ;;  %4829 = vmatprep.subr.bf16.mxu0 %v4828_v62  ;;  %v1427_v61 = vld [vmem:[#allocation8 + $0x2030] sm:$0xff]  ;;  %v1393_v62 = vld [vmem:[#allocation8 + $0x1f20] sm:$0xff]  ;;  %v5040_v36 = vpack.c.bf16 %v1594_v26, %v1554_v48 }
 0x401   :  { %5021 = vmatprep.subr.bf16.mxu1 %v5020_v7  ;;  %v1508_v7 = vld [vmem:[#allocation8 + $0x22b8] sm:$0xff]  ;;  %v4842_v14 = vpack.c.bf16 %v1427_v61, %v1387_v60  ;;  %v5034_v17 = vpack.c.bf16 %v1433_v3, %v1393_v62  ;;  %v5044_v60 = vpack.c.bf16 %v1674_v44, %v1634_v43  ;;  %v1673_v61 = vld [vmem:[#allocation8 + $0x27e0] sm:$0xff]  ;;  %v471_v13 = vld [vmem:[#allocation8 + $0x250] sm:$0xff] }
 0x402   :  { %v4844_v15 = vpack.c.bf16 %v1508_v7, %v1468_v6  ;;  %v432_v62 = vld [vmem:[#allocation8 + $0x118] sm:$0xff]  ;;  %v591_v48 = vld [vmem:[#allocation8 + $0x610] sm:$0xff] }
 0x403   :  { %4831 = vmatpush1.bf16.msra.mxu0 %v4830_v20  ;;  %v1467_v20 = vld [vmem:[#allocation8 + $0x2170] sm:$0xff] }
 0x404   :  { %5023 = vmatpush1.bf16.msra.mxu1 %v5022_v21  ;;  %4833 = vmatprep.subr.bf16.mxu0 %v4832_v22  ;;  %v1507_v21 = vld [vmem:[#allocation8 + $0x22b0] sm:$0xff]  ;;  %v1473_v22 = vld [vmem:[#allocation8 + $0x21a0] sm:$0xff] }
 0x405   :  { %5025 = vmatprep.subr.bf16.mxu1 %v5024_v23  ;;  %v1588_v23 = vld [vmem:[#allocation8 + $0x2538] sm:$0xff]  ;;  %v4846_v27 = vpack.c.bf16 %v1507_v21, %v1467_v20  ;;  %v5038_v28 = vpack.c.bf16 %v1513_v37, %v1473_v22  ;;  %v511_v21 = vld [vmem:[#allocation8 + $0x390] sm:$0xff] }
 0x406   :  { %v4848_v31 = vpack.c.bf16 %v1588_v23, %v1548_v4  ;;  %v551_v22 = vld [vmem:[#allocation8 + $0x4d0] sm:$0xff]  ;;  %v632_v37 = vld [vmem:[#allocation8 + $0x758] sm:$0xff] }
 0x407   :  { %4835 = vmatpush1.bf16.msra.mxu0 %v4834_v32  ;;  %v1547_v32 = vld [vmem:[#allocation8 + $0x23f0] sm:$0xff]  ;;  %v4926_v4 = vpack.c.bf16 %v551_v22, %v511_v21 }
 0x408   :  { %5027 = vmatpush1.bf16.msra.mxu1 %v5026_v30  ;;  %4837 = vmatprep.subr.bf16.mxu0 %v4836_v33  ;;  %v1587_v30 = vld [vmem:[#allocation8 + $0x2530] sm:$0xff]  ;;  %v1553_v33 = vld [vmem:[#allocation8 + $0x2420] sm:$0xff] }
 0x409   :  { %5029 = vmatprep.subr.bf16.mxu1 %v5028_v42  ;;  %v1668_v42 = vld [vmem:[#allocation8 + $0x27b8] sm:$0xff]  ;;  %v4850_v46 = vpack.c.bf16 %v1587_v30, %v1547_v32  ;;  %v5042_v49 = vpack.c.bf16 %v1593_v38, %v1553_v33  ;;  %v631_v26 = vld [vmem:[#allocation8 + $0x750] sm:$0xff]  ;;  %v5572_v32 = vpop.permute.xlu0 %3323  ;;  %v5574_v38 = vpop.permute.xlu1 %3325 }
 0x40a   :  { %v4852_v52 = vpack.c.bf16 %v1668_v42, %v1628_v39  ;;  %v671_v33 = vld [vmem:[#allocation8 + $0x890] sm:$0xff]  ;;  %v752_v39 = vld [vmem:[#allocation8 + $0xb18] sm:$0xff] }
 0x40b   :  { %4839 = vmatpush1.bf16.msra.mxu0 %v4838_v53  ;;  %v1627_v53 = vld [vmem:[#allocation8 + $0x2670] sm:$0xff]  ;;  %v792_v42 = vld [vmem:[#allocation8 + $0xc58] sm:$0xff] }
 0x40c   :  { %5031 = vmatpush1.bf16.msra.mxu1 %v5030_v54  ;;  %4841 = vmatprep.subr.bf16.mxu0 %v4840_v55  ;;  %v1667_v54 = vld [vmem:[#allocation8 + $0x27b0] sm:$0xff]  ;;  %v1633_v55 = vld [vmem:[#allocation8 + $0x26a0] sm:$0xff] }
 0x40d   :  { %5033 = vmatprep.subr.bf16.mxu1 %v5032_v1  ;;  %v472_v1 = vld [vmem:[#allocation8 + $0x258] sm:$0xff]  ;;  %v4854_v3 = vpack.c.bf16 %v1667_v54, %v1627_v53  ;;  %v5046_v6 = vpack.c.bf16 %v1673_v61, %v1633_v55  ;;  %v3348_v53 = vsel %vm3339_vm3, %v5527_v0, %v5529_v45  ;;  %v831_v0 = vld [vmem:[#allocation8 + $0xd90] sm:$0xff] }
 0x40e   :  { %v4920_v7 = vpack.c.bf16 %v472_v1, %v432_v62  ;;  %v872_v61 = vld [vmem:[#allocation8 + $0xed8] sm:$0xff] }
 0x40f   :  { %4843 = vmatpush1.bf16.msra.mxu0 %v4842_v14  ;;  %v512_v14 = vld [vmem:[#allocation8 + $0x398] sm:$0xff] }
 0x410   :  { %5035 = vmatpush1.bf16.msra.mxu1 %v5034_v17  ;;  %4845 = vmatprep.subr.bf16.mxu0 %v4844_v15  ;;  %v552_v17 = vld [vmem:[#allocation8 + $0x4d8] sm:$0xff]  ;;  %v4922_v15 = vpack.c.bf16 %v471_v13, %v431_v12 }
 0x411   :  { %5037 = vmatprep.subr.bf16.mxu1 %v5036_v16  ;;  %v4924_v20 = vpack.c.bf16 %v552_v17, %v512_v14  ;;  %v592_v16 = vld [vmem:[#allocation8 + $0x618] sm:$0xff]  ;;  %v871_v14 = vld [vmem:[#allocation8 + $0xed0] sm:$0xff] }
 0x412   :  { %v4928_v23 = vpack.c.bf16 %v632_v37, %v592_v16  ;;  %v912_v17 = vld [vmem:[#allocation8 + $0x1018] sm:$0xff]  ;;  %v4942_v21 = vpack.c.bf16 %v871_v14, %v831_v0  ;;  %v911_v16 = vld [vmem:[#allocation8 + $0x1010] sm:$0xff] }
 0x413   :  { %4847 = vmatpush1.bf16.msra.mxu0 %v4846_v27  ;;  %v672_v27 = vld [vmem:[#allocation8 + $0x898] sm:$0xff]  ;;  %v951_v37 = vld [vmem:[#allocation8 + $0x1150] sm:$0xff] }
 0x414   :  { %5039 = vmatpush1.bf16.msra.mxu1 %v5038_v28  ;;  %4849 = vmatprep.subr.bf16.mxu0 %v4848_v31  ;;  %v712_v28 = vld [vmem:[#allocation8 + $0x9d8] sm:$0xff]  ;;  %v4930_v31 = vpack.c.bf16 %v631_v26, %v591_v48 }
 0x415   :  { %5041 = vmatprep.subr.bf16.mxu1 %v5040_v36  ;;  %v4932_v30 = vpack.c.bf16 %v712_v28, %v672_v27  ;;  %v711_v36 = vld [vmem:[#allocation8 + $0x9d0] sm:$0xff]  ;;  %v1032_v48 = vld [vmem:[#allocation8 + $0x13d8] sm:$0xff] }
 0x416   :  { %v4934_v43 = vpack.c.bf16 %v711_v36, %v671_v33  ;;  %v4946_v33 = vpack.c.bf16 %v951_v37, %v911_v16  ;;  %v1311_v16 = vld [vmem:[#allocation8 + $0x1c90] sm:$0xff] }
 0x417   :  { %4851 = vmatpush1.bf16.msra.mxu0 %v4850_v46  ;;  %v4936_v46 = vpack.c.bf16 %v792_v42, %v752_v39  ;;  %v1351_v37 = vld [vmem:[#allocation8 + $0x1dd0] sm:$0xff] }
 0x418   :  { %5043 = vmatpush1.bf16.msra.mxu1 %v5042_v49  ;;  %4853 = vmatprep.subr.bf16.mxu0 %v4852_v52  ;;  %v751_v49 = vld [vmem:[#allocation8 + $0xb10] sm:$0xff] }
 0x419   :  { %5045 = vmatprep.subr.bf16.mxu1 %v5044_v60  ;;  %v791_v52 = vld [vmem:[#allocation8 + $0xc50] sm:$0xff]  ;;  %v832_v60 = vld [vmem:[#allocation8 + $0xd98] sm:$0xff] }
 0x41a   :  { %v4940_v13 = vpack.c.bf16 %v872_v61, %v832_v60  ;;  %v1111_v60 = vld [vmem:[#allocation8 + $0x1650] sm:$0xff]  ;;  %v1152_v61 = vld [vmem:[#allocation8 + $0x1798] sm:$0xff] }
 0x41b   :  { %4855 = vmatpush1.bf16.msra.mxu0 %v4854_v3 }
 0x41c   :  { %5047 = vmatpush1.bf16.msra.mxu1 %v5046_v6  ;;  %4921 = vmatprep.subr.bf16.mxu0 %v4920_v7  ;;  %v4938_v7 = vpack.c.bf16 %v791_v52, %v751_v49  ;;  %v1072_v49 = vld [vmem:[#allocation8 + $0x1518] sm:$0xff] }
 0x41d   :  { %v1112_v52 = vld [vmem:[#allocation8 + $0x1658] sm:$0xff] }
 0x41e   :  { %3727 = vmatmul.mubr.msk.f32.vlgmr.msra.gmra.mrb[16].mxu0 %vm5341_vm2, %v5256_v51 }
 0x41f   :  { %3733 = vmatmul.mubr.msk.f32.vlgmr.msra.gmra.mrb[20].mxu1 %vm5341_vm2, %v5256_v51  ;;  %4923 = vmatpush1.bf16.msra.mxu0 %v4922_v15  ;;  %v952_v15 = vld [vmem:[#allocation8 + $0x1158] sm:$0xff] }
 0x420   :  { %3730 = vmatprep.mubr.msk.f32.mxu0 %vm5341_vm2, %v5256_v51  ;;  %4925 = vmatprep.subr.bf16.mxu0 %v4924_v20  ;;  %v4944_v22 = vpack.c.bf16 %v952_v15, %v912_v17  ;;  %v1271_v17 = vld [vmem:[#allocation8 + $0x1b50] sm:$0xff]  ;;  %v1312_v15 = vld [vmem:[#allocation8 + $0x1c98] sm:$0xff] }
 0x423   :  { %4927 = vmatpush1.bf16.msra.mxu0 %v4926_v4 }
 0x424   :  { %4929 = vmatprep.subr.bf16.mxu0 %v4928_v23  ;;  %v992_v23 = vld [vmem:[#allocation8 + $0x1298] sm:$0xff] }
 0x425   :  { %v4948_v42 = vpack.c.bf16 %v1032_v48, %v992_v23  ;;  %v1392_v23 = vld [vmem:[#allocation8 + $0x1f18] sm:$0xff] }
 0x426   :  { %v1432_v48 = vld [vmem:[#allocation8 + $0x2058] sm:$0xff] }
 0x427   :  { %4931 = vmatpush1.bf16.msra.mxu0 %v4930_v31 }
 0x428   :  { %v3320_v44 = vpop.permute.xlu0 %3319  ;;  %4933 = vmatprep.subr.bf16.mxu0 %v4932_v30 }
 0x429   :  { %v3349_v54 = vsel %vm3339_vm3, %v5529_v45, %v3320_v44  ;;  %v3322_v55 = vpop.permute.xlu1 %3321 }
 0x42a   :  { %v3587_v62 = vcombine.low %v3348_v53, %v3349_v54  ;;  %v3350_v1 = vsel %vm3339_vm3, %v3320_v44, %v3322_v55  ;;  %v3351_v3 = vsel %vm3339_vm3, %v3322_v55, %v5572_v32  ;;  %v1031_v44 = vld [vmem:[#allocation8 + $0x13d0] sm:$0xff] }
 0x42b   :  { %v3588_v6 = vcombine.low %v3350_v1, %v3351_v3  ;;  %4935 = vmatpush1.bf16.msra.mxu0 %v4934_v43  ;;  %v991_v43 = vld [vmem:[#allocation8 + $0x1290] sm:$0xff] }
 0x42c   :  { %v3595_v12 = vrot.slane %v3587_v62, %v5489_v57  ;;  %4937 = vmatprep.subr.bf16.mxu0 %v4936_v46  ;;  %v4950_v54 = vpack.c.bf16 %v1031_v44, %v991_v43  ;;  %v1071_v55 = vld [vmem:[#allocation8 + $0x1510] sm:$0xff]  ;;  %v1192_v62 = vld [vmem:[#allocation8 + $0x18d8] sm:$0xff] }
 0x42d   :  { %v3602_v45 = vrot.slane %v3588_v6, %v5489_v57  ;;  %v4954_v1 = vpack.c.bf16 %v1111_v60, %v1071_v55  ;;  %v4956_v3 = vpack.c.bf16 %v1192_v62, %v1152_v61  ;;  %v1151_v6 = vld [vmem:[#allocation8 + $0x1790] sm:$0xff]  ;;  %v1632_v61 = vld [vmem:[#allocation8 + $0x2698] sm:$0xff] }
 0x42e   :  { %v1551_v55 = vld [vmem:[#allocation8 + $0x2410] sm:$0xff]  ;;  %v1672_v62 = vld [vmem:[#allocation8 + $0x27d8] sm:$0xff] }
 0x42f   :  { %v3603_v20 = vcombine.low %v3595_v12, %v3602_v45  ;;  %4939 = vmatpush1.bf16.msra.mxu0 %v4938_v7  ;;  %v1191_v7 = vld [vmem:[#allocation8 + $0x18d0] sm:$0xff]  ;;  %v1232_v12 = vld [vmem:[#allocation8 + $0x1a18] sm:$0xff] }
 0x430   :  { %4941 = vmatprep.subr.bf16.mxu0 %v4940_v13  ;;  %v1272_v13 = vld [vmem:[#allocation8 + $0x1b58] sm:$0xff]  ;;  %v4958_v0 = vpack.c.bf16 %v1191_v7, %v1151_v6  ;;  %v1231_v45 = vld [vmem:[#allocation8 + $0x1a10] sm:$0xff] }
 0x431   :  { %3665 = vst [vmem:[#allocation10 + $0x60] sm:$0xff] %v3603_v20  ;;  %v5586_v4 = vpop.f32.mrb[10].mxu0  ;;  %v4960_v14 = vpack.c.bf16 %v1272_v13, %v1232_v12  ;;  %v1352_v20 = vld [vmem:[#allocation8 + $0x1dd8] sm:$0xff]  ;;  %v1591_v60 = vld [vmem:[#allocation8 + $0x2550] sm:$0xff] }
 0x432   :  { %v2595_v26 = vpop.f32.mrb[14].mxu1  ;;  %v5588_v27 = vpop.f32.mrb[11].mxu0  ;;  %v1631_v6 = vld [vmem:[#allocation8 + $0x2690] sm:$0xff]  ;;  %v436_v12 = vld [vmem:[#allocation8 + $0x138] sm:$0xff] }
 0x433   :  { %v5591_v28 = vmul.f32 %v2595_v26, %v5401_v5  ;;  %v3121_v31 = vadd.f32 %v2595_v26, %v5401_v5  ;;  %v2597_v30 = vpop.f32.mrb[15].mxu1  ;;  %4943 = vmatpush1.bf16.msra.mxu0 %v4942_v21  ;;  %v4962_v21 = vpack.c.bf16 %v1271_v17, %v1231_v45  ;;  %v4966_v26 = vpack.c.bf16 %v1351_v37, %v1311_v16  ;;  %v1671_v7 = vld [vmem:[#allocation8 + $0x27d0] sm:$0xff]  ;;  %v476_v13 = vld [vmem:[#allocation8 + $0x278] sm:$0xff] }
 0x434   :  { %v5595_v36 = vmul.f32 %v2597_v30, %v5405_v11  ;;  %v3122_v39 = vadd.f32 %v2597_v30, %v5405_v11  ;;  %4945 = vmatprep.subr.bf16.mxu0 %v4944_v22  ;;  %v4952_v11 = vpack.c.bf16 %v1112_v52, %v1072_v49  ;;  %v4964_v22 = vpack.c.bf16 %v1352_v20, %v1312_v15  ;;  %v1391_v30 = vld [vmem:[#allocation8 + $0x1f10] sm:$0xff]  ;;  %v1552_v52 = vld [vmem:[#allocation8 + $0x2418] sm:$0xff] }
 0x435   :  { %v3141_v46 = vsub.f32 %v3121_v31, %v5591_v28  ;;  %v4968_v31 = vpack.c.bf16 %v1432_v48, %v1392_v23  ;;  %v1511_v49 = vld [vmem:[#allocation8 + $0x22d0] sm:$0xff]  ;;  %v516_v15 = vld [vmem:[#allocation8 + $0x3b8] sm:$0xff] }
 0x436   :  { %v3142_v53 = vsub.f32 %v3122_v39, %v5595_v36  ;;  %v3400_v5 = vcombine.low %v5591_v28, %v5595_v36  ;;  %v1472_v39 = vld [vmem:[#allocation8 + $0x2198] sm:$0xff]  ;;  %v435_v45 = vld [vmem:[#allocation8 + $0x130] sm:$0xff] }
 0x437   :  { %3225 = vrot.lane.b32.xlu0 %v3141_v46, %s5259_s11  ;;  %4947 = vmatpush1.bf16.msra.mxu0 %v4946_v33  ;;  %v1431_v33 = vld [vmem:[#allocation8 + $0x2050] sm:$0xff]  ;;  %v556_v20 = vld [vmem:[#allocation8 + $0x4f8] sm:$0xff] }
 0x438   :  { %3227 = vrot.lane.b32.xlu1 %v3142_v53, %s5259_s11  ;;  %4949 = vmatprep.subr.bf16.mxu0 %v4948_v42  ;;  %v1512_v42 = vld [vmem:[#allocation8 + $0x22d8] sm:$0xff]  ;;  %v4970_v43 = vpack.c.bf16 %v1431_v33, %v1391_v30  ;;  %v1471_v46 = vld [vmem:[#allocation8 + $0x2190] sm:$0xff] }
 0x439   :  { %v4972_v44 = vpack.c.bf16 %v1512_v42, %v1472_v39  ;;  %v1592_v53 = vld [vmem:[#allocation8 + $0x2558] sm:$0xff]  ;;  %v475_v17 = vld [vmem:[#allocation8 + $0x270] sm:$0xff] }
 0x43a   :  { %v515_v16 = vld [vmem:[#allocation8 + $0x3b0] sm:$0xff]  ;;  %v596_v23 = vld [vmem:[#allocation8 + $0x638] sm:$0xff] }
 0x43b   :  { %4951 = vmatpush1.bf16.msra.mxu0 %v4950_v54  ;;  %v4974_v54 = vpack.c.bf16 %v1511_v49, %v1471_v46  ;;  %v555_v37 = vld [vmem:[#allocation8 + $0x4f0] sm:$0xff]  ;;  %v636_v48 = vld [vmem:[#allocation8 + $0x778] sm:$0xff] }
 0x43c   :  { %4953 = vmatprep.subr.bf16.mxu0 %v4952_v11  ;;  %v4976_v11 = vpack.c.bf16 %v1592_v53, %v1552_v52  ;;  %v595_v30 = vld [vmem:[#allocation8 + $0x630] sm:$0xff]  ;;  %v676_v39 = vld [vmem:[#allocation8 + $0x8b8] sm:$0xff]  ;;  %v5610_v52 = vpop.permute.xlu0 %3331 }
 0x43d   :  { %v635_v33 = vld [vmem:[#allocation8 + $0x770] sm:$0xff]  ;;  %v716_v42 = vld [vmem:[#allocation8 + $0x9f8] sm:$0xff] }
 0x43e   :  { %v675_v46 = vld [vmem:[#allocation8 + $0x8b0] sm:$0xff]  ;;  %v756_v53 = vld [vmem:[#allocation8 + $0xb38] sm:$0xff] }
 0x43f   :  { %4955 = vmatpush1.bf16.msra.mxu0 %v4954_v1  ;;  %v4978_v1 = vpack.c.bf16 %v1591_v60, %v1551_v55  ;;  %v715_v49 = vld [vmem:[#allocation8 + $0x9f0] sm:$0xff] }
 0x440   :  { %4957 = vmatprep.subr.bf16.mxu0 %v4956_v3  ;;  %v4980_v3 = vpack.c.bf16 %v1672_v62, %v1632_v61  ;;  %v5062_v55 = vpack.c.bf16 %v715_v49, %v675_v46  ;;  %v755_v61 = vld [vmem:[#allocation8 + $0xb30] sm:$0xff] }
 0x441   :  { %v795_v62 = vld [vmem:[#allocation8 + $0xc70] sm:$0xff] }
 0x443   :  { %4959 = vmatpush1.bf16.msra.mxu0 %v4958_v0  ;;  %v4982_v0 = vpack.c.bf16 %v1671_v7, %v1631_v6  ;;  %v876_v6 = vld [vmem:[#allocation8 + $0xef8] sm:$0xff] }
 0x444   :  { %4961 = vmatprep.subr.bf16.mxu0 %v4960_v14  ;;  %v5048_v14 = vpack.c.bf16 %v476_v13, %v436_v12  ;;  %v5066_v12 = vpack.c.bf16 %v795_v62, %v755_v61 }
 0x447   :  { %4963 = vmatpush1.bf16.msra.mxu0 %v4962_v21  ;;  %v5050_v21 = vpack.c.bf16 %v475_v17, %v435_v45  ;;  %v916_v17 = vld [vmem:[#allocation8 + $0x1038] sm:$0xff] }
 0x448   :  { %4965 = vmatprep.subr.bf16.mxu0 %v4964_v22  ;;  %v5052_v22 = vpack.c.bf16 %v556_v20, %v516_v15  ;;  %v956_v15 = vld [vmem:[#allocation8 + $0x1178] sm:$0xff]  ;;  %v3352_v20 = vsel %vm3339_vm3, %v5572_v32, %v5574_v38 }
 0x44b   :  { %4967 = vmatpush1.bf16.msra.mxu0 %v4966_v26  ;;  %v5054_v26 = vpack.c.bf16 %v555_v37, %v515_v16  ;;  %v915_v37 = vld [vmem:[#allocation8 + $0x1030] sm:$0xff] }
 0x44c   :  { %4969 = vmatprep.subr.bf16.mxu0 %v4968_v31  ;;  %v5056_v31 = vpack.c.bf16 %v636_v48, %v596_v23 }
 0x44f   :  { %4971 = vmatpush1.bf16.msra.mxu0 %v4970_v43  ;;  %v5058_v43 = vpack.c.bf16 %v635_v33, %v595_v30  ;;  %v996_v30 = vld [vmem:[#allocation8 + $0x12b8] sm:$0xff] }
 0x450   :  { %4973 = vmatprep.subr.bf16.mxu0 %v4972_v44  ;;  %v5060_v44 = vpack.c.bf16 %v716_v42, %v676_v39  ;;  %v1036_v33 = vld [vmem:[#allocation8 + $0x13f8] sm:$0xff]  ;;  %v5072_v39 = vpack.c.bf16 %v956_v15, %v916_v17 }
 0x451   :  { %v1116_v17 = vld [vmem:[#allocation8 + $0x1678] sm:$0xff] }
 0x453   :  { %4975 = vmatpush1.bf16.msra.mxu0 %v4974_v54  ;;  %v796_v54 = vld [vmem:[#allocation8 + $0xc78] sm:$0xff] }
 0x454   :  { %4977 = vmatprep.subr.bf16.mxu0 %v4976_v11  ;;  %v5612_v11 = vpop.permute.xlu1 %3333  ;;  %v5064_v60 = vpack.c.bf16 %v796_v54, %v756_v53  ;;  %v5076_v54 = vpack.c.bf16 %v1036_v33, %v996_v30  ;;  %v1236_v33 = vld [vmem:[#allocation8 + $0x1a38] sm:$0xff] }
 0x457   :  { %4979 = vmatpush1.bf16.msra.mxu0 %v4978_v1 }
 0x458   :  { %4981 = vmatprep.subr.bf16.mxu0 %v4980_v3  ;;  %v836_v3 = vld [vmem:[#allocation8 + $0xdb8] sm:$0xff] }
 0x459   :  { %v5068_v13 = vpack.c.bf16 %v876_v6, %v836_v3 }
 0x45b   :  { %4983 = vmatpush1.bf16.msra.mxu0 %v4982_v0  ;;  %v835_v0 = vld [vmem:[#allocation8 + $0xdb0] sm:$0xff] }
 0x45c   :  { %5049 = vmatprep.subr.bf16.mxu0 %v5048_v14  ;;  %v875_v14 = vld [vmem:[#allocation8 + $0xef0] sm:$0xff] }
 0x45e   :  { %3731 = vmatmul.mubr.msk.f32.vlgmr.msra.gmra.mrb[18].mxu0 %vm5341_vm2, %v5256_v51 }
 0x45f   :  { %5051 = vmatpush1.bf16.msra.mxu0 %v5050_v21  ;;  %3734 = vmatprep.mubr.msk.f32.mxu0 %vm5341_vm2, %v5256_v51 }
 0x460   :  { %5053 = vmatprep.subr.bf16.mxu0 %v5052_v22 }
 0x463   :  { %5055 = vmatpush1.bf16.msra.mxu0 %v5054_v26  ;;  %v5070_v26 = vpack.c.bf16 %v875_v14, %v835_v0  ;;  %v1035_v0 = vld [vmem:[#allocation8 + $0x13f0] sm:$0xff] }
 0x464   :  { %5057 = vmatprep.subr.bf16.mxu0 %v5056_v31  ;;  %v955_v31 = vld [vmem:[#allocation8 + $0x1170] sm:$0xff] }
 0x465   :  { %v5074_v53 = vpack.c.bf16 %v955_v31, %v915_v37  ;;  %v1075_v37 = vld [vmem:[#allocation8 + $0x1530] sm:$0xff]  ;;  %v1196_v31 = vld [vmem:[#allocation8 + $0x18f8] sm:$0xff] }
 0x467   :  { %5059 = vmatpush1.bf16.msra.mxu0 %v5058_v43 }
 0x468   :  { %5061 = vmatprep.subr.bf16.mxu0 %v5060_v44 }
 0x469   :  { %v5614_v1 = vpop.permute.xlu0 %3217 }
 0x46a   :  { %v3330_v7 = vpop.permute.xlu1 %3329 }
 0x46b   :  { %5063 = vmatpush1.bf16.msra.mxu0 %v5062_v55  ;;  %v3355_v21 = vsel %vm3339_vm3, %v3330_v7, %v5610_v52 }
 0x46c   :  { %5065 = vmatprep.subr.bf16.mxu0 %v5064_v60 }
 0x46d   :  { %v3328_v45 = vpop.permute.xlu0 %3327 }
 0x46e   :  { %v3353_v22 = vsel %vm3339_vm3, %v5574_v38, %v3328_v45  ;;  %v3354_v16 = vsel %vm3339_vm3, %v3328_v45, %v3330_v7 }
 0x46f   :  { %v3604_v23 = vcombine.low %v3352_v20, %v3353_v22  ;;  %v3605_v48 = vcombine.low %v3354_v16, %v3355_v21  ;;  %5067 = vmatpush1.bf16.msra.mxu0 %v5066_v12 }
 0x470   :  { %5069 = vmatprep.subr.bf16.mxu0 %v5068_v13  ;;  %v995_v13 = vld [vmem:[#allocation8 + $0x12b0] sm:$0xff] }
 0x471   :  { %v3612_v32 = vrot.slane %v3604_v23, %v5489_v57  ;;  %v3619_v42 = vrot.slane %v3605_v48, %v5489_v57  ;;  %v2524_v43 = vpop.f32.mrb[12].mxu0  ;;  %v5078_v22 = vpack.c.bf16 %v1035_v0, %v995_v13  ;;  %v1115_v23 = vld [vmem:[#allocation8 + $0x1670] sm:$0xff]  ;;  %v1476_v13 = vld [vmem:[#allocation8 + $0x21b8] sm:$0xff] }
 0x472   :  { %v3099_v44 = vmul.f32 %v2524_v43, %v5427_v34  ;;  %v3119_v38 = vadd.f32 %v2524_v43, %v5427_v34  ;;  %v2737_v46 = vpop.f32.mrb[16].mxu1  ;;  %v2526_v49 = vpop.f32.mrb[13].mxu0  ;;  %v5082_v30 = vpack.c.bf16 %v1115_v23, %v1075_v37  ;;  %v1235_v43 = vld [vmem:[#allocation8 + $0x1a30] sm:$0xff]  ;;  %v1516_v0 = vld [vmem:[#allocation8 + $0x22f8] sm:$0xff] }
 0x473   :  { %v3620_v55 = vcombine.low %v3612_v32, %v3619_v42  ;;  %v5629_v60 = vmul.f32 %v2737_v46, %v5429_v35  ;;  %v3125_v61 = vadd.f32 %v2737_v46, %v5429_v35  ;;  %v3100_v62 = vmul.f32 %v2526_v49, %v5432_v40  ;;  %v2739_v3 = vpop.f32.mrb[17].mxu1  ;;  %5071 = vmatpush1.bf16.msra.mxu0 %v5070_v26  ;;  %v1076_v35 = vld [vmem:[#allocation8 + $0x1538] sm:$0xff] }
 0x474   :  { %v3139_v6 = vsub.f32 %v3119_v38, %v3099_v44  ;;  %v3120_v7 = vadd.f32 %v2526_v49, %v5432_v40  ;;  %v5635_v12 = vmul.f32 %v2739_v3, %v5434_v41  ;;  %v3126_v34 = vadd.f32 %v2739_v3, %v5434_v41  ;;  %5073 = vmatprep.subr.bf16.mxu0 %v5072_v39  ;;  %v1156_v26 = vld [vmem:[#allocation8 + $0x17b8] sm:$0xff] }
 0x475   :  { %3666 = vst [vmem:[#allocation10 + $0x68] sm:$0xff] %v3620_v55  ;;  %v3145_v14 = vsub.f32 %v3125_v61, %v5629_v60  ;;  %v3384_v45 = vcombine.low %v3099_v44, %v3100_v62  ;;  %v3391_v41 = vrot.slane %v3383_v10, %v5489_v57  ;;  %v5080_v16 = vpack.c.bf16 %v1116_v17, %v1076_v35  ;;  %v1195_v10 = vld [vmem:[#allocation8 + $0x18f0] sm:$0xff]  ;;  %v1276_v39 = vld [vmem:[#allocation8 + $0x1b78] sm:$0xff] }
 0x476   :  { %v3140_v15 = vsub.f32 %v3120_v7, %v3100_v62  ;;  %v3146_v20 = vsub.f32 %v3126_v34, %v5635_v12  ;;  %v3417_v40 = vcombine.low %v5629_v60, %v5635_v12  ;;  %3221 = vrot.lane.b32.xlu1 %v3139_v6, %s5259_s11  ;;  %v5084_v8 = vpack.c.bf16 %v1196_v31, %v1156_v26  ;;  %v1275_v44 = vld [vmem:[#allocation8 + $0x1b70] sm:$0xff]  ;;  %v1316_v38 = vld [vmem:[#allocation8 + $0x1cb8] sm:$0xff] }
 0x477   :  { %v3398_v21 = vrot.slane %v3384_v45, %v5489_v57  ;;  %3233 = vrot.lane.b32.xlu0 %v3145_v14, %s5259_s11  ;;  %5075 = vmatpush1.bf16.msra.mxu0 %v5074_v53  ;;  %v5086_v32 = vpack.c.bf16 %v1195_v10, %v1155_v18  ;;  %v5088_v42 = vpack.c.bf16 %v1276_v39, %v1236_v33  ;;  %v1356_v46 = vld [vmem:[#allocation8 + $0x1df8] sm:$0xff]  ;;  %v1355_v55 = vld [vmem:[#allocation8 + $0x1df0] sm:$0xff] }
 0x478   :  { %5077 = vmatprep.subr.bf16.mxu0 %v5076_v54  ;;  %v5090_v49 = vpack.c.bf16 %v1275_v44, %v1235_v43  ;;  %v5092_v53 = vpack.c.bf16 %v1356_v46, %v1316_v38  ;;  %v1315_v54 = vld [vmem:[#allocation8 + $0x1cb0] sm:$0xff]  ;;  %v1396_v61 = vld [vmem:[#allocation8 + $0x1f38] sm:$0xff]  ;;  %v5100_v45 = vpack.c.bf16 %v1516_v0, %v1476_v13 }
 0x479   :  { %v3399_v48 = vcombine.low %v3391_v41, %v3398_v21  ;;  %v1436_v62 = vld [vmem:[#allocation8 + $0x2078] sm:$0xff]  ;;  %v5094_v3 = vpack.c.bf16 %v1355_v55, %v1315_v54  ;;  %v1395_v7 = vld [vmem:[#allocation8 + $0x1f30] sm:$0xff] }
 0x47a   :  { %3223 = vrot.lane.b32.xlu1 %v3140_v15, %s5259_s11  ;;  %v5096_v6 = vpack.c.bf16 %v1436_v62, %v1396_v61  ;;  %v1435_v34 = vld [vmem:[#allocation8 + $0x2070] sm:$0xff]  ;;  %v1556_v15 = vld [vmem:[#allocation8 + $0x2438] sm:$0xff] }
 0x47b   :  { %3653 = vst [vmem:[#allocation10] sm:$0xff] %v3399_v48  ;;  %5079 = vmatpush1.bf16.msra.mxu0 %v5078_v22  ;;  %v5098_v14 = vpack.c.bf16 %v1435_v34, %v1395_v7  ;;  %v1475_v35 = vld [vmem:[#allocation8 + $0x21b0] sm:$0xff]  ;;  %v1636_v37 = vld [vmem:[#allocation8 + $0x26b8] sm:$0xff] }
 0x47c   :  { %5081 = vmatprep.subr.bf16.mxu0 %v5080_v16  ;;  %v1515_v17 = vld [vmem:[#allocation8 + $0x22f0] sm:$0xff]  ;;  %v1676_v23 = vld [vmem:[#allocation8 + $0x27f8] sm:$0xff] }
 0x47d   :  { %v5102_v41 = vpack.c.bf16 %v1515_v17, %v1475_v35  ;;  %v1555_v22 = vld [vmem:[#allocation8 + $0x2430] sm:$0xff]  ;;  %v5108_v26 = vpack.c.bf16 %v1676_v23, %v1636_v37 }
 0x47e   :  { %3235 = vrot.lane.b32.xlu1 %v3146_v20, %s5259_s11  ;;  %v1596_v20 = vld [vmem:[#allocation8 + $0x2578] sm:$0xff]  ;;  %v1595_v16 = vld [vmem:[#allocation8 + $0x2570] sm:$0xff] }
 0x47f   :  { %5083 = vmatpush1.bf16.msra.mxu0 %v5082_v30  ;;  %v5104_v21 = vpack.c.bf16 %v1596_v20, %v1556_v15  ;;  %v5106_v48 = vpack.c.bf16 %v1595_v16, %v1555_v22  ;;  %v1635_v31 = vld [vmem:[#allocation8 + $0x26b0] sm:$0xff] }
 0x480   :  { %5085 = vmatprep.subr.bf16.mxu0 %v5084_v8  ;;  %v1675_v30 = vld [vmem:[#allocation8 + $0x27f0] sm:$0xff] }
 0x481   :  { %v5110_v8 = vpack.c.bf16 %v1675_v30, %v1635_v31 }
 0x483   :  { %5087 = vmatpush1.bf16.msra.mxu0 %v5086_v32 }
 0x484   :  { %5089 = vmatprep.subr.bf16.mxu0 %v5088_v42 }
 0x487   :  { %5091 = vmatpush1.bf16.msra.mxu0 %v5090_v49 }
 0x488   :  { %5093 = vmatprep.subr.bf16.mxu0 %v5092_v53 }
 0x48b   :  { %5095 = vmatpush1.bf16.msra.mxu0 %v5094_v3  ;;  %v3220_v3 = vpop.permute.xlu0 %3219 }
 0x48c   :  { %5097 = vmatprep.subr.bf16.mxu0 %v5096_v6  ;;  %v3258_v28 = vsel %vm3257_vm4, %v5614_v1, %v3220_v3 }
 0x48f   :  { %5099 = vmatpush1.bf16.msra.mxu0 %v5098_v14 }
 0x490   :  { %5101 = vmatprep.subr.bf16.mxu0 %v5100_v45 }
 0x493   :  { %5103 = vmatpush1.bf16.msra.mxu0 %v5102_v41 }
 0x494   :  { %5105 = vmatprep.subr.bf16.mxu0 %v5104_v21 }
 0x497   :  { %5107 = vmatpush1.bf16.msra.mxu0 %v5106_v48 }
 0x498   :  { %5109 = vmatprep.subr.bf16.mxu0 %v5108_v26 }
 0x49b   :  { %5111 = vmatpush1.bf16.msra.mxu0 %v5110_v8 }
 0x49e   :  { %3735 = vmatmul.mubr.msk.f32.vlgmr.msra.gmra.mrb[20].mxu0 %vm5341_vm2, %v5256_v51 }
 0x4a9   :  { %v3226_v36 = vpop.permute.xlu0 %3225 }
 0x4aa   :  { %v3228_v62 = vpop.permute.xlu1 %3227 }
 0x4b1   :  { %v2666_v18 = vpop.f32.mrb[14].mxu0 }
 0x4b2   :  { %v3103_v10 = vmul.f32 %v2666_v18, %v5455_v19  ;;  %v3123_v33 = vadd.f32 %v2666_v18, %v5455_v19  ;;  %v2879_v39 = vpop.f32.mrb[18].mxu1  ;;  %v2668_v32 = vpop.f32.mrb[15].mxu0 }
 0x4b3   :  { %v5657_v42 = vmul.f32 %v2879_v39, %v5458_v24  ;;  %v3129_v43 = vadd.f32 %v2879_v39, %v5458_v24  ;;  %v3104_v44 = vmul.f32 %v2668_v32, %v5460_v25  ;;  %v3124_v38 = vadd.f32 %v2668_v32, %v5460_v25  ;;  %v2881_v46 = vpop.f32.mrb[19].mxu1 }
 0x4b4   :  { %v3143_v49 = vsub.f32 %v3123_v33, %v3103_v10  ;;  %v5663_v47 = vmul.f32 %v2881_v46, %v5463_v29  ;;  %v3130_v51 = vadd.f32 %v2881_v46, %v5463_v29  ;;  %v3408_v25 = vrot.slane %v3400_v5, %v5489_v57 }
 0x4b5   :  { %v3149_v19 = vsub.f32 %v3129_v43, %v5657_v42  ;;  %v3144_v53 = vsub.f32 %v3124_v38, %v3104_v44  ;;  %v3401_v54 = vcombine.low %v3103_v10, %v3104_v44  ;;  %v3262_v38 = vsel %vm3257_vm4, %v3226_v36, %v3228_v62 }
 0x4b6   :  { %v3150_v55 = vsub.f32 %v3130_v51, %v5663_v47  ;;  %v3434_v24 = vcombine.low %v5657_v42, %v5663_v47  ;;  %3229 = vrot.lane.b32.xlu0 %v3143_v49, %s5259_s11 }
 0x4b7   :  { %v3415_v61 = vrot.slane %v3401_v54, %v5489_v57  ;;  %3231 = vrot.lane.b32.xlu1 %v3144_v53, %s5259_s11 }
 0x4b9   :  { %v3416_v29 = vcombine.low %v3408_v25, %v3415_v61 }
 0x4ba   :  { %3241 = vrot.lane.b32.xlu0 %v3149_v19, %s5259_s11 }
 0x4bb   :  { %3654 = vst [vmem:[#allocation10 + $0x8] sm:$0xff] %v3416_v29  ;;  %3243 = vrot.lane.b32.xlu1 %v3150_v55, %s5259_s11 }
 0x4e8   :  { %v3222_v6 = vpop.permute.xlu1 %3221 }
 0x4e9   :  { %v3259_v7 = vsel %vm3257_vm4, %v3220_v3, %v3222_v6  ;;  %v3234_v32 = vpop.permute.xlu0 %3233 }
 0x4ea   :  { %v3468_v5 = vcombine.low %v3258_v28, %v3259_v7 }
 0x4ec   :  { %v3224_v34 = vpop.permute.xlu1 %3223  ;;  %v3476_v45 = vrot.slane %v3468_v5, %v5489_v57 }
 0x4ed   :  { %v3260_v13 = vsel %vm3257_vm4, %v3222_v6, %v3224_v34  ;;  %v3261_v0 = vsel %vm3257_vm4, %v3224_v34, %v3226_v36  ;;  %v3442_v36 = vrot.slane %v3434_v24, %v5489_v57 }
 0x4ee   :  { %v3469_v14 = vcombine.low %v3260_v13, %v3261_v0 }
 0x4f0   :  { %v3483_v35 = vrot.slane %v3469_v14, %v5489_v57  ;;  %v3236_v43 = vpop.permute.xlu1 %3235 }
 0x4f1   :  { %v2808_v17 = vpop.f32.mrb[16].mxu0 }
 0x4f2   :  { %v3484_v15 = vcombine.low %v3476_v45, %v3483_v35  ;;  %v3107_v20 = vmul.f32 %v2808_v17, %v5499_v50  ;;  %v3127_v41 = vadd.f32 %v2808_v17, %v5499_v50  ;;  %v3021_v21 = vpop.f32.mrb[20].mxu1  ;;  %v2810_v22 = vpop.f32.mrb[17].mxu0 }
 0x4f3   :  { %v5689_v16 = vmul.f32 %v3021_v21, %v5502_v58  ;;  %v3133_v37 = vadd.f32 %v3021_v21, %v5502_v58  ;;  %v3108_v23 = vmul.f32 %v2810_v22, %v5504_v59  ;;  %v3128_v48 = vadd.f32 %v2810_v22, %v5504_v59  ;;  %v3023_v26 = vpop.f32.mrb[21].mxu1 }
 0x4f4   :  { %3658 = vst [vmem:[#allocation10 + $0x28] sm:$0xff] %v3484_v15  ;;  %v3147_v31 = vsub.f32 %v3127_v41, %v3107_v20  ;;  %v5695_v30 = vmul.f32 %v3023_v26, %v5507_v63  ;;  %v3134_v8 = vadd.f32 %v3023_v26, %v5507_v63  ;;  %v3425_v59 = vrot.slane %v3417_v40, %v5489_v57 }
 0x4f5   :  { %v3153_v50 = vsub.f32 %v3133_v37, %v5689_v16  ;;  %v3148_v18 = vsub.f32 %v3128_v48, %v3108_v23  ;;  %v3418_v10 = vcombine.low %v3107_v20, %v3108_v23  ;;  %v3175_v26 = vadd.f32 1.0, %v5586_v4 }
 0x4f6   :  { %v3154_v33 = vsub.f32 %v3134_v8, %v5695_v30  ;;  %v3451_v58 = vcombine.low %v5689_v16, %v5695_v30  ;;  %3237 = vrot.lane.b32.xlu0 %v3147_v31, %s5259_s11  ;;  %v3176_v8 = vadd.f32 1.0, %v5588_v27 }
 0x4f7   :  { %v3432_v39 = vrot.slane %v3418_v10, %v5489_v57  ;;  %3239 = vrot.lane.b32.xlu1 %v3148_v18, %s5259_s11 }
 0x4f9   :  { %v3433_v63 = vcombine.low %v3425_v59, %v3432_v39  ;;  %v3196_v39 = vsub.f32 0.0, %v3176_v8 }
 0x4fa   :  { %3249 = vrot.lane.b32.xlu0 %v3153_v50, %s5259_s11 }
 0x4fb   :  { %3655 = vst [vmem:[#allocation10 + $0x10] sm:$0xff] %v3433_v63  ;;  %3251 = vrot.lane.b32.xlu1 %v3154_v33, %s5259_s11  ;;  %v3459_v33 = vrot.slane %v3451_v58, %v5489_v57 }
 0x528   :  { %v3230_v44 = vpop.permute.xlu0 %3229 }
 0x529   :  { %v3263_v46 = vsel %vm3257_vm4, %v3228_v62, %v3230_v44  ;;  %v3232_v49 = vpop.permute.xlu1 %3231 }
 0x52a   :  { %v3485_v60 = vcombine.low %v3262_v38, %v3263_v46  ;;  %v3264_v12 = vsel %vm3257_vm4, %v3230_v44, %v3232_v49  ;;  %v3265_v40 = vsel %vm3257_vm4, %v3232_v49, %v3234_v32 }
 0x52b   :  { %v3486_v51 = vcombine.low %v3264_v12, %v3265_v40 }
 0x52c   :  { %v3493_v19 = vrot.slane %v3485_v60, %v5489_v57  ;;  %v3242_v34 = vpop.permute.xlu0 %3241 }
 0x52d   :  { %v3500_v53 = vrot.slane %v3486_v51, %v5489_v57  ;;  %v3244_v13 = vpop.permute.xlu1 %3243 }
 0x52f   :  { %v3501_v54 = vcombine.low %v3493_v19, %v3500_v53 }
 0x531   :  { %3659 = vst [vmem:[#allocation10 + $0x30] sm:$0xff] %v3501_v54  ;;  %v2950_v55 = vpop.f32.mrb[18].mxu0 }
 0x532   :  { %v3111_v25 = vmul.f32 %v2950_v55, %v5541_v56  ;;  %v3131_v61 = vadd.f32 %v2950_v55, %v5541_v56  ;;  %v2952_v29 = vpop.f32.mrb[19].mxu0 }
 0x533   :  { %v3112_v62 = vmul.f32 %v2952_v29, %v5543_v2  ;;  %v3132_v3 = vadd.f32 %v2952_v29, %v5543_v2  ;;  %v3266_v2 = vsel %vm3257_vm4, %v3234_v32, %v3236_v43 }
 0x534   :  { %v3151_v6 = vsub.f32 %v3131_v61, %v3111_v25 }
 0x535   :  { %v3152_v7 = vsub.f32 %v3132_v3, %v3112_v62  ;;  %v3435_v28 = vcombine.low %v3111_v25, %v3112_v62  ;;  %v3356_v3 = vsel %vm3339_vm3, %v5610_v52, %v5612_v11 }
 0x536   :  { %3245 = vrot.lane.b32.xlu0 %v3151_v6, %s5259_s11 }
 0x537   :  { %v3449_v5 = vrot.slane %v3435_v28, %v5489_v57  ;;  %3247 = vrot.lane.b32.xlu1 %v3152_v7, %s5259_s11 }
 0x539   :  { %v3450_v56 = vcombine.low %v3442_v36, %v3449_v5 }
 0x53b   :  { %3656 = vst [vmem:[#allocation10 + $0x18] sm:$0xff] %v3450_v56 }
 0x568   :  { %v3238_v0 = vpop.permute.xlu0 %3237 }
 0x569   :  { %v3267_v14 = vsel %vm3257_vm4, %v3236_v43, %v3238_v0  ;;  %v3240_v45 = vpop.permute.xlu1 %3239  ;;  %v3270_v43 = vsel %vm3257_vm4, %v3242_v34, %v3244_v13 }
 0x56a   :  { %v3502_v35 = vcombine.low %v3266_v2, %v3267_v14  ;;  %v3268_v17 = vsel %vm3257_vm4, %v3238_v0, %v3240_v45  ;;  %v3269_v42 = vsel %vm3257_vm4, %v3240_v45, %v3242_v34 }
 0x56b   :  { %v3503_v47 = vcombine.low %v3268_v17, %v3269_v42 }
 0x56c   :  { %v3510_v24 = vrot.slane %v3502_v35, %v5489_v57 }
 0x56d   :  { %v3517_v15 = vrot.slane %v3503_v47, %v5489_v57 }
 0x56f   :  { %v3518_v20 = vcombine.low %v3510_v24, %v3517_v15 }
 0x571   :  { %3660 = vst [vmem:[#allocation10 + $0x38] sm:$0xff] %v3518_v20  ;;  %v3092_v41 = vpop.f32.mrb[20].mxu0 }
 0x572   :  { %v3115_v21 = vmul.f32 %v3092_v41, %v5586_v4  ;;  %v3135_v22 = vadd.f32 %v3092_v41, %v5586_v4  ;;  %v3094_v37 = vpop.f32.mrb[21].mxu0  ;;  %v3195_v4 = vsub.f32 0.0, %v3175_v26 }
 0x573   :  { %v3116_v23 = vmul.f32 %v3094_v37, %v5588_v27  ;;  %v3136_v48 = vadd.f32 %v3094_v37, %v5588_v27  ;;  %v3250_v27 = vpop.permute.xlu0 %3249 }
 0x574   :  { %v3155_v31 = vsub.f32 %v3135_v22, %v3115_v21 }
 0x575   :  { %v3156_v50 = vsub.f32 %v3136_v48, %v3116_v23  ;;  %v3360_v18 = vsel %vm3257_vm4, %v3116_v23, %v5614_v1  ;;  %v3252_v1 = vpop.permute.xlu1 %3251 }
 0x576   :  { %v3452_v10 = vcombine.low %v3115_v21, %v3360_v18  ;;  %3253 = vrot.lane.b32.xlu0 %v3155_v31, %s5259_s11  ;;  %v3274_v51 = vsel %vm3257_vm4, %v3250_v27, %v3252_v1 }
 0x577   :  { %3255 = vrot.lane.b32.xlu1 %v3156_v50, %s5259_s11 }
 0x578   :  { %v3466_v59 = vrot.slane %v3452_v10, %v5489_v57 }
 0x57a   :  { %v3467_v63 = vcombine.low %v3459_v33, %v3466_v59  ;;  %3335 = vrot.lane.b32.xlu0 %v3195_v4, %s5257_s3 }
 0x57b   :  { %3337 = vrot.lane.b32.xlu1 %v3196_v39, %s5257_s3 }
 0x57c   :  { %3657 = vst [vmem:[#allocation10 + $0x20] sm:$0xff] %v3467_v63 }
 0x5a8   :  { %v3246_v32 = vpop.permute.xlu0 %3245 }
 0x5a9   :  { %v3271_v44 = vsel %vm3257_vm4, %v3244_v13, %v3246_v32  ;;  %v3248_v38 = vpop.permute.xlu1 %3247 }
 0x5aa   :  { %v3519_v16 = vcombine.low %v3270_v43, %v3271_v44  ;;  %v3272_v30 = vsel %vm3257_vm4, %v3246_v32, %v3248_v38  ;;  %v3273_v58 = vsel %vm3257_vm4, %v3248_v38, %v3250_v27 }
 0x5ab   :  { %v3520_v46 = vcombine.low %v3272_v30, %v3273_v58 }
 0x5ac   :  { %v3527_v49 = vrot.slane %v3519_v16, %v5489_v57 }
 0x5ad   :  { %v3534_v60 = vrot.slane %v3520_v46, %v5489_v57 }
 0x5af   :  { %v3535_v12 = vcombine.low %v3527_v49, %v3534_v60 }
 0x5b1   :  { %3661 = vst [vmem:[#allocation10 + $0x40] sm:$0xff] %v3535_v12 }
 0x5e8   :  { %v3254_v40 = vpop.permute.xlu0 %3253 }
 0x5e9   :  { %v3275_v19 = vsel %vm3257_vm4, %v3252_v1, %v3254_v40  ;;  %v3256_v53 = vpop.permute.xlu1 %3255 }
 0x5ea   :  { %v3536_v54 = vcombine.low %v3274_v51, %v3275_v19  ;;  %v3276_v55 = vsel %vm3257_vm4, %v3254_v40, %v3256_v53  ;;  %v3361_v25 = vsel %vm3339_vm3, %v3256_v53, %v5471_v9 }
 0x5eb   :  { %v3537_v61 = vcombine.low %v3276_v55, %v3361_v25 }
 0x5ec   :  { %v3544_v29 = vrot.slane %v3536_v54, %v5489_v57  ;;  %v3336_v62 = vpop.permute.xlu0 %3335 }
 0x5ed   :  { %v3551_v6 = vrot.slane %v3537_v61, %v5489_v57  ;;  %v3357_v7 = vsel %vm3339_vm3, %v5612_v11, %v3336_v62  ;;  %v3338_v28 = vpop.permute.xlu1 %3337 }
 0x5ee   :  { %v3621_v36 = vcombine.low %v3356_v3, %v3357_v7  ;;  %v3358_v5 = vsel %vm3339_vm3, %v3336_v62, %v3338_v28 }
 0x5ef   :  { %v3552_v9 = vcombine.low %v3544_v29, %v3551_v6  ;;  %v3622_v56 = vcombine.low %v3358_v5, %v3338_v28 }
 0x5f0   :  { %v3629_v34 = vrot.slane %v3621_v36, %v5489_v57 }
 0x5f1   :  { %3662 = vst [vmem:[#allocation10 + $0x48] sm:$0xff] %v3552_v9  ;;  %v3636_v52 = vrot.slane %v3622_v56, %v5489_v57 }
 0x5f3   :  { %v3637_v13 = vcombine.low %v3629_v34, %v3636_v52 }
 0x5f5   :  { %3674 = vst.msk [vmem:[#allocation10 + $0x70] sm:$0xff] %vm3673_vm11, %v3637_v13 }
 0x5f6   :  { %5228 = shalt.err (!%p5225_p8)
}
 0x5f7   :  { %s5229_s17 = scalar_lea.hbm %s5788_s4, 1920 }
 0x5f8   :  { %p5230_p9 = scmp.ne.s32.totalorder %s5788_s4, %s5229_s17  ;;  %p5233_p10 = scmp.lt.u32.totalorder %s5229_s17, %s5788_s4 }
 0x5fa   :  { %p5235_p11 = pnand %p5233_p10, %p5230_p9 }
 0x5fc   :  { %5238 = shalt.err (!%p5235_p11)
}
 0x5fd   :  { %3684 = dma.vmem_to_hbm [thread:$0]  %s3682_s13, 1920, %s5788_s4, [#allocation4]  }
 0x5fe   :  { %5245 = dma.done.wait [#allocation4], 1920  }
 0x5ff   :  { %5246 = vsyncadd [#allocation4], 4294965376 }
 0x600   :  { %3688 = vsyncpa [#allocation3], 1 }
 0x601   :  { %3689 = vsyncpa [#allocation6], 1 }
 0x602   :  { %3690 = vsyncpa [#allocation9], 1 }
 0x603   :  { %3691 = vsyncpa [#allocation4], 1 }

</bundles_post_ra>
